<compile_context>
chip_gen: v6e
topology: v6e:2x2x1
jax: 0.10.0
libtpu: 0.0.40
codegen_flags: <defaults>
</compile_context>

<pallas_src>
import functools

import jax
import jax.numpy as jnp
import numpy as np
from jax.experimental import pallas as pl
from jax.experimental.pallas import tpu as pltpu

# ----------------------------- config ---------------------------------------
PAD_SIZE = 15           # CharCNN.pad_size (conv in_channels)
CHAR_DIM = 8            # CharCNN char_dim (conv length axis)
CHAR_VOCAB = 30         # synthetic char vocab (-> embedding rows = vocab + 2)
GLOVE_VOCAB = 20        # synthetic glove vocab
GLOVE_DIM = 32          # synthetic glove dim
CHAR_FILTERS = 32       # char_filters
HIDDEN_DIM = 32         # hidden_dim -> biLSTM_dim = 64
N_LAYERS = 2
KERNEL_SIZES = (3, 4, 5)
P_TOTAL = sum(CHAR_DIM - n + 1 for n in KERNEL_SIZES)    # 15 conv (bank,pos) groups
D0 = GLOVE_DIM + CHAR_FILTERS                            # 64 biLSTM input dim

SENT_BATCH = 8                        # sentences per grid step (MXU M-dim fill)
CHAR_K = PAD_SIZE * CHAR_DIM          # 120 im2col contraction dim
CHAR_K_PAD = 128                      # padded to a full lane group
GROUPS_PAD = 16                       # 15 real groups + 1 zero group
CONV_N = GROUPS_PAD * CHAR_FILTERS    # 512 conv output lanes

assert CONV_N % 128 == 0 and 128 % CHAR_FILTERS == 0


# ------------------------- fused encoder kernel ------------------------------
def encoder_kernel(lens_ref, glove_ref, charflat_ref, wbig_ref, bbig_ref,
                   wih0_ref, b0_ref, whh0_ref, wih1_ref, b1_ref, whh1_ref,
                   out_ref, gx_ref, y0_ref, y1_ref, embs_ref,
                   *, hidden, batch):
    """One grid step = SENT_BATCH sentences, time-major (T, B, .) blocks."""
    H = hidden
    B = batch
    T = glove_ref.shape[0]
    TB = T * B
    F = CHAR_FILTERS
    GD = glove_ref.shape[2]
    NG = 4 * H                                    # gate width per direction

    # -------- CharCNN: one aligned im2col matmul + ReLU + lane max-pool ------
    xc = charflat_ref[...].reshape(TB, charflat_ref.shape[2])        # (TB, 128)
    conv = jnp.dot(xc, wbig_ref[...], preferred_element_type=jnp.float32)
    conv = jnp.maximum(conv + bbig_ref[...], 0.0)                    # (TB, 512)
    m = conv[:, 0:128]
    for off in range(128, conv.shape[1], 128):                       # 3 aligned maxima
        m = jnp.maximum(m, conv[:, off:off + 128])
    span = 128
    while span > F:                               # XLU lane reductions (roll+max)
        span //= 2
        m = jnp.maximum(m, pltpu.roll(m, shift=span, axis=1))
    feat = m[:, 0:F]                                                  # (TB, F)
    emb = jnp.concatenate([glove_ref[...].reshape(TB, GD), feat], axis=1)
    embs_ref[...] = emb                                               # (TB, D0)
    # emb_dropout(p=0.5): identity at inference.
    # TODO(synk): training-mode dropout masks are not applied.

    # -------- fused fwd/bwd 2-layer LSTM recurrence ---------------------------
    row_i = jax.lax.broadcasted_iota(jnp.int32, (2 * B, NG), 0)
    fwd_rows = row_i < B                          # fwd rows use the Whh_f block
    lane_i = jax.lax.broadcasted_iota(jnp.int32, (2 * B, NG), 1)
    g_lanes = (lane_i >= 2 * H) & (lane_i < 3 * H)

    # Per-row sentence lengths: fwd rows always update; bwd rows update only
    # while the (absolute, reversed) time index is inside the true sentence,
    # so the bwd state is still zero when it reaches the true last token.
    lens_col = jnp.concatenate(
        [jnp.full((B, 1), 2 ** 30, jnp.int32), lens_ref[...]], axis=0)  # (2B,1)

    def run_layer(x2d, wih_ref, b_ref, whh_ref, y_ref):
        # Hoisted input projection for BOTH directions: one (TB, 8H) matmul.
        gx_ref[...] = jnp.dot(x2d, wih_ref[...],
                              preferred_element_type=jnp.float32) + b_ref[...]

        def step(s, h, c):
            r = T - 1 - s                          # bwd (absolute) time index
            sb, rb = s * B, r * B
            if not isinstance(s, int):             # dynamic (fori_loop) indices
                sb = pl.multiple_of(sb, B)
                rb = pl.multiple_of(rb, B)
            gx_f = gx_ref[pl.ds(sb, B), 0:NG]                     # (B, 4H)
            gx_b = gx_ref[pl.ds(rb, B), NG:2 * NG]                # (B, 4H)
            gxt = jnp.concatenate([gx_f, gx_b], axis=0)           # (2B, 4H)
            # One recurrent matmul for both directions: h @ [Whh_f | Whh_b].
            rec = jnp.dot(h, whh_ref[...], preferred_element_type=jnp.float32)
            gates = gxt + jnp.where(fwd_rows, rec[:, 0:NG], rec[:, NG:2 * NG])
            sg = jax.nn.sigmoid(gates)             # full-vreg EUP
            tg = jnp.tanh(gates)                   # full-vreg EUP
            act = jnp.where(g_lanes, tg, sg)       # i | f | g | o, all activated
            c_new = act[:, H:2 * H] * c + act[:, 0:H] * act[:, 2 * H:3 * H]
            h_new = act[:, 3 * H:4 * H] * jnp.tanh(c_new)
            upd = r < lens_col                     # (2B,1): freeze bwd in padding
            c = jnp.where(upd, c_new, c)
            h = jnp.where(upd, h_new, h)
            y_ref[pl.ds(sb, B), 0:H] = h[0:B]           # fwd output at time s
            y_ref[pl.ds(rb, B), H:2 * H] = h[B:2 * B]   # bwd output at time r
            return h, c

        h = jnp.zeros((2 * B, H), jnp.float32)
        c = jnp.zeros((2 * B, H), jnp.float32)
        if T <= 32:                                # short: full unroll, static ds
            for s in range(T):
                h, c = step(s, h, c)
        else:                                      # long: bound vreg live ranges
            _ = jax.lax.fori_loop(
                0, T, lambda s, hc: step(s, *hc), (h, c), unroll=4)

    run_layer(emb, wih0_ref, b0_ref, whh0_ref, y0_ref)
    # lstm_dropout(p=0.2) between layers: identity at inference.
    run_layer(y0_ref[...], wih1_ref, b1_ref, whh1_ref, y1_ref)

    # -------- single lane-dense (T, B, 128) output store: [ctx | emb] ---------
    out_ref[...] = jnp.concatenate(
        [y1_ref[...], embs_ref[...]], axis=1).reshape(T, B, 2 * H + D0)


# --------------------------- pallas_call wrapper ------------------------------
def _encoder_pallas(lens_col, glove_e, char_flat, fused):
    T_max, S_pad, _ = glove_e.shape
    H = HIDDEN_DIM
    B = SENT_BATCH
    out_dim = 2 * H + D0                                     # 128: [ctx | emb]
    kern = functools.partial(encoder_kernel, hidden=H, batch=B)
    return pl.pallas_call(
        kern,
        out_shape=jax.ShapeDtypeStruct((T_max, S_pad, out_dim), jnp.float32),
        grid=(S_pad // B,),
        in_specs=[
            pl.BlockSpec((B, 1), lambda i: (i, 0)),                     # lens
            pl.BlockSpec((T_max, B, GLOVE_DIM), lambda i: (0, i, 0)),   # glove
            pl.BlockSpec((T_max, B, CHAR_K_PAD), lambda i: (0, i, 0)),  # char im2col
            pl.BlockSpec((CHAR_K_PAD, CONV_N), lambda i: (0, 0)),       # w_big
            pl.BlockSpec((1, CONV_N), lambda i: (0, 0)),                # b_big
            pl.BlockSpec((D0, 8 * H), lambda i: (0, 0)),                # wih0_cat
            pl.BlockSpec((1, 8 * H), lambda i: (0, 0)),                 # b0_cat
            pl.BlockSpec((H, 8 * H), lambda i: (0, 0)),                 # whh0_wide
            pl.BlockSpec((2 * H, 8 * H), lambda i: (0, 0)),             # wih1_cat
            pl.BlockSpec((1, 8 * H), lambda i: (0, 0)),                 # b1_cat
            pl.BlockSpec((H, 8 * H), lambda i: (0, 0)),                 # whh1_wide
        ],
        out_specs=pl.BlockSpec((T_max, B, out_dim), lambda i: (0, i, 0)),
        scratch_shapes=[
            pltpu.VMEM((T_max * B, 8 * H), jnp.float32),   # gates_x (both dirs)
            pltpu.VMEM((T_max * B, 2 * H), jnp.float32),   # layer-0 output
            pltpu.VMEM((T_max * B, 2 * H), jnp.float32),   # layer-1 output
            pltpu.VMEM((T_max * B, D0), jnp.float32),      # embedding staging
        ],
        compiler_params=pltpu.CompilerParams(
            dimension_semantics=("parallel",),             # sentence blocks
            vmem_limit_bytes=32 * 1024 * 1024),
    )(lens_col, glove_e, char_flat, fused["w_big"], fused["b_big"],
      fused["wih0_cat"], fused["b0_cat"], fused["whh0_wide"],
      fused["wih1_cat"], fused["b1_cat"], fused["whh1_wide"])


@jax.jit
def _encode_device(g_ids, c_ids, lens_col, gather_idx, fused):
    T_max, S_pad = g_ids.shape
    glove_e = jnp.take(fused["glove"], g_ids, axis=0)                 # (T,S,32)
    char_flat = jnp.take(fused["char_emb"], c_ids, axis=0).reshape(
        T_max, S_pad, CHAR_K)
    char_flat = jnp.pad(char_flat, ((0, 0), (0, 0), (0, CHAR_K_PAD - CHAR_K)))
    out = _encoder_pallas(lens_col, glove_e, char_flat, fused)        # (T,S,128)
    flat = out.reshape(T_max * S_pad, 2 * HIDDEN_DIM + D0)
    sel = jnp.take(flat, gather_idx, axis=0)                          # compaction
    return sel[:, :2 * HIDDEN_DIM], sel[:, 2 * HIDDEN_DIM:]


# --------------------------- DocumentEncoder forward -------------------------
def _round_up(x, m):
    return ((x + m - 1) // m) * m


def document_encoder_forward(sents_glove_ids, sents_char_ids, params):
    S = len(sents_glove_ids)
    lens = [int(g.shape[0]) for g in sents_glove_ids]
    T_max = max(8, _round_up(max(lens), 8))
    S_pad = _round_up(S, SENT_BATCH)

    # Host-side index bookkeeping (numpy): time-major padded id tensors and a
    # single gather index for the packed (unpadded, original-order) outputs.
    g_ids = np.zeros((T_max, S_pad), np.int32)
    c_ids = np.zeros((T_max, S_pad, PAD_SIZE), np.int32)
    lens_col = np.zeros((S_pad, 1), np.int32)
    for i, (g, c) in enumerate(zip(sents_glove_ids, sents_char_ids)):
        L = lens[i]
        g_ids[:L, i] = np.asarray(g)
        c_ids[:L, i, :] = np.asarray(c)
        lens_col[i, 0] = L
    gather_idx = np.concatenate(
        [np.arange(L) * S_pad + i for i, L in enumerate(lens)]).astype(np.int32)

    fl0, fl1 = params["lstm"][0], params["lstm"][1]
    fused = {
        "glove": params["glove"], "char_emb": params["char_emb"],
        "w_big": params["char_cnn"]["w_big"], "b_big": params["char_cnn"]["b_big"],
        "wih0_cat": fl0["wih_cat"], "b0_cat": fl0["b_cat"],
        "whh0_wide": fl0["whh_wide"],
        "wih1_cat": fl1["wih_cat"], "b1_cat": fl1["b_cat"],
        "whh1_wide": fl1["whh_wide"],
    }
    return _encode_device(jnp.asarray(g_ids), jnp.asarray(c_ids),
                          jnp.asarray(lens_col), jnp.asarray(gather_idx), fused)


# ------------------------------ parameter init --------------------------------
def init_params(key):
    keys = jax.random.split(key, 16)
    p = {}

    # Glove embedding: normal weights, L2-normalized per row (F.normalize).
    g = jax.random.normal(keys[0], (GLOVE_VOCAB, GLOVE_DIM), jnp.float32)
    p["glove"] = g / jnp.linalg.norm(g, axis=1, keepdims=True)

    # Char embedding: (vocab+2, char_dim), padding_idx=0 row zeroed.
    ce = 0.1 * jax.random.normal(keys[1], (CHAR_VOCAB + 2, CHAR_DIM), jnp.float32)
    p["char_emb"] = ce.at[0].set(0.0)

    # Conv1d weights (PyTorch shape (F, C_in=15, n)).  Raw kept for the
    # reference; fused into one lane-padded im2col matrix (128, 512) for the
    # kernel: column block (bank, pos) has W[f, c, k] at row c*CHAR_DIM+pos+k.
    cnn_raw = {}
    wbig_blocks, bbig_blocks = [], []
    for i, n in enumerate(KERNEL_SIZES):
        bound = float(1.0 / (PAD_SIZE * n) ** 0.5)
        w = jax.random.uniform(keys[2 + i], (CHAR_FILTERS, PAD_SIZE, n),
                               jnp.float32, -bound, bound)
        b = jax.random.uniform(keys[5 + i], (CHAR_FILTERS,),
                               jnp.float32, -bound, bound)
        cnn_raw[f"w{n}"] = w
        cnn_raw[f"b{n}"] = b
        w_t = jnp.transpose(w, (1, 2, 0))                    # (15, n, F)
        for pos in range(CHAR_DIM - n + 1):
            blk = jnp.zeros((PAD_SIZE, CHAR_DIM, CHAR_FILTERS), jnp.float32)
            blk = blk.at[:, pos:pos + n, :].set(w_t)
            wbig_blocks.append(blk.reshape(CHAR_K, CHAR_FILTERS))
            bbig_blocks.append(b[None, :])
    w_big = jnp.concatenate(wbig_blocks, axis=1)             # (120, 480)
    b_big = jnp.concatenate(bbig_blocks, axis=1)             # (1, 480)
    # Pad to lane-aligned shapes; zero rows/cols are benign (ReLU >= 0 maxpool).
    w_big = jnp.pad(w_big, ((0, CHAR_K_PAD - CHAR_K), (0, CONV_N - w_big.shape[1])))
    b_big = jnp.pad(b_big, ((0, 0), (0, CONV_N - b_big.shape[1])))
    p["char_cnn_raw"] = cnn_raw
    p["char_cnn"] = {"w_big": w_big, "b_big": b_big}

    # LSTM: 2 layers x 2 directions.  Weights stored transposed (Din,4H)/(H,4H),
    # bias = b_ih + b_hh as (1, 4H).  Gate order i,f,g,o (PyTorch).  Raw kept
    # for the reference; fused [fwd|bwd] layouts built for the kernel.
    H = HIDDEN_DIM
    stdv = float(1.0 / H ** 0.5)
    lstm_raw, lstm_fused = [], []
    kidx = 8
    for layer in range(N_LAYERS):
        d_in = D0 if layer == 0 else 2 * H
        lp = {}
        for dname in ("f", "b"):
            k1, k2, k3, k4 = jax.random.split(keys[kidx], 4)
            kidx += 1
            lp[f"wih_{dname}"] = jax.random.uniform(
                k1, (d_in, 4 * H), jnp.float32, -stdv, stdv)
            lp[f"whh_{dname}"] = jax.random.uniform(
                k2, (H, 4 * H), jnp.float32, -stdv, stdv)
            b_ih = jax.random.uniform(k3, (1, 4 * H), jnp.float32, -stdv, stdv)
            b_hh = jax.random.uniform(k4, (1, 4 * H), jnp.float32, -stdv, stdv)
            lp[f"b_{dname}"] = b_ih + b_hh
        lstm_raw.append(lp)
        lstm_fused.append({
            "wih_cat": jnp.concatenate([lp["wih_f"], lp["wih_b"]], axis=1),   # (Din,8H)
            "b_cat": jnp.concatenate([lp["b_f"], lp["b_b"]], axis=1),         # (1,8H)
            "whh_wide": jnp.concatenate([lp["whh_f"], lp["whh_b"]], axis=1),  # (H,8H)
        })
    p["lstm_raw"] = lstm_raw
    p["lstm"] = lstm_fused
    return p


# ------------------------------ pure-JAX reference ----------------------------
def _ref_lstm_dir(x, wih, whh, b, reverse, prec):
    T = x.shape[0]
    H = whh.shape[0]
    h = jnp.zeros((1, H), jnp.float32)
    c = jnp.zeros((1, H), jnp.float32)
    order = range(T - 1, -1, -1) if reverse else range(T)
    ys = [None] * T
    for t in order:
        gates = (jnp.dot(x[t:t + 1], wih, precision=prec)
                 + jnp.dot(h, whh, precision=prec) + b)
        i = jax.nn.sigmoid(gates[:, 0 * H:1 * H])
        f = jax.nn.sigmoid(gates[:, 1 * H:2 * H])
        g = jnp.tanh(gates[:, 2 * H:3 * H])
        o = jax.nn.sigmoid(gates[:, 3 * H:4 * H])
        c = f * c + i * g
        h = o * jnp.tanh(c)
        ys[t] = h
    return jnp.concatenate(ys, axis=0)


def reference_forward(sents_glove_ids, sents_char_ids, params):
    prec = jax.lax.Precision.HIGHEST
    embeds, ctxs = [], []
    for g_ids, c_ids in zip(sents_glove_ids, sents_char_ids):
        ge = params["glove"][g_ids]
        ce = params["char_emb"][c_ids]                       # (T, 15, 8)
        pooled = None
        for n in KERNEL_SIZES:
            w = params["char_cnn_raw"][f"w{n}"]              # (F, 15, n)
            b = params["char_cnn_raw"][f"b{n}"]              # (F,)
            for pos in range(CHAR_DIM - n + 1):
                win = ce[:, :, pos:pos + n]
                o = jnp.einsum("tck,fck->tf", win, w, precision=prec) + b[None, :]
                o = jnp.maximum(o, 0.0)
                pooled = o if pooled is None else jnp.maximum(pooled, o)
        e = jnp.concatenate([ge, pooled], axis=1)
        embeds.append(e)
        h = e
        for layer in range(N_LAYERS):
            lp = params["lstm_raw"][layer]
            fwd = _ref_lstm_dir(h, lp["wih_f"], lp["whh_f"], lp["b_f"], False, prec)
            bwd = _ref_lstm_dir(h, lp["wih_b"], lp["whh_b"], lp["b_b"], True, prec)
            h = jnp.concatenate([fwd, bwd], axis=1)
        ctxs.append(h)
    return jnp.concatenate(ctxs, axis=0), jnp.concatenate(embeds, axis=0)


# ----------------------------------- main -------------------------------------
if __name__ == "__main__":
    key = jax.random.PRNGKey(0)
    params = init_params(key)

    # Two "sentences" (already tokenized to lookup ids; the string->id glue of
    # the PyTorch module is not numeric compute).
    sent_lens = (5, 7)
    k_g, k_c = jax.random.split(jax.random.PRNGKey(0))
    sents_glove_ids, sents_char_ids = [], []
    for si, T in enumerate(sent_lens):
        kg = jax.random.fold_in(k_g, si)
        kc = jax.random.fold_in(k_c, si)
        sents_glove_ids.append(
            jax.random.randint(kg, (T,), 0, GLOVE_VOCAB, jnp.int32))
        sents_char_ids.append(
            jax.random.randint(kc, (T, PAD_SIZE), 0, CHAR_VOCAB + 2, jnp.int32))

    contextual, embeds = document_encoder_forward(
        sents_glove_ids, sents_char_ids, params)
    jax.block_until_ready((contextual, embeds))

    total_tokens = sum(sent_lens)
    assert contextual.shape == (total_tokens, 2 * HIDDEN_DIM), contextual.shape
    assert embeds.shape == (total_tokens, D0), embeds.shape

    # Numerical check against a pure-JAX reference of the PyTorch module.
    ctx_ref, emb_ref = reference_forward(sents_glove_ids, sents_char_ids, params)
    err_ctx = float(jnp.max(jnp.abs(contextual - ctx_ref)))
    err_emb = float(jnp.max(jnp.abs(embeds - emb_ref)))
    assert err_ctx < 2e-2 and err_emb < 2e-2, (err_ctx, err_emb)

    print("KERNEL_OK")
</pallas_src>

<mosaic_0001>
module attributes {stable_mosaic.version = 11 : i64} {
  func.func @encoder_kernel(%arg0: i32, %arg1: memref<8x1xi32, #tpu.memory_space<vmem>>, %arg2: memref<8x8x32xf32, #tpu.memory_space<vmem>>, %arg3: memref<8x8x128xf32, #tpu.memory_space<vmem>>, %arg4: memref<128x512xf32, #tpu.memory_space<vmem>>, %arg5: memref<1x512xf32, #tpu.memory_space<vmem>>, %arg6: memref<64x256xf32, #tpu.memory_space<vmem>>, %arg7: memref<1x256xf32, #tpu.memory_space<vmem>>, %arg8: memref<32x256xf32, #tpu.memory_space<vmem>>, %arg9: memref<64x256xf32, #tpu.memory_space<vmem>>, %arg10: memref<1x256xf32, #tpu.memory_space<vmem>>, %arg11: memref<32x256xf32, #tpu.memory_space<vmem>>, %arg12: memref<8x8x128xf32, #tpu.memory_space<vmem>>, %arg13: memref<64x256xf32, #tpu.memory_space<vmem>>, %arg14: memref<64x64xf32, #tpu.memory_space<vmem>>, %arg15: memref<64x64xf32, #tpu.memory_space<vmem>>, %arg16: memref<64x64xf32, #tpu.memory_space<vmem>>) attributes {dimension_semantics = [#tpu.dimension_semantics<parallel>], iteration_bounds = array<i64: 1>, scalar_prefetch = 0 : i64, scratch_operands = 4 : i64, tpu.core_type = #tpu.core_type<tc>, window_params = [{transform_indices = @transform_0, window_bounds = array<i64: 8, 1>}, {transform_indices = @transform_1, window_bounds = array<i64: 8, 8, 32>}, {transform_indices = @transform_2, window_bounds = array<i64: 8, 8, 128>}, {pipeline_mode = #tpu.pipeline_mode<synchronous>, transform_indices = @transform_3, window_bounds = array<i64: 128, 512>}, {pipeline_mode = #tpu.pipeline_mode<synchronous>, transform_indices = @transform_4, window_bounds = array<i64: 1, 512>}, {pipeline_mode = #tpu.pipeline_mode<synchronous>, transform_indices = @transform_5, window_bounds = array<i64: 64, 256>}, {pipeline_mode = #tpu.pipeline_mode<synchronous>, transform_indices = @transform_6, window_bounds = array<i64: 1, 256>}, {pipeline_mode = #tpu.pipeline_mode<synchronous>, transform_indices = @transform_7, window_bounds = array<i64: 32, 256>}, {pipeline_mode = #tpu.pipeline_mode<synchronous>, transform_indices = @transform_8, window_bounds = array<i64: 64, 256>}, {pipeline_mode = #tpu.pipeline_mode<synchronous>, transform_indices = @transform_9, window_bounds = array<i64: 1, 256>}, {pipeline_mode = #tpu.pipeline_mode<synchronous>, transform_indices = @transform_10, window_bounds = array<i64: 32, 256>}, {transform_indices = @transform_11, window_bounds = array<i64: 8, 8, 128>}]} {
    %c0 = arith.constant 0 : index
    %c0_0 = arith.constant 0 : index
    %c0_1 = arith.constant 0 : index
    %0 = vector.load %arg3[%c0, %c0_0, %c0_1] : memref<8x8x128xf32, #tpu.memory_space<vmem>>, vector<8x8x128xf32>
    %1 = vector.shape_cast %0 : vector<8x8x128xf32> to vector<64x128xf32>
    %c0_2 = arith.constant 0 : index
    %c0_3 = arith.constant 0 : index
    %2 = vector.load %arg4[%c0_2, %c0_3] : memref<128x512xf32, #tpu.memory_space<vmem>>, vector<128x512xf32>
    %cst = arith.constant dense<0.000000e+00> : vector<64x512xf32>
    %3 = tpu.matmul %1, %2, %cst {dimension_numbers = #tpu.dot_dimension_numbers<[1], [0], [0], [1], [0, 0, 1, 1], [], []>} : vector<64x128xf32>, vector<128x512xf32>, vector<64x512xf32> -> vector<64x512xf32>
    %c0_4 = arith.constant 0 : index
    %c0_5 = arith.constant 0 : index
    %4 = vector.load %arg5[%c0_4, %c0_5] : memref<1x512xf32, #tpu.memory_space<vmem>>, vector<1x512xf32>
    %5 = vector.broadcast %4 : vector<1x512xf32> to vector<64x512xf32>
    %6 = arith.addf %3, %5 : vector<64x512xf32>
    %cst_6 = arith.constant 0.000000e+00 : f32
    %7 = vector.broadcast %cst_6 : f32 to vector<64x512xf32>
    %8 = arith.maximumf %6, %7 : vector<64x512xf32>
    %9 = vector.extract_strided_slice %8 {offsets = [0, 0], sizes = [64, 128], strides = [1, 1]} : vector<64x512xf32> to vector<64x128xf32>
    %10 = vector.extract_strided_slice %8 {offsets = [0, 128], sizes = [64, 128], strides = [1, 1]} : vector<64x512xf32> to vector<64x128xf32>
    %11 = arith.maximumf %9, %10 : vector<64x128xf32>
    %12 = vector.extract_strided_slice %8 {offsets = [0, 256], sizes = [64, 128], strides = [1, 1]} : vector<64x512xf32> to vector<64x128xf32>
    %13 = arith.maximumf %11, %12 : vector<64x128xf32>
    %14 = vector.extract_strided_slice %8 {offsets = [0, 384], sizes = [64, 128], strides = [1, 1]} : vector<64x512xf32> to vector<64x128xf32>
    %15 = arith.maximumf %13, %14 : vector<64x128xf32>
    %c64_i32 = arith.constant 64 : i32
    %16 = tpu.dynamic_rotate %15 by %c64_i32 dim 1 : vector<64x128xf32>, i32 -> vector<64x128xf32>
    %17 = arith.maximumf %15, %16 : vector<64x128xf32>
    %c32_i32 = arith.constant 32 : i32
    %18 = tpu.dynamic_rotate %17 by %c32_i32 dim 1 : vector<64x128xf32>, i32 -> vector<64x128xf32>
    %19 = arith.maximumf %17, %18 : vector<64x128xf32>
    %20 = vector.extract_strided_slice %19 {offsets = [0, 0], sizes = [64, 32], strides = [1, 1]} : vector<64x128xf32> to vector<64x32xf32>
    %c0_7 = arith.constant 0 : index
    %c0_8 = arith.constant 0 : index
    %c0_9 = arith.constant 0 : index
    %21 = vector.load %arg2[%c0_7, %c0_8, %c0_9] : memref<8x8x32xf32, #tpu.memory_space<vmem>>, vector<8x8x32xf32>
    %22 = vector.shape_cast %21 : vector<8x8x32xf32> to vector<64x32xf32>
    %23 = tpu.concatenate %22, %20 in 1 : vector<64x32xf32>, vector<64x32xf32> -> vector<64x64xf32>
    %c0_10 = arith.constant 0 : index
    %c0_11 = arith.constant 0 : index
    %24 = vector.load %arg16[%c0_10, %c0_11] : memref<64x64xf32, #tpu.memory_space<vmem>>, vector<64x64xf32>
    tpu.vector_store %arg16[%c0_10, %c0_11], %23 {strides = array<i32>} : memref<64x64xf32, #tpu.memory_space<vmem>>, vector<64x64xf32>,
    %25 = tpu.iota {dimensions = array<i32: 0>} : vector<16x128xi32>
    %c8_i32 = arith.constant 8 : i32
    %26 = vector.broadcast %c8_i32 : i32 to vector<16x128xi32>
    %27 = arith.cmpi slt, %25, %26 : vector<16x128xi32>
    %28 = tpu.iota {dimensions = array<i32: 1>} : vector<16x128xi32>
    %c64_i32_12 = arith.constant 64 : i32
    %29 = vector.broadcast %c64_i32_12 : i32 to vector<16x128xi32>
    %30 = arith.cmpi sge, %28, %29 : vector<16x128xi32>
    %c96_i32 = arith.constant 96 : i32
    %31 = vector.broadcast %c96_i32 : i32 to vector<16x128xi32>
    %32 = arith.cmpi slt, %28, %31 : vector<16x128xi32>
    %33 = arith.andi %30, %32 : vector<16x128xi1>
    %c1073741824_i32 = arith.constant 1073741824 : i32
    %34 = vector.broadcast %c1073741824_i32 : i32 to vector<8x1xi32>
    %c0_13 = arith.constant 0 : index
    %c0_14 = arith.constant 0 : index
    %35 = vector.load %arg1[%c0_13, %c0_14] : memref<8x1xi32, #tpu.memory_space<vmem>>, vector<8x1xi32>
    %36 = tpu.concatenate %34, %35 in 0 : vector<8x1xi32>, vector<8x1xi32> -> vector<16x1xi32>
    %c0_15 = arith.constant 0 : index
    %c0_16 = arith.constant 0 : index
    %37 = vector.load %arg6[%c0_15, %c0_16] : memref<64x256xf32, #tpu.memory_space<vmem>>, vector<64x256xf32>
    %cst_17 = arith.constant dense<0.000000e+00> : vector<64x256xf32>
    %38 = tpu.matmul %23, %37, %cst_17 {dimension_numbers = #tpu.dot_dimension_numbers<[1], [0], [0], [1], [0, 0, 1, 1], [], []>} : vector<64x64xf32>, vector<64x256xf32>, vector<64x256xf32> -> vector<64x256xf32>
    %c0_18 = arith.constant 0 : index
    %c0_19 = arith.constant 0 : index
    %39 = vector.load %arg7[%c0_18, %c0_19] : memref<1x256xf32, #tpu.memory_space<vmem>>, vector<1x256xf32>
    %40 = vector.broadcast %39 : vector<1x256xf32> to vector<64x256xf32>
    %41 = arith.addf %38, %40 : vector<64x256xf32>
    %c0_20 = arith.constant 0 : index
    %c0_21 = arith.constant 0 : index
    %42 = vector.load %arg13[%c0_20, %c0_21] : memref<64x256xf32, #tpu.memory_space<vmem>>, vector<64x256xf32>
    tpu.vector_store %arg13[%c0_20, %c0_21], %41 {strides = array<i32>} : memref<64x256xf32, #tpu.memory_space<vmem>>, vector<64x256xf32>,
    %cst_22 = arith.constant 0.000000e+00 : f32
    %43 = vector.broadcast %cst_22 : f32 to vector<16x32xf32>
    %cst_23 = arith.constant 0.000000e+00 : f32
    %44 = vector.broadcast %cst_23 : f32 to vector<16x32xf32>
    %c0_24 = arith.constant 0 : index
    %c0_25 = arith.constant 0 : index
    %45 = vector.load %arg13[%c0_24, %c0_25] : memref<64x256xf32, #tpu.memory_space<vmem>>, vector<8x128xf32>
    %c56 = arith.constant 56 : index
    %c128 = arith.constant 128 : index
    %46 = vector.load %arg13[%c56, %c128] : memref<64x256xf32, #tpu.memory_space<vmem>>, vector<8x128xf32>
    %47 = tpu.concatenate %45, %46 in 0 : vector<8x128xf32>, vector<8x128xf32> -> vector<16x128xf32>
    %c0_26 = arith.constant 0 : index
    %c0_27 = arith.constant 0 : index
    %48 = vector.load %arg8[%c0_26, %c0_27] : memref<32x256xf32, #tpu.memory_space<vmem>>, vector<32x256xf32>
    %cst_28 = arith.constant dense<0.000000e+00> : vector<16x256xf32>
    %49 = tpu.matmul %43, %48, %cst_28 {dimension_numbers = #tpu.dot_dimension_numbers<[1], [0], [0], [1], [0, 0, 1, 1], [], []>} : vector<16x32xf32>, vector<32x256xf32>, vector<16x256xf32> -> vector<16x256xf32>
    %50 = vector.extract_strided_slice %49 {offsets = [0, 0], sizes = [16, 128], strides = [1, 1]} : vector<16x256xf32> to vector<16x128xf32>
    %51 = vector.extract_strided_slice %49 {offsets = [0, 128], sizes = [16, 128], strides = [1, 1]} : vector<16x256xf32> to vector<16x128xf32>
    %52 = arith.select %27, %50, %51 : vector<16x128xi1>, vector<16x128xf32>
    %53 = arith.addf %47, %52 : vector<16x128xf32>
    %54 = arith.negf %53 : vector<16x128xf32>
    %55 = math.exp %54 : vector<16x128xf32>
    %cst_29 = arith.constant 1.000000e+00 : f32
    %56 = vector.broadcast %cst_29 : f32 to vector<16x128xf32>
    %57 = arith.addf %56, %55 : vector<16x128xf32>
    %58 = arith.divf %56, %57 : vector<16x128xf32>
    %59 = math.tanh %53 : vector<16x128xf32>
    %60 = arith.select %33, %59, %58 : vector<16x128xi1>, vector<16x128xf32>
    %61 = vector.extract_strided_slice %60 {offsets = [0, 32], sizes = [16, 32], strides = [1, 1]} : vector<16x128xf32> to vector<16x32xf32>
    %62 = arith.mulf %61, %44 : vector<16x32xf32>
    %63 = vector.extract_strided_slice %60 {offsets = [0, 0], sizes = [16, 32], strides = [1, 1]} : vector<16x128xf32> to vector<16x32xf32>
    %64 = vector.extract_strided_slice %60 {offsets = [0, 64], sizes = [16, 32], strides = [1, 1]} : vector<16x128xf32> to vector<16x32xf32>
    %65 = arith.mulf %63, %64 : vector<16x32xf32>
    %66 = arith.addf %62, %65 : vector<16x32xf32>
    %67 = vector.extract_strided_slice %60 {offsets = [0, 96], sizes = [16, 32], strides = [1, 1]} : vector<16x128xf32> to vector<16x32xf32>
    %68 = math.tanh %66 : vector<16x32xf32>
    %69 = arith.mulf %67, %68 : vector<16x32xf32>
    %c7_i32 = arith.constant 7 : i32
    %70 = vector.broadcast %c7_i32 : i32 to vector<16x1xi32>
    %71 = arith.cmpi sgt, %36, %70 : vector<16x1xi32>
    %72 = vector.shape_cast %71 : vector<16x1xi1> to vector<16x1xi1>
    %73 = vector.broadcast %72 : vector<16x1xi1> to vector<16x32xi1>
    %74 = arith.select %73, %66, %44 : vector<16x32xi1>, vector<16x32xf32>
    %75 = vector.shape_cast %71 : vector<16x1xi1> to vector<16x1xi1>
    %76 = vector.broadcast %75 : vector<16x1xi1> to vector<16x32xi1>
    %77 = arith.select %76, %69, %43 : vector<16x32xi1>, vector<16x32xf32>
    %78 = vector.extract_strided_slice %77 {offsets = [0, 0], sizes = [8, 32], strides = [1, 1]} : vector<16x32xf32> to vector<8x32xf32>
    %c0_30 = arith.constant 0 : index
    %c0_31 = arith.constant 0 : index
    %79 = vector.load %arg14[%c0_30, %c0_31] : memref<64x64xf32, #tpu.memory_space<vmem>>, vector<8x32xf32>
    tpu.vector_store %arg14[%c0_30, %c0_31], %78 {strides = array<i32>} : memref<64x64xf32, #tpu.memory_space<vmem>>, vector<8x32xf32>,
    %80 = vector.extract_strided_slice %77 {offsets = [8, 0], sizes = [8, 32], strides = [1, 1]} : vector<16x32xf32> to vector<8x32xf32>
    %c56_32 = arith.constant 56 : index
    %c32 = arith.constant 32 : index
    %81 = vector.load %arg14[%c56_32, %c32] : memref<64x64xf32, #tpu.memory_space<vmem>>, vector<8x32xf32>
    tpu.vector_store %arg14[%c56_32, %c32], %80 {strides = array<i32>} : memref<64x64xf32, #tpu.memory_space<vmem>>, vector<8x32xf32>,
    %c8 = arith.constant 8 : index
    %c0_33 = arith.constant 0 : index
    %82 = vector.load %arg13[%c8, %c0_33] : memref<64x256xf32, #tpu.memory_space<vmem>>, vector<8x128xf32>
    %c48 = arith.constant 48 : index
    %c128_34 = arith.constant 128 : index
    %83 = vector.load %arg13[%c48, %c128_34] : memref<64x256xf32, #tpu.memory_space<vmem>>, vector<8x128xf32>
    %84 = tpu.concatenate %82, %83 in 0 : vector<8x128xf32>, vector<8x128xf32> -> vector<16x128xf32>
    %c0_35 = arith.constant 0 : index
    %c0_36 = arith.constant 0 : index
    %85 = vector.load %arg8[%c0_35, %c0_36] : memref<32x256xf32, #tpu.memory_space<vmem>>, vector<32x256xf32>
    %cst_37 = arith.constant dense<0.000000e+00> : vector<16x256xf32>
    %86 = tpu.matmul %77, %85, %cst_37 {dimension_numbers = #tpu.dot_dimension_numbers<[1], [0], [0], [1], [0, 0, 1, 1], [], []>} : vector<16x32xf32>, vector<32x256xf32>, vector<16x256xf32> -> vector<16x256xf32>
    %87 = vector.extract_strided_slice %86 {offsets = [0, 0], sizes = [16, 128], strides = [1, 1]} : vector<16x256xf32> to vector<16x128xf32>
    %88 = vector.extract_strided_slice %86 {offsets = [0, 128], sizes = [16, 128], strides = [1, 1]} : vector<16x256xf32> to vector<16x128xf32>
    %89 = arith.select %27, %87, %88 : vector<16x128xi1>, vector<16x128xf32>
    %90 = arith.addf %84, %89 : vector<16x128xf32>
    %91 = arith.negf %90 : vector<16x128xf32>
    %92 = math.exp %91 : vector<16x128xf32>
    %cst_38 = arith.constant 1.000000e+00 : f32
    %93 = vector.broadcast %cst_38 : f32 to vector<16x128xf32>
    %94 = arith.addf %93, %92 : vector<16x128xf32>
    %95 = arith.divf %93, %94 : vector<16x128xf32>
    %96 = math.tanh %90 : vector<16x128xf32>
    %97 = arith.select %33, %96, %95 : vector<16x128xi1>, vector<16x128xf32>
    %98 = vector.extract_strided_slice %97 {offsets = [0, 32], sizes = [16, 32], strides = [1, 1]} : vector<16x128xf32> to vector<16x32xf32>
    %99 = arith.mulf %98, %74 : vector<16x32xf32>
    %100 = vector.extract_strided_slice %97 {offsets = [0, 0], sizes = [16, 32], strides = [1, 1]} : vector<16x128xf32> to vector<16x32xf32>
    %101 = vector.extract_strided_slice %97 {offsets = [0, 64], sizes = [16, 32], strides = [1, 1]} : vector<16x128xf32> to vector<16x32xf32>
    %102 = arith.mulf %100, %101 : vector<16x32xf32>
    %103 = arith.addf %99, %102 : vector<16x32xf32>
    %104 = vector.extract_strided_slice %97 {offsets = [0, 96], sizes = [16, 32], strides = [1, 1]} : vector<16x128xf32> to vector<16x32xf32>
    %105 = math.tanh %103 : vector<16x32xf32>
    %106 = arith.mulf %104, %105 : vector<16x32xf32>
    %c6_i32 = arith.constant 6 : i32
    %107 = vector.broadcast %c6_i32 : i32 to vector<16x1xi32>
    %108 = arith.cmpi sgt, %36, %107 : vector<16x1xi32>
    %109 = vector.shape_cast %108 : vector<16x1xi1> to vector<16x1xi1>
    %110 = vector.broadcast %109 : vector<16x1xi1> to vector<16x32xi1>
    %111 = arith.select %110, %103, %74 : vector<16x32xi1>, vector<16x32xf32>
    %112 = vector.shape_cast %108 : vector<16x1xi1> to vector<16x1xi1>
    %113 = vector.broadcast %112 : vector<16x1xi1> to vector<16x32xi1>
    %114 = arith.select %113, %106, %77 : vector<16x32xi1>, vector<16x32xf32>
    %115 = vector.extract_strided_slice %114 {offsets = [0, 0], sizes = [8, 32], strides = [1, 1]} : vector<16x32xf32> to vector<8x32xf32>
    %c8_39 = arith.constant 8 : index
    %c0_40 = arith.constant 0 : index
    %116 = vector.load %arg14[%c8_39, %c0_40] : memref<64x64xf32, #tpu.memory_space<vmem>>, vector<8x32xf32>
    tpu.vector_store %arg14[%c8_39, %c0_40], %115 {strides = array<i32>} : memref<64x64xf32, #tpu.memory_space<vmem>>, vector<8x32xf32>,
    %117 = vector.extract_strided_slice %114 {offsets = [8, 0], sizes = [8, 32], strides = [1, 1]} : vector<16x32xf32> to vector<8x32xf32>
    %c48_41 = arith.constant 48 : index
    %c32_42 = arith.constant 32 : index
    %118 = vector.load %arg14[%c48_41, %c32_42] : memref<64x64xf32, #tpu.memory_space<vmem>>, vector<8x32xf32>
    tpu.vector_store %arg14[%c48_41, %c32_42], %117 {strides = array<i32>} : memref<64x64xf32, #tpu.memory_space<vmem>>, vector<8x32xf32>,
    %c16 = arith.constant 16 : index
    %c0_43 = arith.constant 0 : index
    %119 = vector.load %arg13[%c16, %c0_43] : memref<64x256xf32, #tpu.memory_space<vmem>>, vector<8x128xf32>
    %c40 = arith.constant 40 : index
    %c128_44 = arith.constant 128 : index
    %120 = vector.load %arg13[%c40, %c128_44] : memref<64x256xf32, #tpu.memory_space<vmem>>, vector<8x128xf32>
    %121 = tpu.concatenate %119, %120 in 0 : vector<8x128xf32>, vector<8x128xf32> -> vector<16x128xf32>
    %c0_45 = arith.constant 0 : index
    %c0_46 = arith.constant 0 : index
    %122 = vector.load %arg8[%c0_45, %c0_46] : memref<32x256xf32, #tpu.memory_space<vmem>>, vector<32x256xf32>
    %cst_47 = arith.constant dense<0.000000e+00> : vector<16x256xf32>
    %123 = tpu.matmul %114, %122, %cst_47 {dimension_numbers = #tpu.dot_dimension_numbers<[1], [0], [0], [1], [0, 0, 1, 1], [], []>} : vector<16x32xf32>, vector<32x256xf32>, vector<16x256xf32> -> vector<16x256xf32>
    %124 = vector.extract_strided_slice %123 {offsets = [0, 0], sizes = [16, 128], strides = [1, 1]} : vector<16x256xf32> to vector<16x128xf32>
    %125 = vector.extract_strided_slice %123 {offsets = [0, 128], sizes = [16, 128], strides = [1, 1]} : vector<16x256xf32> to vector<16x128xf32>
    %126 = arith.select %27, %124, %125 : vector<16x128xi1>, vector<16x128xf32>
    %127 = arith.addf %121, %126 : vector<16x128xf32>
    %128 = arith.negf %127 : vector<16x128xf32>
    %129 = math.exp %128 : vector<16x128xf32>
    %cst_48 = arith.constant 1.000000e+00 : f32
    %130 = vector.broadcast %cst_48 : f32 to vector<16x128xf32>
    %131 = arith.addf %130, %129 : vector<16x128xf32>
    %132 = arith.divf %130, %131 : vector<16x128xf32>
    %133 = math.tanh %127 : vector<16x128xf32>
    %134 = arith.select %33, %133, %132 : vector<16x128xi1>, vector<16x128xf32>
    %135 = vector.extract_strided_slice %134 {offsets = [0, 32], sizes = [16, 32], strides = [1, 1]} : vector<16x128xf32> to vector<16x32xf32>
    %136 = arith.mulf %135, %111 : vector<16x32xf32>
    %137 = vector.extract_strided_slice %134 {offsets = [0, 0], sizes = [16, 32], strides = [1, 1]} : vector<16x128xf32> to vector<16x32xf32>
    %138 = vector.extract_strided_slice %134 {offsets = [0, 64], sizes = [16, 32], strides = [1, 1]} : vector<16x128xf32> to vector<16x32xf32>
    %139 = arith.mulf %137, %138 : vector<16x32xf32>
    %140 = arith.addf %136, %139 : vector<16x32xf32>
    %141 = vector.extract_strided_slice %134 {offsets = [0, 96], sizes = [16, 32], strides = [1, 1]} : vector<16x128xf32> to vector<16x32xf32>
    %142 = math.tanh %140 : vector<16x32xf32>
    %143 = arith.mulf %141, %142 : vector<16x32xf32>
    %c5_i32 = arith.constant 5 : i32
    %144 = vector.broadcast %c5_i32 : i32 to vector<16x1xi32>
    %145 = arith.cmpi sgt, %36, %144 : vector<16x1xi32>
    %146 = vector.shape_cast %145 : vector<16x1xi1> to vector<16x1xi1>
    %147 = vector.broadcast %146 : vector<16x1xi1> to vector<16x32xi1>
    %148 = arith.select %147, %140, %111 : vector<16x32xi1>, vector<16x32xf32>
    %149 = vector.shape_cast %145 : vector<16x1xi1> to vector<16x1xi1>
    %150 = vector.broadcast %149 : vector<16x1xi1> to vector<16x32xi1>
    %151 = arith.select %150, %143, %114 : vector<16x32xi1>, vector<16x32xf32>
    %152 = vector.extract_strided_slice %151 {offsets = [0, 0], sizes = [8, 32], strides = [1, 1]} : vector<16x32xf32> to vector<8x32xf32>
    %c16_49 = arith.constant 16 : index
    %c0_50 = arith.constant 0 : index
    %153 = vector.load %arg14[%c16_49, %c0_50] : memref<64x64xf32, #tpu.memory_space<vmem>>, vector<8x32xf32>
    tpu.vector_store %arg14[%c16_49, %c0_50], %152 {strides = array<i32>} : memref<64x64xf32, #tpu.memory_space<vmem>>, vector<8x32xf32>,
    %154 = vector.extract_strided_slice %151 {offsets = [8, 0], sizes = [8, 32], strides = [1, 1]} : vector<16x32xf32> to vector<8x32xf32>
    %c40_51 = arith.constant 40 : index
    %c32_52 = arith.constant 32 : index
    %155 = vector.load %arg14[%c40_51, %c32_52] : memref<64x64xf32, #tpu.memory_space<vmem>>, vector<8x32xf32>
    tpu.vector_store %arg14[%c40_51, %c32_52], %154 {strides = array<i32>} : memref<64x64xf32, #tpu.memory_space<vmem>>, vector<8x32xf32>,
    %c24 = arith.constant 24 : index
    %c0_53 = arith.constant 0 : index
    %156 = vector.load %arg13[%c24, %c0_53] : memref<64x256xf32, #tpu.memory_space<vmem>>, vector<8x128xf32>
    %c32_54 = arith.constant 32 : index
    %c128_55 = arith.constant 128 : index
    %157 = vector.load %arg13[%c32_54, %c128_55] : memref<64x256xf32, #tpu.memory_space<vmem>>, vector<8x128xf32>
    %158 = tpu.concatenate %156, %157 in 0 : vector<8x128xf32>, vector<8x128xf32> -> vector<16x128xf32>
    %c0_56 = arith.constant 0 : index
    %c0_57 = arith.constant 0 : index
    %159 = vector.load %arg8[%c0_56, %c0_57] : memref<32x256xf32, #tpu.memory_space<vmem>>, vector<32x256xf32>
    %cst_58 = arith.constant dense<0.000000e+00> : vector<16x256xf32>
    %160 = tpu.matmul %151, %159, %cst_58 {dimension_numbers = #tpu.dot_dimension_numbers<[1], [0], [0], [1], [0, 0, 1, 1], [], []>} : vector<16x32xf32>, vector<32x256xf32>, vector<16x256xf32> -> vector<16x256xf32>
    %161 = vector.extract_strided_slice %160 {offsets = [0, 0], sizes = [16, 128], strides = [1, 1]} : vector<16x256xf32> to vector<16x128xf32>
    %162 = vector.extract_strided_slice %160 {offsets = [0, 128], sizes = [16, 128], strides = [1, 1]} : vector<16x256xf32> to vector<16x128xf32>
    %163 = arith.select %27, %161, %162 : vector<16x128xi1>, vector<16x128xf32>
    %164 = arith.addf %158, %163 : vector<16x128xf32>
    %165 = arith.negf %164 : vector<16x128xf32>
    %166 = math.exp %165 : vector<16x128xf32>
    %cst_59 = arith.constant 1.000000e+00 : f32
    %167 = vector.broadcast %cst_59 : f32 to vector<16x128xf32>
    %168 = arith.addf %167, %166 : vector<16x128xf32>
    %169 = arith.divf %167, %168 : vector<16x128xf32>
    %170 = math.tanh %164 : vector<16x128xf32>
    %171 = arith.select %33, %170, %169 : vector<16x128xi1>, vector<16x128xf32>
    %172 = vector.extract_strided_slice %171 {offsets = [0, 32], sizes = [16, 32], strides = [1, 1]} : vector<16x128xf32> to vector<16x32xf32>
    %173 = arith.mulf %172, %148 : vector<16x32xf32>
    %174 = vector.extract_strided_slice %171 {offsets = [0, 0], sizes = [16, 32], strides = [1, 1]} : vector<16x128xf32> to vector<16x32xf32>
    %175 = vector.extract_strided_slice %171 {offsets = [0, 64], sizes = [16, 32], strides = [1, 1]} : vector<16x128xf32> to vector<16x32xf32>
    %176 = arith.mulf %174, %175 : vector<16x32xf32>
    %177 = arith.addf %173, %176 : vector<16x32xf32>
    %178 = vector.extract_strided_slice %171 {offsets = [0, 96], sizes = [16, 32], strides = [1, 1]} : vector<16x128xf32> to vector<16x32xf32>
    %179 = math.tanh %177 : vector<16x32xf32>
    %180 = arith.mulf %178, %179 : vector<16x32xf32>
    %c4_i32 = arith.constant 4 : i32
    %181 = vector.broadcast %c4_i32 : i32 to vector<16x1xi32>
    %182 = arith.cmpi sgt, %36, %181 : vector<16x1xi32>
    %183 = vector.shape_cast %182 : vector<16x1xi1> to vector<16x1xi1>
    %184 = vector.broadcast %183 : vector<16x1xi1> to vector<16x32xi1>
    %185 = arith.select %184, %177, %148 : vector<16x32xi1>, vector<16x32xf32>
    %186 = vector.shape_cast %182 : vector<16x1xi1> to vector<16x1xi1>
    %187 = vector.broadcast %186 : vector<16x1xi1> to vector<16x32xi1>
    %188 = arith.select %187, %180, %151 : vector<16x32xi1>, vector<16x32xf32>
    %189 = vector.extract_strided_slice %188 {offsets = [0, 0], sizes = [8, 32], strides = [1, 1]} : vector<16x32xf32> to vector<8x32xf32>
    %c24_60 = arith.constant 24 : index
    %c0_61 = arith.constant 0 : index
    %190 = vector.load %arg14[%c24_60, %c0_61] : memref<64x64xf32, #tpu.memory_space<vmem>>, vector<8x32xf32>
    tpu.vector_store %arg14[%c24_60, %c0_61], %189 {strides = array<i32>} : memref<64x64xf32, #tpu.memory_space<vmem>>, vector<8x32xf32>,
    %191 = vector.extract_strided_slice %188 {offsets = [8, 0], sizes = [8, 32], strides = [1, 1]} : vector<16x32xf32> to vector<8x32xf32>
    %c32_62 = arith.constant 32 : index
    %c32_63 = arith.constant 32 : index
    %192 = vector.load %arg14[%c32_62, %c32_63] : memref<64x64xf32, #tpu.memory_space<vmem>>, vector<8x32xf32>
    tpu.vector_store %arg14[%c32_62, %c32_63], %191 {strides = array<i32>} : memref<64x64xf32, #tpu.memory_space<vmem>>, vector<8x32xf32>,
    %c32_64 = arith.constant 32 : index
    %c0_65 = arith.constant 0 : index
    %193 = vector.load %arg13[%c32_64, %c0_65] : memref<64x256xf32, #tpu.memory_space<vmem>>, vector<8x128xf32>
    %c24_66 = arith.constant 24 : index
    %c128_67 = arith.constant 128 : index
    %194 = vector.load %arg13[%c24_66, %c128_67] : memref<64x256xf32, #tpu.memory_space<vmem>>, vector<8x128xf32>
    %195 = tpu.concatenate %193, %194 in 0 : vector<8x128xf32>, vector<8x128xf32> -> vector<16x128xf32>
    %c0_68 = arith.constant 0 : index
    %c0_69 = arith.constant 0 : index
    %196 = vector.load %arg8[%c0_68, %c0_69] : memref<32x256xf32, #tpu.memory_space<vmem>>, vector<32x256xf32>
    %cst_70 = arith.constant dense<0.000000e+00> : vector<16x256xf32>
    %197 = tpu.matmul %188, %196, %cst_70 {dimension_numbers = #tpu.dot_dimension_numbers<[1], [0], [0], [1], [0, 0, 1, 1], [], []>} : vector<16x32xf32>, vector<32x256xf32>, vector<16x256xf32> -> vector<16x256xf32>
    %198 = vector.extract_strided_slice %197 {offsets = [0, 0], sizes = [16, 128], strides = [1, 1]} : vector<16x256xf32> to vector<16x128xf32>
    %199 = vector.extract_strided_slice %197 {offsets = [0, 128], sizes = [16, 128], strides = [1, 1]} : vector<16x256xf32> to vector<16x128xf32>
    %200 = arith.select %27, %198, %199 : vector<16x128xi1>, vector<16x128xf32>
    %201 = arith.addf %195, %200 : vector<16x128xf32>
    %202 = arith.negf %201 : vector<16x128xf32>
    %203 = math.exp %202 : vector<16x128xf32>
    %cst_71 = arith.constant 1.000000e+00 : f32
    %204 = vector.broadcast %cst_71 : f32 to vector<16x128xf32>
    %205 = arith.addf %204, %203 : vector<16x128xf32>
    %206 = arith.divf %204, %205 : vector<16x128xf32>
    %207 = math.tanh %201 : vector<16x128xf32>
    %208 = arith.select %33, %207, %206 : vector<16x128xi1>, vector<16x128xf32>
    %209 = vector.extract_strided_slice %208 {offsets = [0, 32], sizes = [16, 32], strides = [1, 1]} : vector<16x128xf32> to vector<16x32xf32>
    %210 = arith.mulf %209, %185 : vector<16x32xf32>
    %211 = vector.extract_strided_slice %208 {offsets = [0, 0], sizes = [16, 32], strides = [1, 1]} : vector<16x128xf32> to vector<16x32xf32>
    %212 = vector.extract_strided_slice %208 {offsets = [0, 64], sizes = [16, 32], strides = [1, 1]} : vector<16x128xf32> to vector<16x32xf32>
    %213 = arith.mulf %211, %212 : vector<16x32xf32>
    %214 = arith.addf %210, %213 : vector<16x32xf32>
    %215 = vector.extract_strided_slice %208 {offsets = [0, 96], sizes = [16, 32], strides = [1, 1]} : vector<16x128xf32> to vector<16x32xf32>
    %216 = math.tanh %214 : vector<16x32xf32>
    %217 = arith.mulf %215, %216 : vector<16x32xf32>
    %c3_i32 = arith.constant 3 : i32
    %218 = vector.broadcast %c3_i32 : i32 to vector<16x1xi32>
    %219 = arith.cmpi sgt, %36, %218 : vector<16x1xi32>
    %220 = vector.shape_cast %219 : vector<16x1xi1> to vector<16x1xi1>
    %221 = vector.broadcast %220 : vector<16x1xi1> to vector<16x32xi1>
    %222 = arith.select %221, %214, %185 : vector<16x32xi1>, vector<16x32xf32>
    %223 = vector.shape_cast %219 : vector<16x1xi1> to vector<16x1xi1>
    %224 = vector.broadcast %223 : vector<16x1xi1> to vector<16x32xi1>
    %225 = arith.select %224, %217, %188 : vector<16x32xi1>, vector<16x32xf32>
    %226 = vector.extract_strided_slice %225 {offsets = [0, 0], sizes = [8, 32], strides = [1, 1]} : vector<16x32xf32> to vector<8x32xf32>
    %c32_72 = arith.constant 32 : index
    %c0_73 = arith.constant 0 : index
    %227 = vector.load %arg14[%c32_72, %c0_73] : memref<64x64xf32, #tpu.memory_space<vmem>>, vector<8x32xf32>
    tpu.vector_store %arg14[%c32_72, %c0_73], %226 {strides = array<i32>} : memref<64x64xf32, #tpu.memory_space<vmem>>, vector<8x32xf32>,
    %228 = vector.extract_strided_slice %225 {offsets = [8, 0], sizes = [8, 32], strides = [1, 1]} : vector<16x32xf32> to vector<8x32xf32>
    %c24_74 = arith.constant 24 : index
    %c32_75 = arith.constant 32 : index
    %229 = vector.load %arg14[%c24_74, %c32_75] : memref<64x64xf32, #tpu.memory_space<vmem>>, vector<8x32xf32>
    tpu.vector_store %arg14[%c24_74, %c32_75], %228 {strides = array<i32>} : memref<64x64xf32, #tpu.memory_space<vmem>>, vector<8x32xf32>,
    %c40_76 = arith.constant 40 : index
    %c0_77 = arith.constant 0 : index
    %230 = vector.load %arg13[%c40_76, %c0_77] : memref<64x256xf32, #tpu.memory_space<vmem>>, vector<8x128xf32>
    %c16_78 = arith.constant 16 : index
    %c128_79 = arith.constant 128 : index
    %231 = vector.load %arg13[%c16_78, %c128_79] : memref<64x256xf32, #tpu.memory_space<vmem>>, vector<8x128xf32>
    %232 = tpu.concatenate %230, %231 in 0 : vector<8x128xf32>, vector<8x128xf32> -> vector<16x128xf32>
    %c0_80 = arith.constant 0 : index
    %c0_81 = arith.constant 0 : index
    %233 = vector.load %arg8[%c0_80, %c0_81] : memref<32x256xf32, #tpu.memory_space<vmem>>, vector<32x256xf32>
    %cst_82 = arith.constant dense<0.000000e+00> : vector<16x256xf32>
    %234 = tpu.matmul %225, %233, %cst_82 {dimension_numbers = #tpu.dot_dimension_numbers<[1], [0], [0], [1], [0, 0, 1, 1], [], []>} : vector<16x32xf32>, vector<32x256xf32>, vector<16x256xf32> -> vector<16x256xf32>
    %235 = vector.extract_strided_slice %234 {offsets = [0, 0], sizes = [16, 128], strides = [1, 1]} : vector<16x256xf32> to vector<16x128xf32>
    %236 = vector.extract_strided_slice %234 {offsets = [0, 128], sizes = [16, 128], strides = [1, 1]} : vector<16x256xf32> to vector<16x128xf32>
    %237 = arith.select %27, %235, %236 : vector<16x128xi1>, vector<16x128xf32>
    %238 = arith.addf %232, %237 : vector<16x128xf32>
    %239 = arith.negf %238 : vector<16x128xf32>
    %240 = math.exp %239 : vector<16x128xf32>
    %cst_83 = arith.constant 1.000000e+00 : f32
    %241 = vector.broadcast %cst_83 : f32 to vector<16x128xf32>
    %242 = arith.addf %241, %240 : vector<16x128xf32>
    %243 = arith.divf %241, %242 : vector<16x128xf32>
    %244 = math.tanh %238 : vector<16x128xf32>
    %245 = arith.select %33, %244, %243 : vector<16x128xi1>, vector<16x128xf32>
    %246 = vector.extract_strided_slice %245 {offsets = [0, 32], sizes = [16, 32], strides = [1, 1]} : vector<16x128xf32> to vector<16x32xf32>
    %247 = arith.mulf %246, %222 : vector<16x32xf32>
    %248 = vector.extract_strided_slice %245 {offsets = [0, 0], sizes = [16, 32], strides = [1, 1]} : vector<16x128xf32> to vector<16x32xf32>
    %249 = vector.extract_strided_slice %245 {offsets = [0, 64], sizes = [16, 32], strides = [1, 1]} : vector<16x128xf32> to vector<16x32xf32>
    %250 = arith.mulf %248, %249 : vector<16x32xf32>
    %251 = arith.addf %247, %250 : vector<16x32xf32>
    %252 = vector.extract_strided_slice %245 {offsets = [0, 96], sizes = [16, 32], strides = [1, 1]} : vector<16x128xf32> to vector<16x32xf32>
    %253 = math.tanh %251 : vector<16x32xf32>
    %254 = arith.mulf %252, %253 : vector<16x32xf32>
    %c2_i32 = arith.constant 2 : i32
    %255 = vector.broadcast %c2_i32 : i32 to vector<16x1xi32>
    %256 = arith.cmpi sgt, %36, %255 : vector<16x1xi32>
    %257 = vector.shape_cast %256 : vector<16x1xi1> to vector<16x1xi1>
    %258 = vector.broadcast %257 : vector<16x1xi1> to vector<16x32xi1>
    %259 = arith.select %258, %251, %222 : vector<16x32xi1>, vector<16x32xf32>
    %260 = vector.shape_cast %256 : vector<16x1xi1> to vector<16x1xi1>
    %261 = vector.broadcast %260 : vector<16x1xi1> to vector<16x32xi1>
    %262 = arith.select %261, %254, %225 : vector<16x32xi1>, vector<16x32xf32>
    %263 = vector.extract_strided_slice %262 {offsets = [0, 0], sizes = [8, 32], strides = [1, 1]} : vector<16x32xf32> to vector<8x32xf32>
    %c40_84 = arith.constant 40 : index
    %c0_85 = arith.constant 0 : index
    %264 = vector.load %arg14[%c40_84, %c0_85] : memref<64x64xf32, #tpu.memory_space<vmem>>, vector<8x32xf32>
    tpu.vector_store %arg14[%c40_84, %c0_85], %263 {strides = array<i32>} : memref<64x64xf32, #tpu.memory_space<vmem>>, vector<8x32xf32>,
    %265 = vector.extract_strided_slice %262 {offsets = [8, 0], sizes = [8, 32], strides = [1, 1]} : vector<16x32xf32> to vector<8x32xf32>
    %c16_86 = arith.constant 16 : index
    %c32_87 = arith.constant 32 : index
    %266 = vector.load %arg14[%c16_86, %c32_87] : memref<64x64xf32, #tpu.memory_space<vmem>>, vector<8x32xf32>
    tpu.vector_store %arg14[%c16_86, %c32_87], %265 {strides = array<i32>} : memref<64x64xf32, #tpu.memory_space<vmem>>, vector<8x32xf32>,
    %c48_88 = arith.constant 48 : index
    %c0_89 = arith.constant 0 : index
    %267 = vector.load %arg13[%c48_88, %c0_89] : memref<64x256xf32, #tpu.memory_space<vmem>>, vector<8x128xf32>
    %c8_90 = arith.constant 8 : index
    %c128_91 = arith.constant 128 : index
    %268 = vector.load %arg13[%c8_90, %c128_91] : memref<64x256xf32, #tpu.memory_space<vmem>>, vector<8x128xf32>
    %269 = tpu.concatenate %267, %268 in 0 : vector<8x128xf32>, vector<8x128xf32> -> vector<16x128xf32>
    %c0_92 = arith.constant 0 : index
    %c0_93 = arith.constant 0 : index
    %270 = vector.load %arg8[%c0_92, %c0_93] : memref<32x256xf32, #tpu.memory_space<vmem>>, vector<32x256xf32>
    %cst_94 = arith.constant dense<0.000000e+00> : vector<16x256xf32>
    %271 = tpu.matmul %262, %270, %cst_94 {dimension_numbers = #tpu.dot_dimension_numbers<[1], [0], [0], [1], [0, 0, 1, 1], [], []>} : vector<16x32xf32>, vector<32x256xf32>, vector<16x256xf32> -> vector<16x256xf32>
    %272 = vector.extract_strided_slice %271 {offsets = [0, 0], sizes = [16, 128], strides = [1, 1]} : vector<16x256xf32> to vector<16x128xf32>
    %273 = vector.extract_strided_slice %271 {offsets = [0, 128], sizes = [16, 128], strides = [1, 1]} : vector<16x256xf32> to vector<16x128xf32>
    %274 = arith.select %27, %272, %273 : vector<16x128xi1>, vector<16x128xf32>
    %275 = arith.addf %269, %274 : vector<16x128xf32>
    %276 = arith.negf %275 : vector<16x128xf32>
    %277 = math.exp %276 : vector<16x128xf32>
    %cst_95 = arith.constant 1.000000e+00 : f32
    %278 = vector.broadcast %cst_95 : f32 to vector<16x128xf32>
    %279 = arith.addf %278, %277 : vector<16x128xf32>
    %280 = arith.divf %278, %279 : vector<16x128xf32>
    %281 = math.tanh %275 : vector<16x128xf32>
    %282 = arith.select %33, %281, %280 : vector<16x128xi1>, vector<16x128xf32>
    %283 = vector.extract_strided_slice %282 {offsets = [0, 32], sizes = [16, 32], strides = [1, 1]} : vector<16x128xf32> to vector<16x32xf32>
    %284 = arith.mulf %283, %259 : vector<16x32xf32>
    %285 = vector.extract_strided_slice %282 {offsets = [0, 0], sizes = [16, 32], strides = [1, 1]} : vector<16x128xf32> to vector<16x32xf32>
    %286 = vector.extract_strided_slice %282 {offsets = [0, 64], sizes = [16, 32], strides = [1, 1]} : vector<16x128xf32> to vector<16x32xf32>
    %287 = arith.mulf %285, %286 : vector<16x32xf32>
    %288 = arith.addf %284, %287 : vector<16x32xf32>
    %289 = vector.extract_strided_slice %282 {offsets = [0, 96], sizes = [16, 32], strides = [1, 1]} : vector<16x128xf32> to vector<16x32xf32>
    %290 = math.tanh %288 : vector<16x32xf32>
    %291 = arith.mulf %289, %290 : vector<16x32xf32>
    %c1_i32 = arith.constant 1 : i32
    %292 = vector.broadcast %c1_i32 : i32 to vector<16x1xi32>
    %293 = arith.cmpi sgt, %36, %292 : vector<16x1xi32>
    %294 = vector.shape_cast %293 : vector<16x1xi1> to vector<16x1xi1>
    %295 = vector.broadcast %294 : vector<16x1xi1> to vector<16x32xi1>
    %296 = arith.select %295, %288, %259 : vector<16x32xi1>, vector<16x32xf32>
    %297 = vector.shape_cast %293 : vector<16x1xi1> to vector<16x1xi1>
    %298 = vector.broadcast %297 : vector<16x1xi1> to vector<16x32xi1>
    %299 = arith.select %298, %291, %262 : vector<16x32xi1>, vector<16x32xf32>
    %300 = vector.extract_strided_slice %299 {offsets = [0, 0], sizes = [8, 32], strides = [1, 1]} : vector<16x32xf32> to vector<8x32xf32>
    %c48_96 = arith.constant 48 : index
    %c0_97 = arith.constant 0 : index
    %301 = vector.load %arg14[%c48_96, %c0_97] : memref<64x64xf32, #tpu.memory_space<vmem>>, vector<8x32xf32>
    tpu.vector_store %arg14[%c48_96, %c0_97], %300 {strides = array<i32>} : memref<64x64xf32, #tpu.memory_space<vmem>>, vector<8x32xf32>,
    %302 = vector.extract_strided_slice %299 {offsets = [8, 0], sizes = [8, 32], strides = [1, 1]} : vector<16x32xf32> to vector<8x32xf32>
    %c8_98 = arith.constant 8 : index
    %c32_99 = arith.constant 32 : index
    %303 = vector.load %arg14[%c8_98, %c32_99] : memref<64x64xf32, #tpu.memory_space<vmem>>, vector<8x32xf32>
    tpu.vector_store %arg14[%c8_98, %c32_99], %302 {strides = array<i32>} : memref<64x64xf32, #tpu.memory_space<vmem>>, vector<8x32xf32>,
    %c56_100 = arith.constant 56 : index
    %c0_101 = arith.constant 0 : index
    %304 = vector.load %arg13[%c56_100, %c0_101] : memref<64x256xf32, #tpu.memory_space<vmem>>, vector<8x128xf32>
    %c0_102 = arith.constant 0 : index
    %c128_103 = arith.constant 128 : index
    %305 = vector.load %arg13[%c0_102, %c128_103] : memref<64x256xf32, #tpu.memory_space<vmem>>, vector<8x128xf32>
    %306 = tpu.concatenate %304, %305 in 0 : vector<8x128xf32>, vector<8x128xf32> -> vector<16x128xf32>
    %c0_104 = arith.constant 0 : index
    %c0_105 = arith.constant 0 : index
    %307 = vector.load %arg8[%c0_104, %c0_105] : memref<32x256xf32, #tpu.memory_space<vmem>>, vector<32x256xf32>
    %cst_106 = arith.constant dense<0.000000e+00> : vector<16x256xf32>
    %308 = tpu.matmul %299, %307, %cst_106 {dimension_numbers = #tpu.dot_dimension_numbers<[1], [0], [0], [1], [0, 0, 1, 1], [], []>} : vector<16x32xf32>, vector<32x256xf32>, vector<16x256xf32> -> vector<16x256xf32>
    %309 = vector.extract_strided_slice %308 {offsets = [0, 0], sizes = [16, 128], strides = [1, 1]} : vector<16x256xf32> to vector<16x128xf32>
    %310 = vector.extract_strided_slice %308 {offsets = [0, 128], sizes = [16, 128], strides = [1, 1]} : vector<16x256xf32> to vector<16x128xf32>
    %311 = arith.select %27, %309, %310 : vector<16x128xi1>, vector<16x128xf32>
    %312 = arith.addf %306, %311 : vector<16x128xf32>
    %313 = arith.negf %312 : vector<16x128xf32>
    %314 = math.exp %313 : vector<16x128xf32>
    %cst_107 = arith.constant 1.000000e+00 : f32
    %315 = vector.broadcast %cst_107 : f32 to vector<16x128xf32>
    %316 = arith.addf %315, %314 : vector<16x128xf32>
    %317 = arith.divf %315, %316 : vector<16x128xf32>
    %318 = math.tanh %312 : vector<16x128xf32>
    %319 = arith.select %33, %318, %317 : vector<16x128xi1>, vector<16x128xf32>
    %320 = vector.extract_strided_slice %319 {offsets = [0, 32], sizes = [16, 32], strides = [1, 1]} : vector<16x128xf32> to vector<16x32xf32>
    %321 = arith.mulf %320, %296 : vector<16x32xf32>
    %322 = vector.extract_strided_slice %319 {offsets = [0, 0], sizes = [16, 32], strides = [1, 1]} : vector<16x128xf32> to vector<16x32xf32>
    %323 = vector.extract_strided_slice %319 {offsets = [0, 64], sizes = [16, 32], strides = [1, 1]} : vector<16x128xf32> to vector<16x32xf32>
    %324 = arith.mulf %322, %323 : vector<16x32xf32>
    %325 = arith.addf %321, %324 : vector<16x32xf32>
    %326 = vector.extract_strided_slice %319 {offsets = [0, 96], sizes = [16, 32], strides = [1, 1]} : vector<16x128xf32> to vector<16x32xf32>
    %327 = math.tanh %325 : vector<16x32xf32>
    %328 = arith.mulf %326, %327 : vector<16x32xf32>
    %c0_i32 = arith.constant 0 : i32
    %329 = vector.broadcast %c0_i32 : i32 to vector<16x1xi32>
    %330 = arith.cmpi sgt, %36, %329 : vector<16x1xi32>
    %331 = vector.shape_cast %330 : vector<16x1xi1> to vector<16x1xi1>
    %332 = vector.broadcast %331 : vector<16x1xi1> to vector<16x32xi1>
    %333 = arith.select %332, %328, %299 : vector<16x32xi1>, vector<16x32xf32>
    %334 = vector.extract_strided_slice %333 {offsets = [0, 0], sizes = [8, 32], strides = [1, 1]} : vector<16x32xf32> to vector<8x32xf32>
    %c56_108 = arith.constant 56 : index
    %c0_109 = arith.constant 0 : index
    %335 = vector.load %arg14[%c56_108, %c0_109] : memref<64x64xf32, #tpu.memory_space<vmem>>, vector<8x32xf32>
    tpu.vector_store %arg14[%c56_108, %c0_109], %334 {strides = array<i32>} : memref<64x64xf32, #tpu.memory_space<vmem>>, vector<8x32xf32>,
    %336 = vector.extract_strided_slice %333 {offsets = [8, 0], sizes = [8, 32], strides = [1, 1]} : vector<16x32xf32> to vector<8x32xf32>
    %c0_110 = arith.constant 0 : index
    %c32_111 = arith.constant 32 : index
    %337 = vector.load %arg14[%c0_110, %c32_111] : memref<64x64xf32, #tpu.memory_space<vmem>>, vector<8x32xf32>
    tpu.vector_store %arg14[%c0_110, %c32_111], %336 {strides = array<i32>} : memref<64x64xf32, #tpu.memory_space<vmem>>, vector<8x32xf32>,
    %c0_112 = arith.constant 0 : index
    %c0_113 = arith.constant 0 : index
    %338 = vector.load %arg14[%c0_112, %c0_113] : memref<64x64xf32, #tpu.memory_space<vmem>>, vector<64x64xf32>
    %c0_114 = arith.constant 0 : index
    %c0_115 = arith.constant 0 : index
    %339 = vector.load %arg9[%c0_114, %c0_115] : memref<64x256xf32, #tpu.memory_space<vmem>>, vector<64x256xf32>
    %cst_116 = arith.constant dense<0.000000e+00> : vector<64x256xf32>
    %340 = tpu.matmul %338, %339, %cst_116 {dimension_numbers = #tpu.dot_dimension_numbers<[1], [0], [0], [1], [0, 0, 1, 1], [], []>} : vector<64x64xf32>, vector<64x256xf32>, vector<64x256xf32> -> vector<64x256xf32>
    %c0_117 = arith.constant 0 : index
    %c0_118 = arith.constant 0 : index
    %341 = vector.load %arg10[%c0_117, %c0_118] : memref<1x256xf32, #tpu.memory_space<vmem>>, vector<1x256xf32>
    %342 = vector.broadcast %341 : vector<1x256xf32> to vector<64x256xf32>
    %343 = arith.addf %340, %342 : vector<64x256xf32>
    %c0_119 = arith.constant 0 : index
    %c0_120 = arith.constant 0 : index
    %344 = vector.load %arg13[%c0_119, %c0_120] : memref<64x256xf32, #tpu.memory_space<vmem>>, vector<64x256xf32>
    tpu.vector_store %arg13[%c0_119, %c0_120], %343 {strides = array<i32>} : memref<64x256xf32, #tpu.memory_space<vmem>>, vector<64x256xf32>,
    %cst_121 = arith.constant 0.000000e+00 : f32
    %345 = vector.broadcast %cst_121 : f32 to vector<16x32xf32>
    %cst_122 = arith.constant 0.000000e+00 : f32
    %346 = vector.broadcast %cst_122 : f32 to vector<16x32xf32>
    %c0_123 = arith.constant 0 : index
    %c0_124 = arith.constant 0 : index
    %347 = vector.load %arg13[%c0_123, %c0_124] : memref<64x256xf32, #tpu.memory_space<vmem>>, vector<8x128xf32>
    %c56_125 = arith.constant 56 : index
    %c128_126 = arith.constant 128 : index
    %348 = vector.load %arg13[%c56_125, %c128_126] : memref<64x256xf32, #tpu.memory_space<vmem>>, vector<8x128xf32>
    %349 = tpu.concatenate %347, %348 in 0 : vector<8x128xf32>, vector<8x128xf32> -> vector<16x128xf32>
    %c0_127 = arith.constant 0 : index
    %c0_128 = arith.constant 0 : index
    %350 = vector.load %arg11[%c0_127, %c0_128] : memref<32x256xf32, #tpu.memory_space<vmem>>, vector<32x256xf32>
    %cst_129 = arith.constant dense<0.000000e+00> : vector<16x256xf32>
    %351 = tpu.matmul %345, %350, %cst_129 {dimension_numbers = #tpu.dot_dimension_numbers<[1], [0], [0], [1], [0, 0, 1, 1], [], []>} : vector<16x32xf32>, vector<32x256xf32>, vector<16x256xf32> -> vector<16x256xf32>
    %352 = vector.extract_strided_slice %351 {offsets = [0, 0], sizes = [16, 128], strides = [1, 1]} : vector<16x256xf32> to vector<16x128xf32>
    %353 = vector.extract_strided_slice %351 {offsets = [0, 128], sizes = [16, 128], strides = [1, 1]} : vector<16x256xf32> to vector<16x128xf32>
    %354 = arith.select %27, %352, %353 : vector<16x128xi1>, vector<16x128xf32>
    %355 = arith.addf %349, %354 : vector<16x128xf32>
    %356 = arith.negf %355 : vector<16x128xf32>
    %357 = math.exp %356 : vector<16x128xf32>
    %cst_130 = arith.constant 1.000000e+00 : f32
    %358 = vector.broadcast %cst_130 : f32 to vector<16x128xf32>
    %359 = arith.addf %358, %357 : vector<16x128xf32>
    %360 = arith.divf %358, %359 : vector<16x128xf32>
    %361 = math.tanh %355 : vector<16x128xf32>
    %362 = arith.select %33, %361, %360 : vector<16x128xi1>, vector<16x128xf32>
    %363 = vector.extract_strided_slice %362 {offsets = [0, 32], sizes = [16, 32], strides = [1, 1]} : vector<16x128xf32> to vector<16x32xf32>
    %364 = arith.mulf %363, %346 : vector<16x32xf32>
    %365 = vector.extract_strided_slice %362 {offsets = [0, 0], sizes = [16, 32], strides = [1, 1]} : vector<16x128xf32> to vector<16x32xf32>
    %366 = vector.extract_strided_slice %362 {offsets = [0, 64], sizes = [16, 32], strides = [1, 1]} : vector<16x128xf32> to vector<16x32xf32>
    %367 = arith.mulf %365, %366 : vector<16x32xf32>
    %368 = arith.addf %364, %367 : vector<16x32xf32>
    %369 = vector.extract_strided_slice %362 {offsets = [0, 96], sizes = [16, 32], strides = [1, 1]} : vector<16x128xf32> to vector<16x32xf32>
    %370 = math.tanh %368 : vector<16x32xf32>
    %371 = arith.mulf %369, %370 : vector<16x32xf32>
    %c7_i32_131 = arith.constant 7 : i32
    %372 = vector.broadcast %c7_i32_131 : i32 to vector<16x1xi32>
    %373 = arith.cmpi sgt, %36, %372 : vector<16x1xi32>
    %374 = vector.shape_cast %373 : vector<16x1xi1> to vector<16x1xi1>
    %375 = vector.broadcast %374 : vector<16x1xi1> to vector<16x32xi1>
    %376 = arith.select %375, %368, %346 : vector<16x32xi1>, vector<16x32xf32>
    %377 = vector.shape_cast %373 : vector<16x1xi1> to vector<16x1xi1>
    %378 = vector.broadcast %377 : vector<16x1xi1> to vector<16x32xi1>
    %379 = arith.select %378, %371, %345 : vector<16x32xi1>, vector<16x32xf32>
    %380 = vector.extract_strided_slice %379 {offsets = [0, 0], sizes = [8, 32], strides = [1, 1]} : vector<16x32xf32> to vector<8x32xf32>
    %c0_132 = arith.constant 0 : index
    %c0_133 = arith.constant 0 : index
    %381 = vector.load %arg15[%c0_132, %c0_133] : memref<64x64xf32, #tpu.memory_space<vmem>>, vector<8x32xf32>
    tpu.vector_store %arg15[%c0_132, %c0_133], %380 {strides = array<i32>} : memref<64x64xf32, #tpu.memory_space<vmem>>, vector<8x32xf32>,
    %382 = vector.extract_strided_slice %379 {offsets = [8, 0], sizes = [8, 32], strides = [1, 1]} : vector<16x32xf32> to vector<8x32xf32>
    %c56_134 = arith.constant 56 : index
    %c32_135 = arith.constant 32 : index
    %383 = vector.load %arg15[%c56_134, %c32_135] : memref<64x64xf32, #tpu.memory_space<vmem>>, vector<8x32xf32>
    tpu.vector_store %arg15[%c56_134, %c32_135], %382 {strides = array<i32>} : memref<64x64xf32, #tpu.memory_space<vmem>>, vector<8x32xf32>,
    %c8_136 = arith.constant 8 : index
    %c0_137 = arith.constant 0 : index
    %384 = vector.load %arg13[%c8_136, %c0_137] : memref<64x256xf32, #tpu.memory_space<vmem>>, vector<8x128xf32>
    %c48_138 = arith.constant 48 : index
    %c128_139 = arith.constant 128 : index
    %385 = vector.load %arg13[%c48_138, %c128_139] : memref<64x256xf32, #tpu.memory_space<vmem>>, vector<8x128xf32>
    %386 = tpu.concatenate %384, %385 in 0 : vector<8x128xf32>, vector<8x128xf32> -> vector<16x128xf32>
    %c0_140 = arith.constant 0 : index
    %c0_141 = arith.constant 0 : index
    %387 = vector.load %arg11[%c0_140, %c0_141] : memref<32x256xf32, #tpu.memory_space<vmem>>, vector<32x256xf32>
    %cst_142 = arith.constant dense<0.000000e+00> : vector<16x256xf32>
    %388 = tpu.matmul %379, %387, %cst_142 {dimension_numbers = #tpu.dot_dimension_numbers<[1], [0], [0], [1], [0, 0, 1, 1], [], []>} : vector<16x32xf32>, vector<32x256xf32>, vector<16x256xf32> -> vector<16x256xf32>
    %389 = vector.extract_strided_slice %388 {offsets = [0, 0], sizes = [16, 128], strides = [1, 1]} : vector<16x256xf32> to vector<16x128xf32>
    %390 = vector.extract_strided_slice %388 {offsets = [0, 128], sizes = [16, 128], strides = [1, 1]} : vector<16x256xf32> to vector<16x128xf32>
    %391 = arith.select %27, %389, %390 : vector<16x128xi1>, vector<16x128xf32>
    %392 = arith.addf %386, %391 : vector<16x128xf32>
    %393 = arith.negf %392 : vector<16x128xf32>
    %394 = math.exp %393 : vector<16x128xf32>
    %cst_143 = arith.constant 1.000000e+00 : f32
    %395 = vector.broadcast %cst_143 : f32 to vector<16x128xf32>
    %396 = arith.addf %395, %394 : vector<16x128xf32>
    %397 = arith.divf %395, %396 : vector<16x128xf32>
    %398 = math.tanh %392 : vector<16x128xf32>
    %399 = arith.select %33, %398, %397 : vector<16x128xi1>, vector<16x128xf32>
    %400 = vector.extract_strided_slice %399 {offsets = [0, 32], sizes = [16, 32], strides = [1, 1]} : vector<16x128xf32> to vector<16x32xf32>
    %401 = arith.mulf %400, %376 : vector<16x32xf32>
    %402 = vector.extract_strided_slice %399 {offsets = [0, 0], sizes = [16, 32], strides = [1, 1]} : vector<16x128xf32> to vector<16x32xf32>
    %403 = vector.extract_strided_slice %399 {offsets = [0, 64], sizes = [16, 32], strides = [1, 1]} : vector<16x128xf32> to vector<16x32xf32>
    %404 = arith.mulf %402, %403 : vector<16x32xf32>
    %405 = arith.addf %401, %404 : vector<16x32xf32>
    %406 = vector.extract_strided_slice %399 {offsets = [0, 96], sizes = [16, 32], strides = [1, 1]} : vector<16x128xf32> to vector<16x32xf32>
    %407 = math.tanh %405 : vector<16x32xf32>
    %408 = arith.mulf %406, %407 : vector<16x32xf32>
    %c6_i32_144 = arith.constant 6 : i32
    %409 = vector.broadcast %c6_i32_144 : i32 to vector<16x1xi32>
    %410 = arith.cmpi sgt, %36, %409 : vector<16x1xi32>
    %411 = vector.shape_cast %410 : vector<16x1xi1> to vector<16x1xi1>
    %412 = vector.broadcast %411 : vector<16x1xi1> to vector<16x32xi1>
    %413 = arith.select %412, %405, %376 : vector<16x32xi1>, vector<16x32xf32>
    %414 = vector.shape_cast %410 : vector<16x1xi1> to vector<16x1xi1>
    %415 = vector.broadcast %414 : vector<16x1xi1> to vector<16x32xi1>
    %416 = arith.select %415, %408, %379 : vector<16x32xi1>, vector<16x32xf32>
    %417 = vector.extract_strided_slice %416 {offsets = [0, 0], sizes = [8, 32], strides = [1, 1]} : vector<16x32xf32> to vector<8x32xf32>
    %c8_145 = arith.constant 8 : index
    %c0_146 = arith.constant 0 : index
    %418 = vector.load %arg15[%c8_145, %c0_146] : memref<64x64xf32, #tpu.memory_space<vmem>>, vector<8x32xf32>
    tpu.vector_store %arg15[%c8_145, %c0_146], %417 {strides = array<i32>} : memref<64x64xf32, #tpu.memory_space<vmem>>, vector<8x32xf32>,
    %419 = vector.extract_strided_slice %416 {offsets = [8, 0], sizes = [8, 32], strides = [1, 1]} : vector<16x32xf32> to vector<8x32xf32>
    %c48_147 = arith.constant 48 : index
    %c32_148 = arith.constant 32 : index
    %420 = vector.load %arg15[%c48_147, %c32_148] : memref<64x64xf32, #tpu.memory_space<vmem>>, vector<8x32xf32>
    tpu.vector_store %arg15[%c48_147, %c32_148], %419 {strides = array<i32>} : memref<64x64xf32, #tpu.memory_space<vmem>>, vector<8x32xf32>,
    %c16_149 = arith.constant 16 : index
    %c0_150 = arith.constant 0 : index
    %421 = vector.load %arg13[%c16_149, %c0_150] : memref<64x256xf32, #tpu.memory_space<vmem>>, vector<8x128xf32>
    %c40_151 = arith.constant 40 : index
    %c128_152 = arith.constant 128 : index
    %422 = vector.load %arg13[%c40_151, %c128_152] : memref<64x256xf32, #tpu.memory_space<vmem>>, vector<8x128xf32>
    %423 = tpu.concatenate %421, %422 in 0 : vector<8x128xf32>, vector<8x128xf32> -> vector<16x128xf32>
    %c0_153 = arith.constant 0 : index
    %c0_154 = arith.constant 0 : index
    %424 = vector.load %arg11[%c0_153, %c0_154] : memref<32x256xf32, #tpu.memory_space<vmem>>, vector<32x256xf32>
    %cst_155 = arith.constant dense<0.000000e+00> : vector<16x256xf32>
    %425 = tpu.matmul %416, %424, %cst_155 {dimension_numbers = #tpu.dot_dimension_numbers<[1], [0], [0], [1], [0, 0, 1, 1], [], []>} : vector<16x32xf32>, vector<32x256xf32>, vector<16x256xf32> -> vector<16x256xf32>
    %426 = vector.extract_strided_slice %425 {offsets = [0, 0], sizes = [16, 128], strides = [1, 1]} : vector<16x256xf32> to vector<16x128xf32>
    %427 = vector.extract_strided_slice %425 {offsets = [0, 128], sizes = [16, 128], strides = [1, 1]} : vector<16x256xf32> to vector<16x128xf32>
    %428 = arith.select %27, %426, %427 : vector<16x128xi1>, vector<16x128xf32>
    %429 = arith.addf %423, %428 : vector<16x128xf32>
    %430 = arith.negf %429 : vector<16x128xf32>
    %431 = math.exp %430 : vector<16x128xf32>
    %cst_156 = arith.constant 1.000000e+00 : f32
    %432 = vector.broadcast %cst_156 : f32 to vector<16x128xf32>
    %433 = arith.addf %432, %431 : vector<16x128xf32>
    %434 = arith.divf %432, %433 : vector<16x128xf32>
    %435 = math.tanh %429 : vector<16x128xf32>
    %436 = arith.select %33, %435, %434 : vector<16x128xi1>, vector<16x128xf32>
    %437 = vector.extract_strided_slice %436 {offsets = [0, 32], sizes = [16, 32], strides = [1, 1]} : vector<16x128xf32> to vector<16x32xf32>
    %438 = arith.mulf %437, %413 : vector<16x32xf32>
    %439 = vector.extract_strided_slice %436 {offsets = [0, 0], sizes = [16, 32], strides = [1, 1]} : vector<16x128xf32> to vector<16x32xf32>
    %440 = vector.extract_strided_slice %436 {offsets = [0, 64], sizes = [16, 32], strides = [1, 1]} : vector<16x128xf32> to vector<16x32xf32>
    %441 = arith.mulf %439, %440 : vector<16x32xf32>
    %442 = arith.addf %438, %441 : vector<16x32xf32>
    %443 = vector.extract_strided_slice %436 {offsets = [0, 96], sizes = [16, 32], strides = [1, 1]} : vector<16x128xf32> to vector<16x32xf32>
    %444 = math.tanh %442 : vector<16x32xf32>
    %445 = arith.mulf %443, %444 : vector<16x32xf32>
    %c5_i32_157 = arith.constant 5 : i32
    %446 = vector.broadcast %c5_i32_157 : i32 to vector<16x1xi32>
    %447 = arith.cmpi sgt, %36, %446 : vector<16x1xi32>
    %448 = vector.shape_cast %447 : vector<16x1xi1> to vector<16x1xi1>
    %449 = vector.broadcast %448 : vector<16x1xi1> to vector<16x32xi1>
    %450 = arith.select %449, %442, %413 : vector<16x32xi1>, vector<16x32xf32>
    %451 = vector.shape_cast %447 : vector<16x1xi1> to vector<16x1xi1>
    %452 = vector.broadcast %451 : vector<16x1xi1> to vector<16x32xi1>
    %453 = arith.select %452, %445, %416 : vector<16x32xi1>, vector<16x32xf32>
    %454 = vector.extract_strided_slice %453 {offsets = [0, 0], sizes = [8, 32], strides = [1, 1]} : vector<16x32xf32> to vector<8x32xf32>
    %c16_158 = arith.constant 16 : index
    %c0_159 = arith.constant 0 : index
    %455 = vector.load %arg15[%c16_158, %c0_159] : memref<64x64xf32, #tpu.memory_space<vmem>>, vector<8x32xf32>
    tpu.vector_store %arg15[%c16_158, %c0_159], %454 {strides = array<i32>} : memref<64x64xf32, #tpu.memory_space<vmem>>, vector<8x32xf32>,
    %456 = vector.extract_strided_slice %453 {offsets = [8, 0], sizes = [8, 32], strides = [1, 1]} : vector<16x32xf32> to vector<8x32xf32>
    %c40_160 = arith.constant 40 : index
    %c32_161 = arith.constant 32 : index
    %457 = vector.load %arg15[%c40_160, %c32_161] : memref<64x64xf32, #tpu.memory_space<vmem>>, vector<8x32xf32>
    tpu.vector_store %arg15[%c40_160, %c32_161], %456 {strides = array<i32>} : memref<64x64xf32, #tpu.memory_space<vmem>>, vector<8x32xf32>,
    %c24_162 = arith.constant 24 : index
    %c0_163 = arith.constant 0 : index
    %458 = vector.load %arg13[%c24_162, %c0_163] : memref<64x256xf32, #tpu.memory_space<vmem>>, vector<8x128xf32>
    %c32_164 = arith.constant 32 : index
    %c128_165 = arith.constant 128 : index
    %459 = vector.load %arg13[%c32_164, %c128_165] : memref<64x256xf32, #tpu.memory_space<vmem>>, vector<8x128xf32>
    %460 = tpu.concatenate %458, %459 in 0 : vector<8x128xf32>, vector<8x128xf32> -> vector<16x128xf32>
    %c0_166 = arith.constant 0 : index
    %c0_167 = arith.constant 0 : index
    %461 = vector.load %arg11[%c0_166, %c0_167] : memref<32x256xf32, #tpu.memory_space<vmem>>, vector<32x256xf32>
    %cst_168 = arith.constant dense<0.000000e+00> : vector<16x256xf32>
    %462 = tpu.matmul %453, %461, %cst_168 {dimension_numbers = #tpu.dot_dimension_numbers<[1], [0], [0], [1], [0, 0, 1, 1], [], []>} : vector<16x32xf32>, vector<32x256xf32>, vector<16x256xf32> -> vector<16x256xf32>
    %463 = vector.extract_strided_slice %462 {offsets = [0, 0], sizes = [16, 128], strides = [1, 1]} : vector<16x256xf32> to vector<16x128xf32>
    %464 = vector.extract_strided_slice %462 {offsets = [0, 128], sizes = [16, 128], strides = [1, 1]} : vector<16x256xf32> to vector<16x128xf32>
    %465 = arith.select %27, %463, %464 : vector<16x128xi1>, vector<16x128xf32>
    %466 = arith.addf %460, %465 : vector<16x128xf32>
    %467 = arith.negf %466 : vector<16x128xf32>
    %468 = math.exp %467 : vector<16x128xf32>
    %cst_169 = arith.constant 1.000000e+00 : f32
    %469 = vector.broadcast %cst_169 : f32 to vector<16x128xf32>
    %470 = arith.addf %469, %468 : vector<16x128xf32>
    %471 = arith.divf %469, %470 : vector<16x128xf32>
    %472 = math.tanh %466 : vector<16x128xf32>
    %473 = arith.select %33, %472, %471 : vector<16x128xi1>, vector<16x128xf32>
    %474 = vector.extract_strided_slice %473 {offsets = [0, 32], sizes = [16, 32], strides = [1, 1]} : vector<16x128xf32> to vector<16x32xf32>
    %475 = arith.mulf %474, %450 : vector<16x32xf32>
    %476 = vector.extract_strided_slice %473 {offsets = [0, 0], sizes = [16, 32], strides = [1, 1]} : vector<16x128xf32> to vector<16x32xf32>
    %477 = vector.extract_strided_slice %473 {offsets = [0, 64], sizes = [16, 32], strides = [1, 1]} : vector<16x128xf32> to vector<16x32xf32>
    %478 = arith.mulf %476, %477 : vector<16x32xf32>
    %479 = arith.addf %475, %478 : vector<16x32xf32>
    %480 = vector.extract_strided_slice %473 {offsets = [0, 96], sizes = [16, 32], strides = [1, 1]} : vector<16x128xf32> to vector<16x32xf32>
    %481 = math.tanh %479 : vector<16x32xf32>
    %482 = arith.mulf %480, %481 : vector<16x32xf32>
    %c4_i32_170 = arith.constant 4 : i32
    %483 = vector.broadcast %c4_i32_170 : i32 to vector<16x1xi32>
    %484 = arith.cmpi sgt, %36, %483 : vector<16x1xi32>
    %485 = vector.shape_cast %484 : vector<16x1xi1> to vector<16x1xi1>
    %486 = vector.broadcast %485 : vector<16x1xi1> to vector<16x32xi1>
    %487 = arith.select %486, %479, %450 : vector<16x32xi1>, vector<16x32xf32>
    %488 = vector.shape_cast %484 : vector<16x1xi1> to vector<16x1xi1>
    %489 = vector.broadcast %488 : vector<16x1xi1> to vector<16x32xi1>
    %490 = arith.select %489, %482, %453 : vector<16x32xi1>, vector<16x32xf32>
    %491 = vector.extract_strided_slice %490 {offsets = [0, 0], sizes = [8, 32], strides = [1, 1]} : vector<16x32xf32> to vector<8x32xf32>
    %c24_171 = arith.constant 24 : index
    %c0_172 = arith.constant 0 : index
    %492 = vector.load %arg15[%c24_171, %c0_172] : memref<64x64xf32, #tpu.memory_space<vmem>>, vector<8x32xf32>
    tpu.vector_store %arg15[%c24_171, %c0_172], %491 {strides = array<i32>} : memref<64x64xf32, #tpu.memory_space<vmem>>, vector<8x32xf32>,
    %493 = vector.extract_strided_slice %490 {offsets = [8, 0], sizes = [8, 32], strides = [1, 1]} : vector<16x32xf32> to vector<8x32xf32>
    %c32_173 = arith.constant 32 : index
    %c32_174 = arith.constant 32 : index
    %494 = vector.load %arg15[%c32_173, %c32_174] : memref<64x64xf32, #tpu.memory_space<vmem>>, vector<8x32xf32>
    tpu.vector_store %arg15[%c32_173, %c32_174], %493 {strides = array<i32>} : memref<64x64xf32, #tpu.memory_space<vmem>>, vector<8x32xf32>,
    %c32_175 = arith.constant 32 : index
    %c0_176 = arith.constant 0 : index
    %495 = vector.load %arg13[%c32_175, %c0_176] : memref<64x256xf32, #tpu.memory_space<vmem>>, vector<8x128xf32>
    %c24_177 = arith.constant 24 : index
    %c128_178 = arith.constant 128 : index
    %496 = vector.load %arg13[%c24_177, %c128_178] : memref<64x256xf32, #tpu.memory_space<vmem>>, vector<8x128xf32>
    %497 = tpu.concatenate %495, %496 in 0 : vector<8x128xf32>, vector<8x128xf32> -> vector<16x128xf32>
    %c0_179 = arith.constant 0 : index
    %c0_180 = arith.constant 0 : index
    %498 = vector.load %arg11[%c0_179, %c0_180] : memref<32x256xf32, #tpu.memory_space<vmem>>, vector<32x256xf32>
    %cst_181 = arith.constant dense<0.000000e+00> : vector<16x256xf32>
    %499 = tpu.matmul %490, %498, %cst_181 {dimension_numbers = #tpu.dot_dimension_numbers<[1], [0], [0], [1], [0, 0, 1, 1], [], []>} : vector<16x32xf32>, vector<32x256xf32>, vector<16x256xf32> -> vector<16x256xf32>
    %500 = vector.extract_strided_slice %499 {offsets = [0, 0], sizes = [16, 128], strides = [1, 1]} : vector<16x256xf32> to vector<16x128xf32>
    %501 = vector.extract_strided_slice %499 {offsets = [0, 128], sizes = [16, 128], strides = [1, 1]} : vector<16x256xf32> to vector<16x128xf32>
    %502 = arith.select %27, %500, %501 : vector<16x128xi1>, vector<16x128xf32>
    %503 = arith.addf %497, %502 : vector<16x128xf32>
    %504 = arith.negf %503 : vector<16x128xf32>
    %505 = math.exp %504 : vector<16x128xf32>
    %cst_182 = arith.constant 1.000000e+00 : f32
    %506 = vector.broadcast %cst_182 : f32 to vector<16x128xf32>
    %507 = arith.addf %506, %505 : vector<16x128xf32>
    %508 = arith.divf %506, %507 : vector<16x128xf32>
    %509 = math.tanh %503 : vector<16x128xf32>
    %510 = arith.select %33, %509, %508 : vector<16x128xi1>, vector<16x128xf32>
    %511 = vector.extract_strided_slice %510 {offsets = [0, 32], sizes = [16, 32], strides = [1, 1]} : vector<16x128xf32> to vector<16x32xf32>
    %512 = arith.mulf %511, %487 : vector<16x32xf32>
    %513 = vector.extract_strided_slice %510 {offsets = [0, 0], sizes = [16, 32], strides = [1, 1]} : vector<16x128xf32> to vector<16x32xf32>
    %514 = vector.extract_strided_slice %510 {offsets = [0, 64], sizes = [16, 32], strides = [1, 1]} : vector<16x128xf32> to vector<16x32xf32>
    %515 = arith.mulf %513, %514 : vector<16x32xf32>
    %516 = arith.addf %512, %515 : vector<16x32xf32>
    %517 = vector.extract_strided_slice %510 {offsets = [0, 96], sizes = [16, 32], strides = [1, 1]} : vector<16x128xf32> to vector<16x32xf32>
    %518 = math.tanh %516 : vector<16x32xf32>
    %519 = arith.mulf %517, %518 : vector<16x32xf32>
    %c3_i32_183 = arith.constant 3 : i32
    %520 = vector.broadcast %c3_i32_183 : i32 to vector<16x1xi32>
    %521 = arith.cmpi sgt, %36, %520 : vector<16x1xi32>
    %522 = vector.shape_cast %521 : vector<16x1xi1> to vector<16x1xi1>
    %523 = vector.broadcast %522 : vector<16x1xi1> to vector<16x32xi1>
    %524 = arith.select %523, %516, %487 : vector<16x32xi1>, vector<16x32xf32>
    %525 = vector.shape_cast %521 : vector<16x1xi1> to vector<16x1xi1>
    %526 = vector.broadcast %525 : vector<16x1xi1> to vector<16x32xi1>
    %527 = arith.select %526, %519, %490 : vector<16x32xi1>, vector<16x32xf32>
    %528 = vector.extract_strided_slice %527 {offsets = [0, 0], sizes = [8, 32], strides = [1, 1]} : vector<16x32xf32> to vector<8x32xf32>
    %c32_184 = arith.constant 32 : index
    %c0_185 = arith.constant 0 : index
    %529 = vector.load %arg15[%c32_184, %c0_185] : memref<64x64xf32, #tpu.memory_space<vmem>>, vector<8x32xf32>
    tpu.vector_store %arg15[%c32_184, %c0_185], %528 {strides = array<i32>} : memref<64x64xf32, #tpu.memory_space<vmem>>, vector<8x32xf32>,
    %530 = vector.extract_strided_slice %527 {offsets = [8, 0], sizes = [8, 32], strides = [1, 1]} : vector<16x32xf32> to vector<8x32xf32>
    %c24_186 = arith.constant 24 : index
    %c32_187 = arith.constant 32 : index
    %531 = vector.load %arg15[%c24_186, %c32_187] : memref<64x64xf32, #tpu.memory_space<vmem>>, vector<8x32xf32>
    tpu.vector_store %arg15[%c24_186, %c32_187], %530 {strides = array<i32>} : memref<64x64xf32, #tpu.memory_space<vmem>>, vector<8x32xf32>,
    %c40_188 = arith.constant 40 : index
    %c0_189 = arith.constant 0 : index
    %532 = vector.load %arg13[%c40_188, %c0_189] : memref<64x256xf32, #tpu.memory_space<vmem>>, vector<8x128xf32>
    %c16_190 = arith.constant 16 : index
    %c128_191 = arith.constant 128 : index
    %533 = vector.load %arg13[%c16_190, %c128_191] : memref<64x256xf32, #tpu.memory_space<vmem>>, vector<8x128xf32>
    %534 = tpu.concatenate %532, %533 in 0 : vector<8x128xf32>, vector<8x128xf32> -> vector<16x128xf32>
    %c0_192 = arith.constant 0 : index
    %c0_193 = arith.constant 0 : index
    %535 = vector.load %arg11[%c0_192, %c0_193] : memref<32x256xf32, #tpu.memory_space<vmem>>, vector<32x256xf32>
    %cst_194 = arith.constant dense<0.000000e+00> : vector<16x256xf32>
    %536 = tpu.matmul %527, %535, %cst_194 {dimension_numbers = #tpu.dot_dimension_numbers<[1], [0], [0], [1], [0, 0, 1, 1], [], []>} : vector<16x32xf32>, vector<32x256xf32>, vector<16x256xf32> -> vector<16x256xf32>
    %537 = vector.extract_strided_slice %536 {offsets = [0, 0], sizes = [16, 128], strides = [1, 1]} : vector<16x256xf32> to vector<16x128xf32>
    %538 = vector.extract_strided_slice %536 {offsets = [0, 128], sizes = [16, 128], strides = [1, 1]} : vector<16x256xf32> to vector<16x128xf32>
    %539 = arith.select %27, %537, %538 : vector<16x128xi1>, vector<16x128xf32>
    %540 = arith.addf %534, %539 : vector<16x128xf32>
    %541 = arith.negf %540 : vector<16x128xf32>
    %542 = math.exp %541 : vector<16x128xf32>
    %cst_195 = arith.constant 1.000000e+00 : f32
    %543 = vector.broadcast %cst_195 : f32 to vector<16x128xf32>
    %544 = arith.addf %543, %542 : vector<16x128xf32>
    %545 = arith.divf %543, %544 : vector<16x128xf32>
    %546 = math.tanh %540 : vector<16x128xf32>
    %547 = arith.select %33, %546, %545 : vector<16x128xi1>, vector<16x128xf32>
    %548 = vector.extract_strided_slice %547 {offsets = [0, 32], sizes = [16, 32], strides = [1, 1]} : vector<16x128xf32> to vector<16x32xf32>
    %549 = arith.mulf %548, %524 : vector<16x32xf32>
    %550 = vector.extract_strided_slice %547 {offsets = [0, 0], sizes = [16, 32], strides = [1, 1]} : vector<16x128xf32> to vector<16x32xf32>
    %551 = vector.extract_strided_slice %547 {offsets = [0, 64], sizes = [16, 32], strides = [1, 1]} : vector<16x128xf32> to vector<16x32xf32>
    %552 = arith.mulf %550, %551 : vector<16x32xf32>
    %553 = arith.addf %549, %552 : vector<16x32xf32>
    %554 = vector.extract_strided_slice %547 {offsets = [0, 96], sizes = [16, 32], strides = [1, 1]} : vector<16x128xf32> to vector<16x32xf32>
    %555 = math.tanh %553 : vector<16x32xf32>
    %556 = arith.mulf %554, %555 : vector<16x32xf32>
    %c2_i32_196 = arith.constant 2 : i32
    %557 = vector.broadcast %c2_i32_196 : i32 to vector<16x1xi32>
    %558 = arith.cmpi sgt, %36, %557 : vector<16x1xi32>
    %559 = vector.shape_cast %558 : vector<16x1xi1> to vector<16x1xi1>
    %560 = vector.broadcast %559 : vector<16x1xi1> to vector<16x32xi1>
    %561 = arith.select %560, %553, %524 : vector<16x32xi1>, vector<16x32xf32>
    %562 = vector.shape_cast %558 : vector<16x1xi1> to vector<16x1xi1>
    %563 = vector.broadcast %562 : vector<16x1xi1> to vector<16x32xi1>
    %564 = arith.select %563, %556, %527 : vector<16x32xi1>, vector<16x32xf32>
    %565 = vector.extract_strided_slice %564 {offsets = [0, 0], sizes = [8, 32], strides = [1, 1]} : vector<16x32xf32> to vector<8x32xf32>
    %c40_197 = arith.constant 40 : index
    %c0_198 = arith.constant 0 : index
    %566 = vector.load %arg15[%c40_197, %c0_198] : memref<64x64xf32, #tpu.memory_space<vmem>>, vector<8x32xf32>
    tpu.vector_store %arg15[%c40_197, %c0_198], %565 {strides = array<i32>} : memref<64x64xf32, #tpu.memory_space<vmem>>, vector<8x32xf32>,
    %567 = vector.extract_strided_slice %564 {offsets = [8, 0], sizes = [8, 32], strides = [1, 1]} : vector<16x32xf32> to vector<8x32xf32>
    %c16_199 = arith.constant 16 : index
    %c32_200 = arith.constant 32 : index
    %568 = vector.load %arg15[%c16_199, %c32_200] : memref<64x64xf32, #tpu.memory_space<vmem>>, vector<8x32xf32>
    tpu.vector_store %arg15[%c16_199, %c32_200], %567 {strides = array<i32>} : memref<64x64xf32, #tpu.memory_space<vmem>>, vector<8x32xf32>,
    %c48_201 = arith.constant 48 : index
    %c0_202 = arith.constant 0 : index
    %569 = vector.load %arg13[%c48_201, %c0_202] : memref<64x256xf32, #tpu.memory_space<vmem>>, vector<8x128xf32>
    %c8_203 = arith.constant 8 : index
    %c128_204 = arith.constant 128 : index
    %570 = vector.load %arg13[%c8_203, %c128_204] : memref<64x256xf32, #tpu.memory_space<vmem>>, vector<8x128xf32>
    %571 = tpu.concatenate %569, %570 in 0 : vector<8x128xf32>, vector<8x128xf32> -> vector<16x128xf32>
    %c0_205 = arith.constant 0 : index
    %c0_206 = arith.constant 0 : index
    %572 = vector.load %arg11[%c0_205, %c0_206] : memref<32x256xf32, #tpu.memory_space<vmem>>, vector<32x256xf32>
    %cst_207 = arith.constant dense<0.000000e+00> : vector<16x256xf32>
    %573 = tpu.matmul %564, %572, %cst_207 {dimension_numbers = #tpu.dot_dimension_numbers<[1], [0], [0], [1], [0, 0, 1, 1], [], []>} : vector<16x32xf32>, vector<32x256xf32>, vector<16x256xf32> -> vector<16x256xf32>
    %574 = vector.extract_strided_slice %573 {offsets = [0, 0], sizes = [16, 128], strides = [1, 1]} : vector<16x256xf32> to vector<16x128xf32>
    %575 = vector.extract_strided_slice %573 {offsets = [0, 128], sizes = [16, 128], strides = [1, 1]} : vector<16x256xf32> to vector<16x128xf32>
    %576 = arith.select %27, %574, %575 : vector<16x128xi1>, vector<16x128xf32>
    %577 = arith.addf %571, %576 : vector<16x128xf32>
    %578 = arith.negf %577 : vector<16x128xf32>
    %579 = math.exp %578 : vector<16x128xf32>
    %cst_208 = arith.constant 1.000000e+00 : f32
    %580 = vector.broadcast %cst_208 : f32 to vector<16x128xf32>
    %581 = arith.addf %580, %579 : vector<16x128xf32>
    %582 = arith.divf %580, %581 : vector<16x128xf32>
    %583 = math.tanh %577 : vector<16x128xf32>
    %584 = arith.select %33, %583, %582 : vector<16x128xi1>, vector<16x128xf32>
    %585 = vector.extract_strided_slice %584 {offsets = [0, 32], sizes = [16, 32], strides = [1, 1]} : vector<16x128xf32> to vector<16x32xf32>
    %586 = arith.mulf %585, %561 : vector<16x32xf32>
    %587 = vector.extract_strided_slice %584 {offsets = [0, 0], sizes = [16, 32], strides = [1, 1]} : vector<16x128xf32> to vector<16x32xf32>
    %588 = vector.extract_strided_slice %584 {offsets = [0, 64], sizes = [16, 32], strides = [1, 1]} : vector<16x128xf32> to vector<16x32xf32>
    %589 = arith.mulf %587, %588 : vector<16x32xf32>
    %590 = arith.addf %586, %589 : vector<16x32xf32>
    %591 = vector.extract_strided_slice %584 {offsets = [0, 96], sizes = [16, 32], strides = [1, 1]} : vector<16x128xf32> to vector<16x32xf32>
    %592 = math.tanh %590 : vector<16x32xf32>
    %593 = arith.mulf %591, %592 : vector<16x32xf32>
    %c1_i32_209 = arith.constant 1 : i32
    %594 = vector.broadcast %c1_i32_209 : i32 to vector<16x1xi32>
    %595 = arith.cmpi sgt, %36, %594 : vector<16x1xi32>
    %596 = vector.shape_cast %595 : vector<16x1xi1> to vector<16x1xi1>
    %597 = vector.broadcast %596 : vector<16x1xi1> to vector<16x32xi1>
    %598 = arith.select %597, %590, %561 : vector<16x32xi1>, vector<16x32xf32>
    %599 = vector.shape_cast %595 : vector<16x1xi1> to vector<16x1xi1>
    %600 = vector.broadcast %599 : vector<16x1xi1> to vector<16x32xi1>
    %601 = arith.select %600, %593, %564 : vector<16x32xi1>, vector<16x32xf32>
    %602 = vector.extract_strided_slice %601 {offsets = [0, 0], sizes = [8, 32], strides = [1, 1]} : vector<16x32xf32> to vector<8x32xf32>
    %c48_210 = arith.constant 48 : index
    %c0_211 = arith.constant 0 : index
    %603 = vector.load %arg15[%c48_210, %c0_211] : memref<64x64xf32, #tpu.memory_space<vmem>>, vector<8x32xf32>
    tpu.vector_store %arg15[%c48_210, %c0_211], %602 {strides = array<i32>} : memref<64x64xf32, #tpu.memory_space<vmem>>, vector<8x32xf32>,
    %604 = vector.extract_strided_slice %601 {offsets = [8, 0], sizes = [8, 32], strides = [1, 1]} : vector<16x32xf32> to vector<8x32xf32>
    %c8_212 = arith.constant 8 : index
    %c32_213 = arith.constant 32 : index
    %605 = vector.load %arg15[%c8_212, %c32_213] : memref<64x64xf32, #tpu.memory_space<vmem>>, vector<8x32xf32>
    tpu.vector_store %arg15[%c8_212, %c32_213], %604 {strides = array<i32>} : memref<64x64xf32, #tpu.memory_space<vmem>>, vector<8x32xf32>,
    %c56_214 = arith.constant 56 : index
    %c0_215 = arith.constant 0 : index
    %606 = vector.load %arg13[%c56_214, %c0_215] : memref<64x256xf32, #tpu.memory_space<vmem>>, vector<8x128xf32>
    %c0_216 = arith.constant 0 : index
    %c128_217 = arith.constant 128 : index
    %607 = vector.load %arg13[%c0_216, %c128_217] : memref<64x256xf32, #tpu.memory_space<vmem>>, vector<8x128xf32>
    %608 = tpu.concatenate %606, %607 in 0 : vector<8x128xf32>, vector<8x128xf32> -> vector<16x128xf32>
    %c0_218 = arith.constant 0 : index
    %c0_219 = arith.constant 0 : index
    %609 = vector.load %arg11[%c0_218, %c0_219] : memref<32x256xf32, #tpu.memory_space<vmem>>, vector<32x256xf32>
    %cst_220 = arith.constant dense<0.000000e+00> : vector<16x256xf32>
    %610 = tpu.matmul %601, %609, %cst_220 {dimension_numbers = #tpu.dot_dimension_numbers<[1], [0], [0], [1], [0, 0, 1, 1], [], []>} : vector<16x32xf32>, vector<32x256xf32>, vector<16x256xf32> -> vector<16x256xf32>
    %611 = vector.extract_strided_slice %610 {offsets = [0, 0], sizes = [16, 128], strides = [1, 1]} : vector<16x256xf32> to vector<16x128xf32>
    %612 = vector.extract_strided_slice %610 {offsets = [0, 128], sizes = [16, 128], strides = [1, 1]} : vector<16x256xf32> to vector<16x128xf32>
    %613 = arith.select %27, %611, %612 : vector<16x128xi1>, vector<16x128xf32>
    %614 = arith.addf %608, %613 : vector<16x128xf32>
    %615 = arith.negf %614 : vector<16x128xf32>
    %616 = math.exp %615 : vector<16x128xf32>
    %cst_221 = arith.constant 1.000000e+00 : f32
    %617 = vector.broadcast %cst_221 : f32 to vector<16x128xf32>
    %618 = arith.addf %617, %616 : vector<16x128xf32>
    %619 = arith.divf %617, %618 : vector<16x128xf32>
    %620 = math.tanh %614 : vector<16x128xf32>
    %621 = arith.select %33, %620, %619 : vector<16x128xi1>, vector<16x128xf32>
    %622 = vector.extract_strided_slice %621 {offsets = [0, 32], sizes = [16, 32], strides = [1, 1]} : vector<16x128xf32> to vector<16x32xf32>
    %623 = arith.mulf %622, %598 : vector<16x32xf32>
    %624 = vector.extract_strided_slice %621 {offsets = [0, 0], sizes = [16, 32], strides = [1, 1]} : vector<16x128xf32> to vector<16x32xf32>
    %625 = vector.extract_strided_slice %621 {offsets = [0, 64], sizes = [16, 32], strides = [1, 1]} : vector<16x128xf32> to vector<16x32xf32>
    %626 = arith.mulf %624, %625 : vector<16x32xf32>
    %627 = arith.addf %623, %626 : vector<16x32xf32>
    %628 = vector.extract_strided_slice %621 {offsets = [0, 96], sizes = [16, 32], strides = [1, 1]} : vector<16x128xf32> to vector<16x32xf32>
    %629 = math.tanh %627 : vector<16x32xf32>
    %630 = arith.mulf %628, %629 : vector<16x32xf32>
    %c0_i32_222 = arith.constant 0 : i32
    %631 = vector.broadcast %c0_i32_222 : i32 to vector<16x1xi32>
    %632 = arith.cmpi sgt, %36, %631 : vector<16x1xi32>
    %633 = vector.shape_cast %632 : vector<16x1xi1> to vector<16x1xi1>
    %634 = vector.broadcast %633 : vector<16x1xi1> to vector<16x32xi1>
    %635 = arith.select %634, %630, %601 : vector<16x32xi1>, vector<16x32xf32>
    %636 = vector.extract_strided_slice %635 {offsets = [0, 0], sizes = [8, 32], strides = [1, 1]} : vector<16x32xf32> to vector<8x32xf32>
    %c56_223 = arith.constant 56 : index
    %c0_224 = arith.constant 0 : index
    %637 = vector.load %arg15[%c56_223, %c0_224] : memref<64x64xf32, #tpu.memory_space<vmem>>, vector<8x32xf32>
    tpu.vector_store %arg15[%c56_223, %c0_224], %636 {strides = array<i32>} : memref<64x64xf32, #tpu.memory_space<vmem>>, vector<8x32xf32>,
    %638 = vector.extract_strided_slice %635 {offsets = [8, 0], sizes = [8, 32], strides = [1, 1]} : vector<16x32xf32> to vector<8x32xf32>
    %c0_225 = arith.constant 0 : index
    %c32_226 = arith.constant 32 : index
    %639 = vector.load %arg15[%c0_225, %c32_226] : memref<64x64xf32, #tpu.memory_space<vmem>>, vector<8x32xf32>
    tpu.vector_store %arg15[%c0_225, %c32_226], %638 {strides = array<i32>} : memref<64x64xf32, #tpu.memory_space<vmem>>, vector<8x32xf32>,
    %c0_227 = arith.constant 0 : index
    %c0_228 = arith.constant 0 : index
    %640 = vector.load %arg15[%c0_227, %c0_228] : memref<64x64xf32, #tpu.memory_space<vmem>>, vector<64x64xf32>
    %c0_229 = arith.constant 0 : index
    %c0_230 = arith.constant 0 : index
    %641 = vector.load %arg16[%c0_229, %c0_230] : memref<64x64xf32, #tpu.memory_space<vmem>>, vector<64x64xf32>
    %642 = tpu.concatenate %640, %641 in 1 : vector<64x64xf32>, vector<64x64xf32> -> vector<64x128xf32>
    %643 = vector.shape_cast %642 : vector<64x128xf32> to vector<8x8x128xf32>
    %c0_231 = arith.constant 0 : index
    %c0_232 = arith.constant 0 : index
    %c0_233 = arith.constant 0 : index
    %644 = vector.load %arg12[%c0_231, %c0_232, %c0_233] : memref<8x8x128xf32, #tpu.memory_space<vmem>>, vector<8x8x128xf32>
    tpu.vector_store %arg12[%c0_231, %c0_232, %c0_233], %643 {strides = array<i32>} : memref<8x8x128xf32, #tpu.memory_space<vmem>>, vector<8x8x128xf32>,
    return
  }
  func.func @transform_0(%arg0: i32) -> (i32, i32) {
    %c0_i32 = arith.constant 0 : i32
    %c0_i32_0 = arith.constant 0 : i32
    return %arg0, %c0_i32 : i32, i32
  }
  func.func @transform_1(%arg0: i32) -> (i32, i32, i32) {
    %c0_i32 = arith.constant 0 : i32
    %c0_i32_0 = arith.constant 0 : i32
    %c0_i32_1 = arith.constant 0 : i32
    return %c0_i32, %arg0, %c0_i32_0 : i32, i32, i32
  }
  func.func @transform_2(%arg0: i32) -> (i32, i32, i32) {
    %c0_i32 = arith.constant 0 : i32
    %c0_i32_0 = arith.constant 0 : i32
    %c0_i32_1 = arith.constant 0 : i32
    return %c0_i32, %arg0, %c0_i32_0 : i32, i32, i32
  }
  func.func @transform_3(%arg0: i32) -> (i32, i32) {
    %c0_i32 = arith.constant 0 : i32
    %c0_i32_0 = arith.constant 0 : i32
    %c0_i32_1 = arith.constant 0 : i32
    return %c0_i32, %c0_i32_0 : i32, i32
  }
  func.func @transform_4(%arg0: i32) -> (i32, i32) {
    %c0_i32 = arith.constant 0 : i32
    %c0_i32_0 = arith.constant 0 : i32
    %c0_i32_1 = arith.constant 0 : i32
    return %c0_i32, %c0_i32_0 : i32, i32
  }
  func.func @transform_5(%arg0: i32) -> (i32, i32) {
    %c0_i32 = arith.constant 0 : i32
    %c0_i32_0 = arith.constant 0 : i32
    %c0_i32_1 = arith.constant 0 : i32
    return %c0_i32, %c0_i32_0 : i32, i32
  }
  func.func @transform_6(%arg0: i32) -> (i32, i32) {
    %c0_i32 = arith.constant 0 : i32
    %c0_i32_0 = arith.constant 0 : i32
    %c0_i32_1 = arith.constant 0 : i32
    return %c0_i32, %c0_i32_0 : i32, i32
  }
  func.func @transform_7(%arg0: i32) -> (i32, i32) {
    %c0_i32 = arith.constant 0 : i32
    %c0_i32_0 = arith.constant 0 : i32
    %c0_i32_1 = arith.constant 0 : i32
    return %c0_i32, %c0_i32_0 : i32, i32
  }
  func.func @transform_8(%arg0: i32) -> (i32, i32) {
    %c0_i32 = arith.constant 0 : i32
    %c0_i32_0 = arith.constant 0 : i32
    %c0_i32_1 = arith.constant 0 : i32
    return %c0_i32, %c0_i32_0 : i32, i32
  }
  func.func @transform_9(%arg0: i32) -> (i32, i32) {
    %c0_i32 = arith.constant 0 : i32
    %c0_i32_0 = arith.constant 0 : i32
    %c0_i32_1 = arith.constant 0 : i32
    return %c0_i32, %c0_i32_0 : i32, i32
  }
  func.func @transform_10(%arg0: i32) -> (i32, i32) {
    %c0_i32 = arith.constant 0 : i32
    %c0_i32_0 = arith.constant 0 : i32
    %c0_i32_1 = arith.constant 0 : i32
    return %c0_i32, %c0_i32_0 : i32, i32
  }
  func.func @transform_11(%arg0: i32) -> (i32, i32, i32) {
    %c0_i32 = arith.constant 0 : i32
    %c0_i32_0 = arith.constant 0 : i32
    %c0_i32_1 = arith.constant 0 : i32
    return %c0_i32, %arg0, %c0_i32_0 : i32, i32, i32
  }
}

</mosaic_0001>

<bundles_post_ra>
// kernel: _encode_device.1
= control target key start
LH: loop header
LB: loop body
LE: loop exit
PB: predicated region body
PF: predicated region fallthrough
CT: control target
= control target key end

     0   :  { %v3934_v3 = vmov 0.0   ;;  %vm502_vm0 = vcmask 261120   ;;  %vm511_vm1 = vcmask 523264   ;;  %s5534_s3 = inlined_call_operand.vmem [shape: f32[128,512], index: 3, kind: input, shape index: {}]   ;;  %s5535_s2 = inlined_call_operand.vmem [shape: f32[8,8,128], index: 2, kind: input, shape index: {}]   ;;  %s5536_s4 = inlined_call_operand.vmem [shape: f32[1,512], index: 4, kind: input, shape index: {}]   ;;  %s5537_s5 = inlined_call_operand.vmem [shape: f32[64,256], index: 5, kind: input, shape index: {}]   ;;  %s5538_s7 = inlined_call_operand.vmem [shape: f32[32,256], index: 7, kind: input, shape index: {}]   ;;  %s5539_s1 = inlined_call_operand.vmem [shape: f32[8,8,32], index: 1, kind: input, shape index: {}]   ;;  %s5540_s6 = inlined_call_operand.vmem [shape: f32[1,256], index: 6, kind: input, shape index: {}]   ;;  %s5541_s0 = inlined_call_operand.vmem [shape: s32[8,1], index: 0, kind: input, shape index: {}]   ;;  %s5542_s8 = inlined_call_operand.vmem [shape: f32[64,256], index: 8, kind: input, shape index: {}]   ;;  %s5543_s10 = inlined_call_operand.vmem [shape: f32[32,256], index: 10, kind: input, shape index: {}]   ;;  %s5544_s9 = inlined_call_operand.vmem [shape: f32[1,256], index: 9, kind: input, shape index: {}]   ;;  %s5545_s11 = inlined_call_operand.vmem [shape: f32[8,8,128], index: 11, kind: output, shape index: {}]  }
   0x1   :  { %v107_v0 = vld [vmem:[%s5534_s3 + $0x1e8] sm:$0xff]  ;;  %v106_v1 = vld [vmem:[%s5534_s3 + $0x1e0] sm:$0xff]  ;;  %196 = vmatprep.mubr.f32.mxu0 %v3934_v3  ;;  %309 = vmatprep.mubr.f32.mxu1 %v3934_v3  ;;  %v109_v4 = vld [vmem:[%s5534_s3 + $0x1f8] sm:$0xff] }
   0x2   :  { %v103_v2 = vld [vmem:[%s5534_s3 + $0x1c8] sm:$0xff]  ;;  %132 = vmatprep.subr.mxu0 %v107_v0  ;;  %v102_v5 = vld [vmem:[%s5534_s3 + $0x1c0] sm:$0xff]  ;;  %v108_v6 = vld [vmem:[%s5534_s3 + $0x1f0] sm:$0xff]  ;;  %245 = vmatprep.subr.mxu1 %v109_v4 }
   0x3   :  { %133 = vmatpush1.msra.mxu0 %v106_v1  ;;  %v99_v7 = vld [vmem:[%s5534_s3 + $0x1a8] sm:$0xff]  ;;  %v105_v8 = vld [vmem:[%s5534_s3 + $0x1d8] sm:$0xff]  ;;  %246 = vmatpush1.msra.mxu1 %v108_v6  ;;  %v98_v9 = vld [vmem:[%s5534_s3 + $0x1a0] sm:$0xff] }
   0x4   :  { %134 = vmatprep.subr.mxu0 %v103_v2  ;;  %v104_v10 = vld [vmem:[%s5534_s3 + $0x1d0] sm:$0xff]  ;;  %v101_v11 = vld [vmem:[%s5534_s3 + $0x1b8] sm:$0xff]  ;;  %247 = vmatprep.subr.mxu1 %v105_v8  ;;  %v95_v12 = vld [vmem:[%s5534_s3 + $0x188] sm:$0xff] }
   0x5   :  { %135 = vmatpush1.msra.mxu0 %v102_v5  ;;  %v100_v13 = vld [vmem:[%s5534_s3 + $0x1b0] sm:$0xff]  ;;  %248 = vmatpush1.msra.mxu1 %v104_v10  ;;  %v94_v14 = vld [vmem:[%s5534_s3 + $0x180] sm:$0xff]  ;;  %v97_v15 = vld [vmem:[%s5534_s3 + $0x198] sm:$0xff]  ;;  %v112_v10 = vlaneseq }
   0x6   :  { %136 = vmatprep.subr.mxu0 %v99_v7  ;;  %249 = vmatprep.subr.mxu1 %v101_v11  ;;  %v91_v16 = vld [vmem:[%s5534_s3 + $0x168] sm:$0xff]  ;;  %v96_v17 = vld [vmem:[%s5534_s3 + $0x190] sm:$0xff]  ;;  %v90_v18 = vld [vmem:[%s5534_s3 + $0x160] sm:$0xff] }
   0x7   :  { %137 = vmatpush1.msra.mxu0 %v98_v9  ;;  %250 = vmatpush1.msra.mxu1 %v100_v13  ;;  %v93_v19 = vld [vmem:[%s5534_s3 + $0x178] sm:$0xff]  ;;  %v87_v20 = vld [vmem:[%s5534_s3 + $0x148] sm:$0xff]  ;;  %v92_v21 = vld [vmem:[%s5534_s3 + $0x170] sm:$0xff]  ;;  %v113_v11 = vshrl.u32 %v112_v10, 7 }
   0x8   :  { %138 = vmatprep.subr.mxu0 %v95_v12  ;;  %251 = vmatprep.subr.mxu1 %v97_v15  ;;  %v86_v22 = vld [vmem:[%s5534_s3 + $0x140] sm:$0xff]  ;;  %v89_v23 = vld [vmem:[%s5534_s3 + $0x158] sm:$0xff]  ;;  %v83_v24 = vld [vmem:[%s5534_s3 + $0x128] sm:$0xff] }
   0x9   :  { %139 = vmatpush1.msra.mxu0 %v94_v14  ;;  %252 = vmatpush1.msra.mxu1 %v96_v17  ;;  %v88_v25 = vld [vmem:[%s5534_s3 + $0x150] sm:$0xff]  ;;  %v82_v26 = vld [vmem:[%s5534_s3 + $0x120] sm:$0xff]  ;;  %v85_v27 = vld [vmem:[%s5534_s3 + $0x138] sm:$0xff]  ;;  %v4233_v12 = vsub.s32 0, %v113_v11  ;;  %v122_v14 = vsub.s32 2, %v113_v11  ;;  %v4238_v15 = vsub.s32 1, %v113_v11 }
   0xa   :  { %140 = vmatprep.subr.mxu0 %v91_v16  ;;  %253 = vmatprep.subr.mxu1 %v93_v19  ;;  %v79_v28 = vld [vmem:[%s5534_s3 + $0x108] sm:$0xff]  ;;  %v84_v29 = vld [vmem:[%s5534_s3 + $0x130] sm:$0xff]  ;;  %v78_v30 = vld [vmem:[%s5534_s3 + $0x100] sm:$0xff]  ;;  %v126_v16 = vsub.s32 3, %v113_v11 }
   0xb   :  { %141 = vmatpush1.msra.mxu0 %v90_v18  ;;  %254 = vmatpush1.msra.mxu1 %v92_v21  ;;  %v81_v31 = vld [vmem:[%s5534_s3 + $0x118] sm:$0xff]  ;;  %v75_v32 = vld [vmem:[%s5534_s3 + $0xe8] sm:$0xff]  ;;  %v80_v33 = vld [vmem:[%s5534_s3 + $0x110] sm:$0xff] }
   0xc   :  { %142 = vmatprep.subr.mxu0 %v87_v20  ;;  %255 = vmatprep.subr.mxu1 %v89_v23  ;;  %v74_v34 = vld [vmem:[%s5534_s3 + $0xe0] sm:$0xff]  ;;  %v77_v35 = vld [vmem:[%s5534_s3 + $0xf8] sm:$0xff]  ;;  %v71_v36 = vld [vmem:[%s5534_s3 + $0xc8] sm:$0xff] }
   0xd   :  { %143 = vmatpush1.msra.mxu0 %v86_v22  ;;  %256 = vmatpush1.msra.mxu1 %v88_v25  ;;  %v76_v37 = vld [vmem:[%s5534_s3 + $0xf0] sm:$0xff]  ;;  %v70_v38 = vld [vmem:[%s5534_s3 + $0xc0] sm:$0xff]  ;;  %v73_v39 = vld [vmem:[%s5534_s3 + $0xd8] sm:$0xff] }
   0xe   :  { %144 = vmatprep.subr.mxu0 %v83_v24  ;;  %257 = vmatprep.subr.mxu1 %v85_v27  ;;  %v67_v40 = vld [vmem:[%s5534_s3 + $0xa8] sm:$0xff]  ;;  %v72_v41 = vld [vmem:[%s5534_s3 + $0xd0] sm:$0xff]  ;;  %v66_v42 = vld [vmem:[%s5534_s3 + $0xa0] sm:$0xff] }
   0xf   :  { %145 = vmatpush1.msra.mxu0 %v82_v26  ;;  %258 = vmatpush1.msra.mxu1 %v84_v29  ;;  %v69_v43 = vld [vmem:[%s5534_s3 + $0xb8] sm:$0xff]  ;;  %v63_v44 = vld [vmem:[%s5534_s3 + $0x88] sm:$0xff]  ;;  %v68_v45 = vld [vmem:[%s5534_s3 + $0xb0] sm:$0xff] }
  0x10   :  { %146 = vmatprep.subr.mxu0 %v79_v28  ;;  %259 = vmatprep.subr.mxu1 %v81_v31  ;;  %v62_v46 = vld [vmem:[%s5534_s3 + $0x80] sm:$0xff]  ;;  %v65_v47 = vld [vmem:[%s5534_s3 + $0x98] sm:$0xff]  ;;  %v59_v48 = vld [vmem:[%s5534_s3 + $0x68] sm:$0xff] }
  0x11   :  { %147 = vmatpush1.msra.mxu0 %v78_v30  ;;  %260 = vmatpush1.msra.mxu1 %v80_v33  ;;  %v64_v49 = vld [vmem:[%s5534_s3 + $0x90] sm:$0xff]  ;;  %v58_v50 = vld [vmem:[%s5534_s3 + $0x60] sm:$0xff]  ;;  %v61_v51 = vld [vmem:[%s5534_s3 + $0x78] sm:$0xff] }
  0x12   :  { %148 = vmatprep.subr.mxu0 %v75_v32  ;;  %261 = vmatprep.subr.mxu1 %v77_v35  ;;  %v55_v52 = vld [vmem:[%s5534_s3 + $0x48] sm:$0xff]  ;;  %v60_v53 = vld [vmem:[%s5534_s3 + $0x70] sm:$0xff]  ;;  %v54_v54 = vld [vmem:[%s5534_s3 + $0x40] sm:$0xff] }
  0x13   :  { %149 = vmatpush1.msra.mxu0 %v74_v34  ;;  %262 = vmatpush1.msra.mxu1 %v76_v37  ;;  %v57_v55 = vld [vmem:[%s5534_s3 + $0x58] sm:$0xff]  ;;  %v51_v56 = vld [vmem:[%s5534_s3 + $0x28] sm:$0xff]  ;;  %v56_v57 = vld [vmem:[%s5534_s3 + $0x50] sm:$0xff] }
  0x14   :  { %150 = vmatprep.subr.mxu0 %v71_v36  ;;  %263 = vmatprep.subr.mxu1 %v73_v39  ;;  %v50_v58 = vld [vmem:[%s5534_s3 + $0x20] sm:$0xff]  ;;  %v53_v59 = vld [vmem:[%s5534_s3 + $0x38] sm:$0xff]  ;;  %v47_v60 = vld [vmem:[%s5534_s3 + $0x8] sm:$0xff] }
  0x15   :  { %151 = vmatpush1.msra.mxu0 %v70_v38  ;;  %264 = vmatpush1.msra.mxu1 %v72_v41  ;;  %v52_v61 = vld [vmem:[%s5534_s3 + $0x30] sm:$0xff]  ;;  %v46_v62 = vld [vmem:[%s5534_s3] sm:$0xff]  ;;  %v49_v63 = vld [vmem:[%s5534_s3 + $0x18] sm:$0xff] }
  0x16   :  { %152 = vmatprep.subr.mxu0 %v67_v40  ;;  %265 = vmatprep.subr.mxu1 %v69_v43  ;;  %v38_v0 = vld [vmem:[%s5535_s2] sm:$0xff]  ;;  %v48_v1 = vld [vmem:[%s5534_s3 + $0x10] sm:$0xff]  ;;  %v39_v2 = vld [vmem:[%s5535_s2 + $0x8] sm:$0xff] }
  0x17   :  { %153 = vmatpush1.msra.mxu0 %v66_v42  ;;  %266 = vmatpush1.msra.mxu1 %v68_v45  ;;  %v40_v4 = vld [vmem:[%s5535_s2 + $0x10] sm:$0xff]  ;;  %v41_v5 = vld [vmem:[%s5535_s2 + $0x18] sm:$0xff]  ;;  %v42_v6 = vld [vmem:[%s5535_s2 + $0x20] sm:$0xff] }
  0x18   :  { %154 = vmatprep.subr.mxu0 %v63_v44  ;;  %267 = vmatprep.subr.mxu1 %v65_v47  ;;  %v43_v7 = vld [vmem:[%s5535_s2 + $0x28] sm:$0xff]  ;;  %v44_v8 = vld [vmem:[%s5535_s2 + $0x30] sm:$0xff]  ;;  %v45_v9 = vld [vmem:[%s5535_s2 + $0x38] sm:$0xff]  ;;  %s3935_s2 = smov 64  }
  0x19   :  { %155 = vmatpush1.msra.mxu0 %v62_v46  ;;  %268 = vmatpush1.msra.mxu1 %v64_v49  ;;  %v110_v13 = vld [vmem:[%s5536_s4] sm:$0xf]  ;;  %s3936_s4 = smov 32  }
  0x1a   :  { %156 = vmatprep.subr.mxu0 %v59_v48  ;;  %269 = vmatprep.subr.mxu1 %v61_v51  ;;  %v4241_v17 = vrot.slane %v110_v13, %v4233_v12  ;;  %v4243_v18 = vrot.slane %v110_v13, %v122_v14  ;;  %v4246_v19 = vrot.slane %v110_v13, %v4238_v15 }
  0x1b   :  { %157 = vmatpush1.msra.mxu0 %v58_v50  ;;  %270 = vmatpush1.msra.mxu1 %v60_v53  ;;  %v4248_v21 = vrot.slane %v110_v13, %v126_v16 }
  0x1c   :  { %158 = vmatprep.subr.mxu0 %v55_v52  ;;  %271 = vmatprep.subr.mxu1 %v57_v55 }
  0x1d   :  { %159 = vmatpush1.msra.mxu0 %v54_v54  ;;  %272 = vmatpush1.msra.mxu1 %v56_v57 }
  0x1e   :  { %160 = vmatprep.subr.mxu0 %v51_v56  ;;  %273 = vmatprep.subr.mxu1 %v53_v59 }
  0x1f   :  { %161 = vmatpush1.msra.mxu0 %v50_v58  ;;  %274 = vmatpush1.msra.mxu1 %v52_v61 }
  0x20   :  { %162 = vmatprep.subr.mxu0 %v47_v60  ;;  %275 = vmatprep.subr.mxu1 %v49_v63 }
  0x21   :  { %163 = vmatpush1.msra.mxu0 %v46_v62  ;;  %276 = vmatpush1.msra.mxu1 %v48_v1 }
  0x22   :  { %197 = vmatmul.mubr.f32.vlgmr.msra.gmra.mxu0 %v38_v0  ;;  %310 = vmatmul.mubr.f32.vlgmr.msra.gmra.mxu1 %v38_v0 }
  0x23   :  { %202 = vmatprep.mubr.f32.mxu0 %v3934_v3  ;;  %315 = vmatprep.mubr.f32.mxu1 %v3934_v3 }
  0x26   :  { %203 = vmatmul.mubr.f32.gmra.mxu0 %v39_v2  ;;  %316 = vmatmul.mubr.f32.gmra.mxu1 %v39_v2 }
  0x27   :  { %208 = vmatprep.mubr.f32.mxu0 %v3934_v3  ;;  %321 = vmatprep.mubr.f32.mxu1 %v3934_v3 }
  0x2a   :  { %209 = vmatmul.mubr.f32.gmra.mxu0 %v40_v4  ;;  %322 = vmatmul.mubr.f32.gmra.mxu1 %v40_v4 }
  0x2b   :  { %214 = vmatprep.mubr.f32.mxu0 %v3934_v3  ;;  %327 = vmatprep.mubr.f32.mxu1 %v3934_v3 }
  0x2e   :  { %215 = vmatmul.mubr.f32.gmra.mxu0 %v41_v5  ;;  %328 = vmatmul.mubr.f32.gmra.mxu1 %v41_v5 }
  0x2f   :  { %220 = vmatprep.mubr.f32.mxu0 %v3934_v3  ;;  %333 = vmatprep.mubr.f32.mxu1 %v3934_v3 }
  0x32   :  { %221 = vmatmul.mubr.f32.gmra.mxu0 %v42_v6  ;;  %334 = vmatmul.mubr.f32.gmra.mxu1 %v42_v6 }
  0x33   :  { %226 = vmatprep.mubr.f32.mxu0 %v3934_v3  ;;  %339 = vmatprep.mubr.f32.mxu1 %v3934_v3 }
  0x36   :  { %227 = vmatmul.mubr.f32.gmra.mxu0 %v43_v7  ;;  %340 = vmatmul.mubr.f32.gmra.mxu1 %v43_v7 }
  0x37   :  { %232 = vmatprep.mubr.f32.mxu0 %v3934_v3  ;;  %345 = vmatprep.mubr.f32.mxu1 %v3934_v3 }
  0x3a   :  { %233 = vmatmul.mubr.f32.gmra.mxu0 %v44_v8  ;;  %346 = vmatmul.mubr.f32.gmra.mxu1 %v44_v8 }
  0x3b   :  { %238 = vmatprep.mubr.f32.mxu0 %v3934_v3  ;;  %351 = vmatprep.mubr.f32.mxu1 %v3934_v3 }
  0x3e   :  { %239 = vmatmul.mubr.f32.gmra.mxu0 %v45_v9  ;;  %352 = vmatmul.mubr.f32.gmra.mxu1 %v45_v9 }
  0x3f   :  { %647 = vmatprep.mubr.f32.mxu0 %v3934_v3  ;;  %789 = vmatprep.mubr.f32.mxu1 %v3934_v3 }
  0xe2   :  { %v198_v20 = vpop.f32.mrf.mxu0  ;;  %v311_v23 = vpop.f32.mrf.mxu1 }
  0xe3   :  { %v199_v22 = vadd.f32 %v198_v20, %v4241_v17  ;;  %v312_v25 = vadd.f32 %v311_v23, %v4243_v18 }
  0xe4   :  { %v200_v24 = vpop.f32.mrf.mxu0  ;;  %v313_v27 = vpop.f32.mrf.mxu1 }
  0xe5   :  { %v201_v26 = vadd.f32 %v200_v24, %v4246_v19  ;;  %v314_v29 = vadd.f32 %v313_v27, %v4248_v21  ;;  %v358_v30 = vmax.f32 %v199_v22, 0.0  ;;  %v360_v32 = vmax.f32 %v312_v25, 0.0 }
  0xe6   :  { %v204_v28 = vpop.f32.mrf.mxu0  ;;  %v317_v34 = vpop.f32.mrf.mxu1 }
  0xe7   :  { %v359_v31 = vmax.f32 %v201_v26, 0.0  ;;  %v205_v33 = vadd.f32 %v204_v28, %v4241_v17  ;;  %v318_v36 = vadd.f32 %v317_v34, %v4243_v18  ;;  %v361_v41 = vmax.f32 %v314_v29, 0.0 }
  0xe8   :  { %v206_v35 = vpop.f32.mrf.mxu0  ;;  %v319_v39 = vpop.f32.mrf.mxu1 }
  0xe9   :  { %v390_v37 = vmax.f32 %v358_v30, %v359_v31  ;;  %v207_v38 = vadd.f32 %v206_v35, %v4246_v19  ;;  %v362_v40 = vmax.f32 %v205_v33, 0.0  ;;  %v320_v43 = vadd.f32 %v319_v39, %v4248_v21 }
  0xea   :  { %v210_v42 = vpop.f32.mrf.mxu0  ;;  %v364_v46 = vmax.f32 %v318_v36, 0.0  ;;  %v323_v48 = vpop.f32.mrf.mxu1 }
  0xeb   :  { %v398_v44 = vmax.f32 %v390_v37, %v360_v32  ;;  %v363_v45 = vmax.f32 %v207_v38, 0.0  ;;  %v211_v47 = vadd.f32 %v210_v42, %v4241_v17  ;;  %v324_v50 = vadd.f32 %v323_v48, %v4243_v18 }
  0xec   :  { %v212_v49 = vpop.f32.mrf.mxu0  ;;  %v325_v53 = vpop.f32.mrf.mxu1  ;;  %v365_v56 = vmax.f32 %v320_v43, 0.0 }
  0xed   :  { %v391_v51 = vmax.f32 %v362_v40, %v363_v45  ;;  %v213_v52 = vadd.f32 %v212_v49, %v4246_v19  ;;  %v4261_v54 = vmax.f32 %v398_v44, %v361_v41  ;;  %v366_v55 = vmax.f32 %v211_v47, 0.0 }
  0xee   :  { %v216_v57 = vpop.f32.mrf.mxu0  ;;  %v326_v58 = vadd.f32 %v325_v53, %v4248_v21  ;;  %v368_v61 = vmax.f32 %v324_v50, 0.0  ;;  %v329_v63 = vpop.f32.mrf.mxu1 }
  0xef   :  { %v399_v59 = vmax.f32 %v391_v51, %v364_v46  ;;  %v367_v60 = vmax.f32 %v213_v52, 0.0  ;;  %v217_v62 = vadd.f32 %v216_v57, %v4241_v17  ;;  %414 = vrot.lane.b32.xlu0 %v4261_v54, %s3935_s2  ;;  %v330_v1 = vadd.f32 %v329_v63, %v4243_v18 }
  0xf0   :  { %v218_v0 = vpop.f32.mrf.mxu0  ;;  %v331_v6 = vpop.f32.mrf.mxu1  ;;  %v369_v8 = vmax.f32 %v326_v58, 0.0 }
  0xf1   :  { %v4268_v2 = vmax.f32 %v399_v59, %v365_v56  ;;  %v392_v4 = vmax.f32 %v366_v55, %v367_v60  ;;  %v219_v5 = vadd.f32 %v218_v0, %v4246_v19  ;;  %v370_v7 = vmax.f32 %v217_v62, 0.0 }
  0xf2   :  { %v222_v9 = vpop.f32.mrf.mxu0  ;;  %v332_v11 = vadd.f32 %v331_v6, %v4248_v21  ;;  %v372_v16 = vmax.f32 %v330_v1, 0.0  ;;  %v335_v22 = vpop.f32.mrf.mxu1 }
  0xf3   :  { %v400_v13 = vmax.f32 %v392_v4, %v368_v61  ;;  %v371_v14 = vmax.f32 %v219_v5, 0.0  ;;  %v223_v20 = vadd.f32 %v222_v9, %v4241_v17  ;;  %416 = vrot.lane.b32.xlu0 %v4268_v2, %s3935_s2  ;;  %v336_v24 = vadd.f32 %v335_v22, %v4243_v18 }
  0xf4   :  { %v224_v23 = vpop.f32.mrf.mxu0  ;;  %v337_v27 = vpop.f32.mrf.mxu1  ;;  %v373_v30 = vmax.f32 %v332_v11, 0.0 }
  0xf5   :  { %v393_v25 = vmax.f32 %v370_v7, %v371_v14  ;;  %v225_v26 = vadd.f32 %v224_v23, %v4246_v19  ;;  %v4277_v28 = vmax.f32 %v400_v13, %v369_v8  ;;  %v374_v29 = vmax.f32 %v223_v20, 0.0 }
  0xf6   :  { %v228_v31 = vpop.f32.mrf.mxu0  ;;  %v338_v32 = vadd.f32 %v337_v27, %v4248_v21  ;;  %v376_v35 = vmax.f32 %v336_v24, 0.0  ;;  %v341_v37 = vpop.f32.mrf.mxu1 }
  0xf7   :  { %v401_v33 = vmax.f32 %v393_v25, %v372_v16  ;;  %v375_v34 = vmax.f32 %v225_v26, 0.0  ;;  %v229_v36 = vadd.f32 %v228_v31, %v4241_v17  ;;  %418 = vrot.lane.b32.xlu1 %v4277_v28, %s3935_s2  ;;  %v342_v39 = vadd.f32 %v341_v37, %v4243_v18 }
  0xf8   :  { %v230_v38 = vpop.f32.mrf.mxu0  ;;  %v343_v43 = vpop.f32.mrf.mxu1  ;;  %v377_v45 = vmax.f32 %v338_v32, 0.0 }
  0xf9   :  { %v409_v40 = vmax.f32 %v401_v33, %v373_v30  ;;  %v394_v41 = vmax.f32 %v374_v29, %v375_v34  ;;  %v231_v42 = vadd.f32 %v230_v38, %v4246_v19  ;;  %v378_v44 = vmax.f32 %v229_v36, 0.0  ;;  %v545_v38 = vld [vmem:[%s5537_s5 + $0x70] sm:$0xff] }
  0xfa   :  { %v234_v46 = vpop.f32.mrf.mxu0  ;;  %v344_v47 = vadd.f32 %v343_v43, %v4248_v21  ;;  %v380_v50 = vmax.f32 %v342_v39, 0.0  ;;  %v347_v52 = vpop.f32.mrf.mxu1  ;;  %v544_v39 = vld [vmem:[%s5537_s5 + $0x68] sm:$0xff]  ;;  %v541_v43 = vld [vmem:[%s5537_s5 + $0x50] sm:$0xff] }
  0xfb   :  { %v402_v48 = vmax.f32 %v394_v41, %v376_v35  ;;  %v379_v49 = vmax.f32 %v231_v42, 0.0  ;;  %v235_v51 = vadd.f32 %v234_v46, %v4241_v17  ;;  %420 = vrot.lane.b32.xlu1 %v409_v40, %s3935_s2  ;;  %v348_v55 = vadd.f32 %v347_v52, %v4243_v18  ;;  %v542_v41 = vld [vmem:[%s5537_s5 + $0x58] sm:$0xff] }
  0xfc   :  { %v236_v53 = vpop.f32.mrf.mxu0  ;;  %v349_v59 = vpop.f32.mrf.mxu1  ;;  %v381_v61 = vmax.f32 %v344_v47, 0.0  ;;  %v4352_v46 = vld [vmem:[%s5538_s7 + $0x38] sm:$0xff]  ;;  %v539_v47 = vld [vmem:[%s5537_s5 + $0x40] sm:$0xff] }
  0xfd   :  { %v410_v56 = vmax.f32 %v402_v48, %v377_v45  ;;  %v395_v57 = vmax.f32 %v378_v44, %v379_v49  ;;  %v237_v58 = vadd.f32 %v236_v53, %v4246_v19  ;;  %v382_v60 = vmax.f32 %v235_v51, 0.0  ;;  %v540_v45 = vld [vmem:[%s5537_s5 + $0x48] sm:$0xff]  ;;  %749 = vmatprep.subr.mxu1 %v4352_v46  ;;  %v4361_v48 = vld [vmem:[%s5538_s7 + $0x30] sm:$0xff]  ;;  %v538_v49 = vld [vmem:[%s5537_s5 + $0x38] sm:$0xff] }
  0xfe   :  { %v240_v62 = vpop.f32.mrf.mxu0  ;;  %v350_v63 = vadd.f32 %v349_v59, %v4248_v21  ;;  %v384_v4 = vmax.f32 %v348_v55, 0.0  ;;  %v353_v6 = vpop.f32.mrf.mxu1  ;;  %v4376_v51 = vld [vmem:[%s5538_s7 + $0x20] sm:$0xff]  ;;  %v537_v53 = vld [vmem:[%s5537_s5 + $0x30] sm:$0xff]  ;;  %750 = vmatpush1.msra.mxu1 %v4361_v48  ;;  %v534_v59 = vld [vmem:[%s5537_s5 + $0x18] sm:$0xff] }
  0xff   :  { %v403_v0 = vmax.f32 %v395_v57, %v380_v50  ;;  %v383_v1 = vmax.f32 %v237_v58, 0.0  ;;  %v241_v5 = vadd.f32 %v240_v62, %v4241_v17  ;;  %422 = vrot.lane.b32.xlu0 %v410_v56, %s3935_s2  ;;  %v354_v8 = vadd.f32 %v353_v6, %v4243_v18  ;;  %v4371_v50 = vld [vmem:[%s5538_s7 + $0x28] sm:$0xff]  ;;  %v4391_v57 = vld [vmem:[%s5538_s7 + $0x18] sm:$0xff]  ;;  %v535_v58 = vld [vmem:[%s5537_s5 + $0x20] sm:$0xff] }
 0x100   :  { %v242_v7 = vpop.f32.mrf.mxu0  ;;  %v355_v14 = vpop.f32.mrf.mxu1  ;;  %v385_v20 = vmax.f32 %v350_v63, 0.0  ;;  %751 = vmatprep.subr.mxu1 %v4371_v50  ;;  %v531_v62 = vld [vmem:[%s5537_s5] sm:$0xff]  ;;  %v4416_v63 = vld [vmem:[%s5538_s7 + $0x10] sm:$0xff] }
 0x101   :  { %v411_v9 = vmax.f32 %v403_v0, %v381_v61  ;;  %v396_v11 = vmax.f32 %v382_v60, %v383_v1  ;;  %v243_v13 = vadd.f32 %v242_v7, %v4246_v19  ;;  %v386_v16 = vmax.f32 %v241_v5, 0.0  ;;  %752 = vmatpush1.msra.mxu1 %v4376_v51  ;;  %v533_v60 = vld [vmem:[%s5537_s5 + $0x10] sm:$0xff]  ;;  %v532_v61 = vld [vmem:[%s5537_s5 + $0x8] sm:$0xff]  ;;  %v4428_v1 = vld [vmem:[%s5538_s7] sm:$0xff] }
 0x102   :  { %v388_v24 = vmax.f32 %v354_v8, 0.0  ;;  %v356_v25 = vadd.f32 %v355_v14, %v4248_v21  ;;  %753 = vmatprep.subr.mxu1 %v4391_v57  ;;  %v4422_v0 = vld [vmem:[%s5538_s7 + $0x8] sm:$0xff] }
 0x103   :  { %v404_v22 = vmax.f32 %v396_v11, %v384_v4  ;;  %v387_v23 = vmax.f32 %v243_v13, 0.0  ;;  %424 = vrot.lane.b32.xlu1 %v411_v9, %s3935_s2  ;;  %754 = vmatpush1.msra.mxu1 %v4416_v63 }
 0x104   :  { %v389_v29 = vmax.f32 %v356_v25, 0.0  ;;  %755 = vmatprep.subr.mxu1 %v4422_v0 }
 0x105   :  { %v412_v17 = vmax.f32 %v404_v22, %v385_v20  ;;  %v397_v26 = vmax.f32 %v386_v16, %v387_v23  ;;  %756 = vmatpush1.msra.mxu1 %v4428_v1 }
 0x106   :  { %790 = vmatmul.mubr.f32.vlgmr.msra.gmra.mxu1 %v3934_v3  ;;  %921 = vmatprep.subr.mxu1 %v4352_v46 }
 0x107   :  { %v405_v27 = vmax.f32 %v397_v26, %v388_v24  ;;  %426 = vrot.lane.b32.xlu0 %v412_v17, %s3935_s2  ;;  %795 = vmatprep.mubr.f32.mxu1 %v3934_v3  ;;  %v462_v26 = vld [vmem:[%s5539_s1] sm:$0xff] }
 0x108   :  { %922 = vmatpush1.msra.mxu1 %v4361_v48 }
 0x109   :  { %v413_v18 = vmax.f32 %v405_v27, %v389_v29  ;;  %923 = vmatprep.subr.mxu1 %v4371_v50 }
 0x10a   :  { %924 = vmatpush1.msra.mxu1 %v4376_v51 }
 0x10b   :  { %428 = vrot.lane.b32.xlu1 %v413_v18, %s3935_s2  ;;  %796 = vmatmul.mubr.f32.gmra.mxu1 %v3934_v3 }
 0x10c   :  { %925 = vmatprep.subr.mxu1 %v4391_v57  ;;  %961 = vmatprep.mubr.f32.mxu1 %v3934_v3 }
 0x10d   :  { %926 = vmatpush1.msra.mxu1 %v4416_v63 }
 0x10e   :  { %927 = vmatprep.subr.mxu1 %v4422_v0 }
 0x10f   :  { %928 = vmatpush1.msra.mxu1 %v4428_v1 }
 0x110   :  { %1088 = vmatprep.subr.mxu1 %v4352_v46 }
 0x161   :  { %v415_v19 = vpop.permute.xlu0 %414 }
 0x162   :  { %v4300_v30 = vmax.f32 %v4261_v54, %v415_v19 }
 0x164   :  { %438 = vrot.lane.b32.xlu0 %v4300_v30, %s3936_s4 }
 0x165   :  { %v417_v21 = vpop.permute.xlu0 %416 }
 0x166   :  { %v4305_v31 = vmax.f32 %v4268_v2, %v417_v21  ;;  %v464_v21 = vld [vmem:[%s5539_s1 + $0x10] sm:$0xff] }
 0x168   :  { %440 = vrot.lane.b32.xlu1 %v4305_v31, %s3936_s4 }
 0x169   :  { %v419_v32 = vpop.permute.xlu1 %418 }
 0x16a   :  { %v4310_v33 = vmax.f32 %v4277_v28, %v419_v32  ;;  %v546_v28 = vld [vmem:[%s5537_s5 + $0x78] sm:$0xff] }
 0x16b   :  { %599 = vmatprep.subr.mxu0 %v546_v28 }
 0x16c   :  { %442 = vrot.lane.b32.xlu0 %v4310_v33, %s3936_s4  ;;  %600 = vmatpush1.msra.mxu0 %v545_v38 }
 0x16d   :  { %v421_v54 = vpop.permute.xlu1 %420  ;;  %601 = vmatprep.subr.mxu0 %v544_v39  ;;  %v468_v39 = vld [vmem:[%s5539_s1 + $0x30] sm:$0xff] }
 0x16e   :  { %v4314_v34 = vmax.f32 %v409_v40, %v421_v54  ;;  %v543_v40 = vld [vmem:[%s5537_s5 + $0x60] sm:$0xff] }
 0x16f   :  { %602 = vmatpush1.msra.mxu0 %v543_v40 }
 0x170   :  { %444 = vrot.lane.b32.xlu1 %v4314_v34, %s3936_s4  ;;  %603 = vmatprep.subr.mxu0 %v542_v41 }
 0x171   :  { %v423_v35 = vpop.permute.xlu0 %422  ;;  %604 = vmatpush1.msra.mxu0 %v541_v43 }
 0x172   :  { %v4318_v36 = vmax.f32 %v410_v56, %v423_v35  ;;  %605 = vmatprep.subr.mxu0 %v540_v45  ;;  %v536_v56 = vld [vmem:[%s5537_s5 + $0x28] sm:$0xff]  ;;  %v466_v35 = vld [vmem:[%s5539_s1 + $0x20] sm:$0xff] }
 0x173   :  { %606 = vmatpush1.msra.mxu0 %v539_v47 }
 0x174   :  { %446 = vrot.lane.b32.xlu0 %v4318_v36, %s3936_s4  ;;  %607 = vmatprep.subr.mxu0 %v538_v49 }
 0x175   :  { %v425_v2 = vpop.permute.xlu1 %424  ;;  %608 = vmatpush1.msra.mxu0 %v537_v53 }
 0x176   :  { %v4322_v37 = vmax.f32 %v411_v9, %v425_v2  ;;  %609 = vmatprep.subr.mxu0 %v536_v56 }
 0x177   :  { %610 = vmatpush1.msra.mxu0 %v535_v58 }
 0x178   :  { %448 = vrot.lane.b32.xlu1 %v4322_v37, %s3936_s4  ;;  %611 = vmatprep.subr.mxu0 %v534_v59 }
 0x179   :  { %v427_v42 = vpop.permute.xlu0 %426  ;;  %612 = vmatpush1.msra.mxu0 %v533_v60 }
 0x17a   :  { %v4344_v44 = vmax.f32 %v412_v17, %v427_v42  ;;  %613 = vmatprep.subr.mxu0 %v532_v61  ;;  %v469_v42 = vld [vmem:[%s5539_s1 + $0x38] sm:$0xff] }
 0x17b   :  { %614 = vmatpush1.msra.mxu0 %v531_v62 }
 0x17c   :  { %450 = vrot.lane.b32.xlu0 %v4344_v44, %s3936_s4  ;;  %1422 = vmatprep.subr.mxu0 %v4352_v46 }
 0x17d   :  { %v429_v52 = vpop.permute.xlu1 %428 }
 0x17e   :  { %v4382_v55 = vmax.f32 %v413_v18, %v429_v52  ;;  %v463_v18 = vld [vmem:[%s5539_s1 + $0x8] sm:$0xff]  ;;  %v547_v52 = vld [vmem:[%s5540_s6] sm:$0x3] }
 0x17f   :  { %v552_v53 = vrot.slane %v547_v52, %v4233_v12 }
 0x180   :  { %452 = vrot.lane.b32.xlu1 %v4382_v55, %s3936_s4 }
 0x1c6   :  { %v791_v45 = vpop.f32.mrf.mxu1 }
 0x1c8   :  { %v793_v47 = vpop.f32.mrf.mxu1 }
 0x1cb   :  { %v797_v49 = vpop.f32.mrf.mxu1 }
 0x1d6   :  { %v439_v4 = vpop.permute.xlu0 %438 }
 0x1d7   :  { %v454_v5 = vmax.f32 %v4300_v30, %v439_v4 }
 0x1d9   :  { %478 = vrot.lane.b32.xlu0 %v454_v5, %s3936_s4 }
 0x1da   :  { %v441_v6 = vpop.permute.xlu1 %440 }
 0x1db   :  { %v455_v7 = vmax.f32 %v4305_v31, %v441_v6 }
 0x1dd   :  { %480 = vrot.lane.b32.xlu1 %v455_v7, %s3936_s4 }
 0x1de   :  { %v443_v8 = vpop.permute.xlu0 %442 }
 0x1df   :  { %v456_v9 = vmax.f32 %v4310_v33, %v443_v8  ;;  %v465_v33 = vld [vmem:[%s5539_s1 + $0x18] sm:$0xff] }
 0x1e1   :  { %482 = vrot.lane.b32.xlu0 %v456_v9, %s3936_s4 }
 0x1e2   :  { %v445_v11 = vpop.permute.xlu1 %444 }
 0x1e3   :  { %v457_v13 = vmax.f32 %v4314_v34, %v445_v11 }
 0x1e5   :  { %484 = vrot.lane.b32.xlu1 %v457_v13, %s3936_s4 }
 0x1e6   :  { %v447_v14 = vpop.permute.xlu0 %446 }
 0x1e7   :  { %v458_v16 = vmax.f32 %v4318_v36, %v447_v14 }
 0x1e9   :  { %486 = vrot.lane.b32.xlu0 %v458_v16, %s3936_s4 }
 0x1ea   :  { %v449_v20 = vpop.permute.xlu1 %448 }
 0x1eb   :  { %v459_v22 = vmax.f32 %v4322_v37, %v449_v20  ;;  %v467_v37 = vld [vmem:[%s5539_s1 + $0x28] sm:$0xff] }
 0x1ed   :  { %488 = vrot.lane.b32.xlu1 %v459_v22, %s3936_s4 }
 0x1ee   :  { %v451_v23 = vpop.permute.xlu0 %450 }
 0x1ef   :  { %v460_v24 = vmax.f32 %v4344_v44, %v451_v23 }
 0x1f1   :  { %490 = vrot.lane.b32.xlu0 %v460_v24, %s3936_s4 }
 0x1f2   :  { %v453_v25 = vpop.permute.xlu1 %452 }
 0x1f3   :  { %v461_v17 = vmax.f32 %v4382_v55, %v453_v25  ;;  %v556_v55 = vrot.slane %v547_v52, %v4238_v15  ;;  %v4572_v52 = vld [vmem:[%s5541_s0] sm:$0xff] }
 0x1f4   :  { %vm856_vm5 = vcmp.gt.s32.totalorder %v4572_v52, 7  ;;  %vm1028_vm7 = vcmp.gt.s32.totalorder %v4572_v52, 6  ;;  %vm1195_vm9 = vcmp.gt.s32.totalorder %v4572_v52, 5  ;;  %vm1362_vm11 = vcmp.gt.s32.totalorder %v4572_v52, 4 }
 0x1f5   :  { %492 = vrot.lane.b32.xlu1 %v461_v17, %s3936_s4  ;;  %vm1529_vm13 = vcmp.gt.s32.totalorder %v4572_v52, 3  ;;  %vm1696_vm15 = vcmp.gt.s32.totalorder %v4572_v52, 2 }
 0x24b   :  { %v479_v27 = vpop.permute.xlu0 %478 }
 0x24c   :  { %v503_v29 = vsel %vm502_vm0, %v462_v26, %v479_v27 }
 0x24d   :  { %512 = vst.msk [vmem:[#allocation5] sm:$0xff] %vm511_vm1, %v503_v29  ;;  %3585 = vmatmul.mubr.msk.f32.vlgmr.msra.gmra.mxu0 %vm511_vm1, %v503_v29 }
 0x24e   :  { %653 = vmatprep.mubr.f32.mxu0 %v3934_v3  ;;  %1423 = vmatpush1.msra.mxu0 %v4361_v48 }
 0x24f   :  { %v481_v19 = vpop.permute.xlu1 %480  ;;  %1424 = vmatprep.subr.mxu0 %v4371_v50 }
 0x250   :  { %v504_v30 = vsel %vm502_vm0, %v463_v18, %v481_v19  ;;  %1425 = vmatpush1.msra.mxu0 %v4376_v51 }
 0x251   :  { %513 = vst.msk [vmem:[#allocation5 + $0x8] sm:$0xff] %vm511_vm1, %v504_v30  ;;  %3586 = vmatmul.mubr.msk.f32.gmra.mxu0 %vm511_vm1, %v504_v30  ;;  %1426 = vmatprep.subr.mxu0 %v4391_v57 }
 0x252   :  { %659 = vmatprep.mubr.f32.mxu0 %v3934_v3  ;;  %1427 = vmatpush1.msra.mxu0 %v4416_v63 }
 0x253   :  { %v483_v31 = vpop.permute.xlu0 %482  ;;  %1428 = vmatprep.subr.mxu0 %v4422_v0 }
 0x254   :  { %v505_v32 = vsel %vm502_vm0, %v464_v21, %v483_v31  ;;  %1429 = vmatpush1.msra.mxu0 %v4428_v1 }
 0x255   :  { %514 = vst.msk [vmem:[#allocation5 + $0x10] sm:$0xff] %vm511_vm1, %v505_v32  ;;  %3587 = vmatmul.mubr.msk.f32.gmra.mxu0 %vm511_vm1, %v505_v32 }
 0x256   :  { %665 = vmatprep.mubr.f32.mxu0 %v3934_v3 }
 0x257   :  { %v485_v54 = vpop.permute.xlu1 %484 }
 0x258   :  { %v506_v34 = vsel %vm502_vm0, %v465_v33, %v485_v54  ;;  %v526_v33 = vand.u32 127, %v112_v10 }
 0x259   :  { %515 = vst.msk [vmem:[#allocation5 + $0x18] sm:$0xff] %vm511_vm1, %v506_v34  ;;  %3588 = vmatmul.mubr.msk.f32.gmra.mxu0 %vm511_vm1, %v506_v34 }
 0x25a   :  { %671 = vmatprep.mubr.f32.mxu0 %v3934_v3  ;;  %vm527_vm2 = vcmp.ge.s32.totalorder %v526_v33, 64  ;;  %vm528_vm3 = vcmp.lt.s32.totalorder %v526_v33, 96 }
 0x25b   :  { %v487_v36 = vpop.permute.xlu0 %486  ;;  %vm4559_vm4 = vmand %vm527_vm2, %vm528_vm3  ;;  %vm1863_vm3 = vcmp.gt.s32.totalorder %v4572_v52, 1 }
 0x25c   :  { %v507_v2 = vsel %vm502_vm0, %v466_v35, %v487_v36  ;;  %v3937_v35 = vmov 0  }
 0x25d   :  { %516 = vst.msk [vmem:[#allocation5 + $0x20] sm:$0xff] %vm511_vm1, %v507_v2  ;;  %3589 = vmatmul.mubr.msk.f32.gmra.mxu0 %vm511_vm1, %v507_v2  ;;  %3673 = vset.pattern.permute.xlu0 %v3937_v35 }
 0x25e   :  { %677 = vmatprep.mubr.f32.mxu0 %v3934_v3  ;;  %3674 = vset.pattern.permute.xlu1 %v3937_v35 }
 0x25f   :  { %v489_v28 = vpop.permute.xlu1 %488 }
 0x260   :  { %v508_v38 = vsel %vm502_vm0, %v467_v37, %v489_v28  ;;  %v799_v28 = vpop.f32.mrf.mxu1 }
 0x261   :  { %517 = vst.msk [vmem:[#allocation5 + $0x28] sm:$0xff] %vm511_vm1, %v508_v38  ;;  %3590 = vmatmul.mubr.msk.f32.gmra.mxu0 %vm511_vm1, %v508_v38 }
 0x262   :  { %683 = vmatprep.mubr.f32.mxu0 %v3934_v3 }
 0x263   :  { %v491_v40 = vpop.permute.xlu0 %490 }
 0x264   :  { %v509_v41 = vsel %vm502_vm0, %v468_v39, %v491_v40  ;;  %v3525_v39 = vld [vmem:[#allocation5] sm:$0xff] }
 0x265   :  { %518 = vst.msk [vmem:[#allocation5 + $0x30] sm:$0xff] %vm511_vm1, %v509_v41  ;;  %3591 = vmatmul.mubr.msk.f32.gmra.mxu0 %vm511_vm1, %v509_v41 }
 0x266   :  { %689 = vmatprep.mubr.f32.mxu0 %v3934_v3 }
 0x267   :  { %v493_v43 = vpop.permute.xlu1 %492 }
 0x268   :  { %v510_v44 = vsel %vm502_vm0, %v469_v42, %v493_v43 }
 0x269   :  { %519 = vst.msk [vmem:[#allocation5 + $0x38] sm:$0xff] %vm511_vm1, %v510_v44  ;;  %3592 = vmatmul.mubr.msk.f32.gmra.mxu0 %vm511_vm1, %v510_v44 }
 0x26a   :  { %1462 = vmatprep.mubr.f32.mxu0 %v3934_v3 }
 0x30d   :  { %v649_v56 = vpop.f32.mrf.mxu0 }
 0x30e   :  { %v650_v58 = vadd.f32 %v649_v56, %v552_v53  ;;  %v857_v56 = vsel %vm856_vm5, 1, %v3937_v35 }
 0x30f   :  { %v651_v59 = vpop.f32.mrf.mxu0 }
 0x310   :  { %v4528_v60 = vadd.f32 %v651_v59, %v556_v55  ;;  %v804_v61 = vadd.f32 %v791_v45, %v650_v58 }
 0x311   :  { %v655_v62 = vpop.f32.mrf.mxu0 }
 0x312   :  { %v3593_v4 = vmul.f32 -1.442695, %v804_v61  ;;  %v4530_v5 = vadd.f32 %v655_v62, %v552_v53 }
 0x313   :  { %v657_v6 = vpop.f32.mrf.mxu0 }
 0x314   :  { %3675 = vpow2.f32 %v3593_v4  ;;  %v4532_v7 = vadd.f32 %v657_v6, %v556_v55 }
 0x315   :  { %v661_v8 = vpop.f32.mrf.mxu0  ;;  %3677 = vtanh.f32 %v804_v61 }
 0x316   :  { %v4534_v9 = vadd.f32 %v661_v8, %v552_v53 }
 0x317   :  { %v663_v11 = vpop.f32.mrf.mxu0 }
 0x318   :  { %v4536_v13 = vadd.f32 %v663_v11, %v556_v55 }
 0x319   :  { %v667_v14 = vpop.f32.mrf.mxu0 }
 0x31a   :  { %v4538_v16 = vadd.f32 %v667_v14, %v552_v53 }
 0x31b   :  { %v669_v20 = vpop.f32.mrf.mxu0 }
 0x31c   :  { %v4540_v22 = vadd.f32 %v669_v20, %v556_v55 }
 0x31d   :  { %v673_v23 = vpop.f32.mrf.mxu0 }
 0x31e   :  { %v4542_v24 = vadd.f32 %v673_v23, %v552_v53 }
 0x31f   :  { %v675_v25 = vpop.f32.mrf.mxu0 }
 0x320   :  { %v4544_v17 = vadd.f32 %v675_v25, %v556_v55 }
 0x321   :  { %v3676_v26 = vpop.eup %3675  ;;  %v679_v27 = vpop.f32.mrf.mxu0 }
 0x322   :  { %v812_v29 = vadd.f32 1.0, %v3676_v26  ;;  %v4546_v18 = vadd.f32 %v679_v27, %v552_v53  ;;  %v3678_v10 = vpop.eup %3677 }
 0x323   :  { %v681_v19 = vpop.f32.mrf.mxu0 }
 0x324   :  { %3679 = vrcp.f32 %v812_v29  ;;  %v4548_v30 = vadd.f32 %v681_v19, %v556_v55 }
 0x325   :  { %v685_v21 = vpop.f32.mrf.mxu0 }
 0x326   :  { %v4550_v31 = vadd.f32 %v685_v21, %v552_v53 }
 0x327   :  { %v687_v32 = vpop.f32.mrf.mxu0 }
 0x328   :  { %v4553_v54 = vadd.f32 %v687_v32, %v556_v55 }
 0x329   :  { %v691_v34 = vpop.f32.mrf.mxu0 }
 0x32a   :  { %v4557_v36 = vadd.f32 %v691_v34, %v552_v53 }
 0x32b   :  { %v693_v2 = vpop.f32.mrf.mxu0 }
 0x32c   :  { %v694_v37 = vadd.f32 %v693_v2, %v556_v55 }
 0x32e   :  { %v805_v38 = vadd.f32 %v799_v28, %v694_v37 }
 0x330   :  { %v3594_v40 = vmul.f32 -1.442695, %v805_v38 }
 0x331   :  { %v3680_v41 = vpop.eup %3679 }
 0x332   :  { %3681 = vpow2.f32 %v3594_v40  ;;  %v820_v42 = vsel %vm4559_vm4, %v3678_v10, %v3680_v41 }
 0x333   :  { %826 = vrot.lane.b32.xlu0 %v820_v42, %s3935_s2  ;;  %3683 = vtanh.f32 %v805_v38  ;;  %v822_v61 = vmul.f32 0.0, %v820_v42 }
 0x33f   :  { %v3682_v43 = vpop.eup %3681 }
 0x340   :  { %v813_v44 = vadd.f32 1.0, %v3682_v43  ;;  %v3684_v45 = vpop.eup %3683 }
 0x342   :  { %3685 = vrcp.f32 %v813_v44 }
 0x34f   :  { %v3686_v47 = vpop.eup %3685 }
 0x350   :  { %v821_v49 = vsel %vm4559_vm4, %v3684_v45, %v3686_v47 }
 0x351   :  { %828 = vrot.lane.b32.xlu1 %v821_v49, %s3935_s2  ;;  %v823_v8 = vmul.f32 0.0, %v821_v49 }
 0x3a5   :  { %v827_v53 = vpop.permute.xlu0 %826 }
 0x3a6   :  { %v832_v55 = vmul.f32 %v827_v53, %v820_v42 }
 0x3a8   :  { %836 = vrot.lane.b32.xlu0 %v832_v55, %s3936_s4 }
 0x3ac   :  { %862 = vperm.xlu0 %3673, %v857_v56  }
 0x3c3   :  { %v829_v58 = vpop.permute.xlu1 %828 }
 0x3c4   :  { %v833_v59 = vmul.f32 %v829_v58, %v821_v49  ;;  %v1029_v58 = vsel %vm1028_vm7, 1, %v3937_v35  ;;  %vm2030_vm7 = vcmp.gt.s32.totalorder %v4572_v52, 0 }
 0x3c6   :  { %838 = vrot.lane.b32.xlu1 %v833_v59, %s3936_s4 }
 0x41a   :  { %v837_v62 = vpop.permute.xlu0 %836 }
 0x41b   :  { %v4578_v4 = vadd.f32 %v837_v62, %v822_v61 }
 0x41d   :  { %3687 = vtanh.f32 %v4578_v4 }
 0x427   :  { %v4587_v26 = vpop.permute.xlu0 %862 }
 0x428   :  { %vm865_vm6 = vcmp.eq.s32.totalorder %v4587_v26, 1 }
 0x42a   :  { %v3688_v6 = vpop.eup %3687 }
 0x42b   :  { %848 = vrot.lane.b32.xlu1 %v3688_v6, %s3935_s2 }
 0x438   :  { %v839_v11 = vpop.permute.xlu1 %838 }
 0x439   :  { %v4582_v14 = vadd.f32 %v839_v11, %v823_v8 }
 0x43b   :  { %3689 = vtanh.f32 %v4582_v14 }
 0x448   :  { %v3690_v20 = vpop.eup %3689 }
 0x449   :  { %850 = vrot.lane.b32.xlu1 %v3690_v20, %s3935_s2  ;;  %v4629_v20 = vsel %vm865_vm6, %v4582_v14, 0.0 }
 0x49d   :  { %v849_v23 = vpop.permute.xlu1 %848 }
 0x49e   :  { %v854_v25 = vmul.f32 %v849_v23, %v820_v42 }
 0x4a0   :  { %871 = vrot.lane.b32.xlu0 %v854_v25, %s3936_s4 }
 0x4bb   :  { %v851_v27 = vpop.permute.xlu1 %850 }
 0x4bc   :  { %v855_v29 = vmul.f32 %v851_v27, %v821_v49 }
 0x4be   :  { %v4592_v19 = vsel %vm865_vm6, %v855_v29, 0.0 }
 0x4bf   :  { %891 = vrot.lane.b32.xlu1 %v4592_v19, %s3936_s4 }
 0x512   :  { %v872_v21 = vpop.permute.xlu0 %871 }
 0x513   :  { %874 = vst.msk [vmem:[#allocation3] sm:$0xff] %vm502_vm0, %v872_v21  ;;  %3595 = vmatmul.mubr.msk.f32.vlgmr.msra.gmra.mxu1 %vm502_vm0, %v872_v21 }
 0x514   :  { %967 = vmatprep.mubr.f32.mxu1 %v3934_v3  ;;  %1089 = vmatpush1.msra.mxu1 %v4361_v48 }
 0x515   :  { %1090 = vmatprep.subr.mxu1 %v4371_v50 }
 0x516   :  { %1091 = vmatpush1.msra.mxu1 %v4376_v51 }
 0x517   :  { %1092 = vmatprep.subr.mxu1 %v4391_v57 }
 0x518   :  { %1093 = vmatpush1.msra.mxu1 %v4416_v63 }
 0x519   :  { %1094 = vmatprep.subr.mxu1 %v4422_v0 }
 0x51a   :  { %1095 = vmatpush1.msra.mxu1 %v4428_v1 }
 0x51b   :  { %1255 = vmatprep.subr.mxu1 %v4352_v46 }
 0x531   :  { %v892_v32 = vpop.permute.xlu1 %891 }
 0x532   :  { %3596 = vmatmul.mubr.msk.f32.gmra.mxu1 %vm502_vm0, %v892_v32 }
 0x533   :  { %1128 = vmatprep.mubr.f32.mxu1 %v3934_v3 }
 0x5d3   :  { %v963_v33 = vpop.f32.mrf.mxu1 }
 0x5d4   :  { %v976_v34 = vadd.f32 %v963_v33, %v4530_v5 }
 0x5d5   :  { %v965_v2 = vpop.f32.mrf.mxu1 }
 0x5d6   :  { %v3597_v37 = vmul.f32 -1.442695, %v976_v34 }
 0x5d8   :  { %3691 = vpow2.f32 %v3597_v37 }
 0x5d9   :  { %3693 = vtanh.f32 %v976_v34 }
 0x5e5   :  { %v3692_v28 = vpop.eup %3691 }
 0x5e6   :  { %v984_v38 = vadd.f32 1.0, %v3692_v28  ;;  %v3694_v40 = vpop.eup %3693 }
 0x5e8   :  { %3695 = vrcp.f32 %v984_v38 }
 0x5f2   :  { %v969_v10 = vpop.f32.mrf.mxu1 }
 0x5f4   :  { %v971_v41 = vpop.f32.mrf.mxu1 }
 0x5f5   :  { %v3696_v42 = vpop.eup %3695  ;;  %v977_v43 = vadd.f32 %v971_v41, %v4553_v54 }
 0x5f6   :  { %v992_v44 = vsel %vm4559_vm4, %v3694_v40, %v3696_v42 }
 0x5f7   :  { %v3598_v45 = vmul.f32 -1.442695, %v977_v43  ;;  %998 = vrot.lane.b32.xlu0 %v992_v44, %s3935_s2  ;;  %v994_v62 = vmul.f32 %v992_v44, %v4578_v4 }
 0x5f9   :  { %3697 = vpow2.f32 %v3598_v45 }
 0x5fa   :  { %3699 = vtanh.f32 %v977_v43 }
 0x606   :  { %v3698_v5 = vpop.eup %3697 }
 0x607   :  { %v985_v47 = vadd.f32 1.0, %v3698_v5  ;;  %v3700_v49 = vpop.eup %3699 }
 0x609   :  { %3701 = vrcp.f32 %v985_v47 }
 0x616   :  { %v3702_v53 = vpop.eup %3701 }
 0x617   :  { %v993_v55 = vsel %vm4559_vm4, %v3700_v49, %v3702_v53 }
 0x618   :  { %1000 = vrot.lane.b32.xlu1 %v993_v55, %s3935_s2  ;;  %v995_v23 = vmul.f32 %v993_v55, %v4629_v20 }
 0x669   :  { %v999_v56 = vpop.permute.xlu0 %998 }
 0x66a   :  { %v1004_v54 = vmul.f32 %v999_v56, %v992_v44 }
 0x66c   :  { %1008 = vrot.lane.b32.xlu0 %v1004_v54, %s3936_s4 }
 0x670   :  { %1031 = vperm.xlu0 %3673, %v1029_v58  }
 0x68a   :  { %v1001_v59 = vpop.permute.xlu1 %1000 }
 0x68b   :  { %v1005_v61 = vmul.f32 %v1001_v59, %v993_v55 }
 0x68d   :  { %1010 = vrot.lane.b32.xlu1 %v1005_v61, %s3936_s4 }
 0x6de   :  { %v1009_v6 = vpop.permute.xlu0 %1008 }
 0x6df   :  { %v4622_v8 = vadd.f32 %v1009_v6, %v994_v62 }
 0x6e1   :  { %3703 = vtanh.f32 %v4622_v8 }
 0x6eb   :  { %v4637_v32 = vpop.permute.xlu0 %1031 }
 0x6ec   :  { %vm1033_vm8 = vcmp.eq.s32.totalorder %v4637_v32, 1 }
 0x6ee   :  { %v3704_v11 = vpop.eup %3703 }
 0x6ef   :  { %1020 = vrot.lane.b32.xlu1 %v3704_v11, %s3935_s2 }
 0x6ff   :  { %v1011_v25 = vpop.permute.xlu1 %1010 }
 0x700   :  { %v4632_v27 = vadd.f32 %v1011_v25, %v995_v23 }
 0x702   :  { %3705 = vtanh.f32 %v4632_v27 }
 0x70f   :  { %v3706_v4 = vpop.eup %3705 }
 0x710   :  { %1022 = vrot.lane.b32.xlu0 %v3706_v4, %s3935_s2  ;;  %v4681_v4 = vsel %vm1033_vm8, %v4632_v27, %v4629_v20 }
 0x761   :  { %v1021_v29 = vpop.permute.xlu1 %1020 }
 0x762   :  { %v1026_v21 = vmul.f32 %v1021_v29, %v992_v44 }
 0x764   :  { %1039 = vrot.lane.b32.xlu1 %v1026_v21, %s3936_s4 }
 0x782   :  { %v1023_v33 = vpop.permute.xlu0 %1022 }
 0x783   :  { %v1027_v34 = vmul.f32 %v1023_v33, %v993_v55 }
 0x785   :  { %v4643_v14 = vsel %vm1033_vm8, %v1027_v34, %v4592_v19 }
 0x786   :  { %1058 = vrot.lane.b32.xlu0 %v4643_v14, %s3936_s4 }
 0x7d6   :  { %v1040_v2 = vpop.permute.xlu1 %1039 }
 0x7d7   :  { %1042 = vst.msk [vmem:[#allocation3 + $0x8] sm:$0xff] %vm502_vm0, %v1040_v2  ;;  %3599 = vmatmul.mubr.msk.f32.vlgmr.msra.gmra.mxu1 %vm502_vm0, %v1040_v2 }
 0x7d8   :  { %1134 = vmatprep.mubr.f32.mxu1 %v3934_v3  ;;  %1256 = vmatpush1.msra.mxu1 %v4361_v48 }
 0x7d9   :  { %1257 = vmatprep.subr.mxu1 %v4371_v50 }
 0x7da   :  { %1258 = vmatpush1.msra.mxu1 %v4376_v51 }
 0x7db   :  { %1259 = vmatprep.subr.mxu1 %v4391_v57 }
 0x7dc   :  { %1260 = vmatpush1.msra.mxu1 %v4416_v63 }
 0x7dd   :  { %1261 = vmatprep.subr.mxu1 %v4422_v0 }
 0x7de   :  { %1262 = vmatpush1.msra.mxu1 %v4428_v1 }
 0x7df   :  { %1589 = vmatprep.subr.mxu1 %v4352_v46 }
 0x7f8   :  { %v1059_v37 = vpop.permute.xlu0 %1058 }
 0x7f9   :  { %3600 = vmatmul.mubr.msk.f32.gmra.mxu1 %vm502_vm0, %v1059_v37 }
 0x7fa   :  { %1295 = vmatprep.mubr.f32.mxu1 %v3934_v3 }
 0x897   :  { %v1130_v28 = vpop.f32.mrf.mxu1 }
 0x898   :  { %v1143_v38 = vadd.f32 %v1130_v28, %v4534_v9 }
 0x899   :  { %v1132_v10 = vpop.f32.mrf.mxu1 }
 0x89a   :  { %v3601_v40 = vmul.f32 -1.442695, %v1143_v38 }
 0x89c   :  { %3707 = vpow2.f32 %v3601_v40 }
 0x89d   :  { %3709 = vtanh.f32 %v1143_v38 }
 0x8a9   :  { %v3708_v41 = vpop.eup %3707 }
 0x8aa   :  { %v1151_v42 = vadd.f32 1.0, %v3708_v41  ;;  %v3710_v43 = vpop.eup %3709 }
 0x8ac   :  { %3711 = vrcp.f32 %v1151_v42 }
 0x8b9   :  { %v3712_v44 = vpop.eup %3711  ;;  %v1136_v45 = vpop.f32.mrf.mxu1 }
 0x8ba   :  { %v1159_v46 = vsel %vm4559_vm4, %v3710_v43, %v3712_v44 }
 0x8bb   :  { %1165 = vrot.lane.b32.xlu1 %v1159_v46, %s3935_s2  ;;  %v1138_v5 = vpop.f32.mrf.mxu1  ;;  %v1161_v6 = vmul.f32 %v1159_v46, %v4622_v8 }
 0x8bc   :  { %v1144_v47 = vadd.f32 %v1138_v5, %v4548_v30  ;;  %v1196_v30 = vsel %vm1195_vm9, 1, %v3937_v35  ;;  %vm879_vm9 = vcmask 523520  }
 0x8be   :  { %v3602_v49 = vmul.f32 -1.442695, %v1144_v47 }
 0x8c0   :  { %3713 = vpow2.f32 %v3602_v49 }
 0x8c1   :  { %3715 = vtanh.f32 %v1144_v47 }
 0x8cd   :  { %v3714_v9 = vpop.eup %3713 }
 0x8ce   :  { %v1152_v53 = vadd.f32 1.0, %v3714_v9  ;;  %v3716_v55 = vpop.eup %3715 }
 0x8d0   :  { %3717 = vrcp.f32 %v1152_v53 }
 0x8dd   :  { %v3718_v56 = vpop.eup %3717 }
 0x8de   :  { %v1160_v54 = vsel %vm4559_vm4, %v3716_v55, %v3718_v56 }
 0x8df   :  { %1167 = vrot.lane.b32.xlu0 %v1160_v54, %s3935_s2  ;;  %v1162_v29 = vmul.f32 %v1160_v54, %v4681_v4 }
 0x92d   :  { %v1166_v58 = vpop.permute.xlu1 %1165 }
 0x92e   :  { %v1171_v59 = vmul.f32 %v1166_v58, %v1159_v46 }
 0x930   :  { %1175 = vrot.lane.b32.xlu1 %v1171_v59, %s3936_s4 }
 0x934   :  { %1198 = vperm.xlu1 %3674, %v1196_v30  }
 0x951   :  { %v1168_v61 = vpop.permute.xlu0 %1167 }
 0x952   :  { %v1172_v62 = vmul.f32 %v1168_v61, %v1160_v54 }
 0x954   :  { %1177 = vrot.lane.b32.xlu0 %v1172_v62, %s3936_s4 }
 0x9a2   :  { %v1176_v11 = vpop.permute.xlu1 %1175 }
 0x9a3   :  { %v4673_v23 = vadd.f32 %v1176_v11, %v1161_v6 }
 0x9a5   :  { %3719 = vtanh.f32 %v4673_v23 }
 0x9af   :  { %v4689_v37 = vpop.permute.xlu1 %1198 }
 0x9b0   :  { %vm1200_vm10 = vcmp.eq.s32.totalorder %v4689_v37, 1 }
 0x9b2   :  { %v3720_v25 = vpop.eup %3719 }
 0x9b3   :  { %1187 = vrot.lane.b32.xlu0 %v3720_v25, %s3935_s2 }
 0x9c6   :  { %v1178_v21 = vpop.permute.xlu0 %1177 }
 0x9c7   :  { %v4684_v33 = vadd.f32 %v1178_v21, %v1162_v29 }
 0x9c9   :  { %3721 = vtanh.f32 %v4684_v33  ;;  %v4729_v61 = vsel %vm1200_vm10, %v4684_v33, %v4681_v4 }
 0x9d6   :  { %v3722_v8 = vpop.eup %3721 }
 0x9d7   :  { %1189 = vrot.lane.b32.xlu1 %v3722_v8, %s3935_s2 }
 0xa25   :  { %v1188_v34 = vpop.permute.xlu0 %1187 }
 0xa26   :  { %v1193_v2 = vmul.f32 %v1188_v34, %v1159_v46 }
 0xa28   :  { %1206 = vrot.lane.b32.xlu0 %v1193_v2, %s3936_s4 }
 0xa49   :  { %v1190_v28 = vpop.permute.xlu1 %1189 }
 0xa4a   :  { %v1194_v38 = vmul.f32 %v1190_v28, %v1160_v54 }
 0xa4c   :  { %v4695_v20 = vsel %vm1200_vm10, %v1194_v38, %v4643_v14 }
 0xa4d   :  { %1225 = vrot.lane.b32.xlu1 %v4695_v20, %s3936_s4 }
 0xa9a   :  { %v1207_v27 = vpop.permute.xlu0 %1206 }
 0xa9b   :  { %1209 = vst.msk [vmem:[#allocation3 + $0x10] sm:$0xff] %vm502_vm0, %v1207_v27  ;;  %3603 = vmatmul.mubr.msk.f32.vlgmr.msra.gmra.mxu1 %vm502_vm0, %v1207_v27 }
 0xa9c   :  { %1301 = vmatprep.mubr.f32.mxu1 %v3934_v3  ;;  %1590 = vmatpush1.msra.mxu1 %v4361_v48 }
 0xa9d   :  { %1591 = vmatprep.subr.mxu1 %v4371_v50 }
 0xa9e   :  { %1592 = vmatpush1.msra.mxu1 %v4376_v51 }
 0xa9f   :  { %1593 = vmatprep.subr.mxu1 %v4391_v57 }
 0xaa0   :  { %1594 = vmatpush1.msra.mxu1 %v4416_v63 }
 0xaa1   :  { %1595 = vmatprep.subr.mxu1 %v4422_v0 }
 0xaa2   :  { %1596 = vmatpush1.msra.mxu1 %v4428_v1 }
 0xabf   :  { %v1226_v10 = vpop.permute.xlu1 %1225 }
 0xac0   :  { %3604 = vmatmul.mubr.msk.f32.gmra.mxu1 %vm502_vm0, %v1226_v10 }
 0xac1   :  { %1629 = vmatprep.mubr.f32.mxu1 %v3934_v3 }
 0xb5b   :  { %v1297_v40 = vpop.f32.mrf.mxu1 }
 0xb5c   :  { %v1310_v48 = vadd.f32 %v1297_v40, %v4538_v16 }
 0xb5d   :  { %v1299_v41 = vpop.f32.mrf.mxu1 }
 0xb5e   :  { %v3605_v50 = vmul.f32 -1.442695, %v1310_v48 }
 0xb60   :  { %3723 = vpow2.f32 %v3605_v50 }
 0xb61   :  { %3725 = vtanh.f32 %v1310_v48 }
 0xb6d   :  { %v3724_v51 = vpop.eup %3723 }
 0xb6e   :  { %v1318_v42 = vadd.f32 1.0, %v3724_v51  ;;  %v3726_v57 = vpop.eup %3725 }
 0xb70   :  { %3727 = vrcp.f32 %v1318_v42 }
 0xb7d   :  { %v3728_v63 = vpop.eup %3727 }
 0xb7e   :  { %v1326_v0 = vsel %vm4559_vm4, %v3726_v57, %v3728_v63 }
 0xb7f   :  { %1332 = vrot.lane.b32.xlu0 %v1326_v0, %s3935_s2  ;;  %v1328_v54 = vmul.f32 %v1326_v0, %v4673_v23 }
 0xb80   :  { %v1303_v1 = vpop.f32.mrf.mxu1 }
 0xb82   :  { %v1305_v43 = vpop.f32.mrf.mxu1 }
 0xb83   :  { %v1311_v44 = vadd.f32 %v1305_v43, %v4544_v17  ;;  %v1363_v17 = vsel %vm1362_vm11, 1, %v3937_v35 }
 0xb85   :  { %v3606_v45 = vmul.f32 -1.442695, %v1311_v44 }
 0xb87   :  { %3729 = vpow2.f32 %v3606_v45 }
 0xb88   :  { %3731 = vtanh.f32 %v1311_v44 }
 0xb94   :  { %v3730_v16 = vpop.eup %3729 }
 0xb95   :  { %v1319_v46 = vadd.f32 1.0, %v3730_v16  ;;  %v3732_v5 = vpop.eup %3731 }
 0xb97   :  { %3733 = vrcp.f32 %v1319_v46 }
 0xba4   :  { %v3734_v47 = vpop.eup %3733 }
 0xba5   :  { %v1327_v49 = vsel %vm4559_vm4, %v3732_v5, %v3734_v47 }
 0xba6   :  { %1334 = vrot.lane.b32.xlu1 %v1327_v49, %s3935_s2  ;;  %v1329_v62 = vmul.f32 %v1327_v49, %v4729_v61 }
 0xbf1   :  { %v1333_v9 = vpop.permute.xlu0 %1332 }
 0xbf2   :  { %v1338_v53 = vmul.f32 %v1333_v9, %v1326_v0 }
 0xbf4   :  { %1342 = vrot.lane.b32.xlu0 %v1338_v53, %s3936_s4 }
 0xbf8   :  { %1365 = vperm.xlu0 %3673, %v1363_v17  }
 0xc18   :  { %v1335_v55 = vpop.permute.xlu1 %1334 }
 0xc19   :  { %v1339_v56 = vmul.f32 %v1335_v55, %v1327_v49 }
 0xc1b   :  { %1344 = vrot.lane.b32.xlu1 %v1339_v56, %s3936_s4 }
 0xc66   :  { %v1343_v58 = vpop.permute.xlu0 %1342 }
 0xc67   :  { %v1348_v59 = vadd.f32 %v1343_v58, %v1328_v54 }
 0xc69   :  { %3735 = vtanh.f32 %v1348_v59 }
 0xc73   :  { %v4734_v21 = vpop.permute.xlu0 %1365 }
 0xc74   :  { %vm1367_vm12 = vcmp.eq.s32.totalorder %v4734_v21, 1 }
 0xc76   :  { %v3736_v30 = vpop.eup %3735 }
 0xc77   :  { %1354 = vrot.lane.b32.xlu1 %v3736_v30, %s3935_s2 }
 0xc8d   :  { %v1345_v6 = vpop.permute.xlu1 %1344 }
 0xc8e   :  { %v1349_v11 = vadd.f32 %v1345_v6, %v1329_v62 }
 0xc90   :  { %3737 = vtanh.f32 %v1349_v11  ;;  %v4765_v55 = vsel %vm1367_vm12, %v1349_v11, %v4729_v61 }
 0xc9d   :  { %v3738_v25 = vpop.eup %3737 }
 0xc9e   :  { %1356 = vrot.lane.b32.xlu0 %v3738_v25, %s3935_s2 }
 0xce9   :  { %v1355_v23 = vpop.permute.xlu1 %1354 }
 0xcea   :  { %v1360_v29 = vmul.f32 %v1355_v23, %v1326_v0 }
 0xcec   :  { %1373 = vrot.lane.b32.xlu1 %v1360_v29, %s3936_s4 }
 0xd10   :  { %v1357_v8 = vpop.permute.xlu0 %1356 }
 0xd11   :  { %v1361_v34 = vmul.f32 %v1357_v8, %v1327_v49 }
 0xd13   :  { %v4740_v4 = vsel %vm1367_vm12, %v1361_v34, %v4695_v20 }
 0xd14   :  { %1392 = vrot.lane.b32.xlu0 %v4740_v4, %s3936_s4 }
 0xd5e   :  { %v1374_v33 = vpop.permute.xlu1 %1373 }
 0xd5f   :  { %1376 = vst.msk [vmem:[#allocation3 + $0x18] sm:$0xff] %vm502_vm0, %v1374_v33  ;;  %3607 = vmatmul.mubr.msk.f32.vlgmr.msra.gmra.mxu0 %vm502_vm0, %v1374_v33 }
 0xd60   :  { %1468 = vmatprep.mubr.f32.mxu0 %v3934_v3 }
 0xd86   :  { %v1393_v2 = vpop.permute.xlu0 %1392 }
 0xd87   :  { %3608 = vmatmul.mubr.msk.f32.gmra.mxu0 %vm502_vm0, %v1393_v2 }
 0xd88   :  { %1796 = vmatprep.mubr.f32.mxu0 %v3934_v3 }
 0xe1f   :  { %v1464_v28 = vpop.f32.mrf.mxu0 }
 0xe20   :  { %v1477_v38 = vadd.f32 %v1464_v28, %v4542_v24 }
 0xe21   :  { %v1466_v27 = vpop.f32.mrf.mxu0 }
 0xe22   :  { %v3609_v10 = vmul.f32 -1.442695, %v1477_v38 }
 0xe24   :  { %3739 = vpow2.f32 %v3609_v10 }
 0xe25   :  { %3741 = vtanh.f32 %v1477_v38 }
 0xe31   :  { %v3740_v40 = vpop.eup %3739 }
 0xe32   :  { %v1485_v48 = vadd.f32 1.0, %v3740_v40  ;;  %v3742_v41 = vpop.eup %3741 }
 0xe34   :  { %3743 = vrcp.f32 %v1485_v48 }
 0xe41   :  { %v3744_v50 = vpop.eup %3743 }
 0xe42   :  { %v1493_v51 = vsel %vm4559_vm4, %v3742_v41, %v3744_v50 }
 0xe43   :  { %1499 = vrot.lane.b32.xlu1 %v1493_v51, %s3935_s2  ;;  %v1495_v49 = vmul.f32 %v1493_v51, %v1348_v59 }
 0xe47   :  { %v1470_v42 = vpop.f32.mrf.mxu0 }
 0xe49   :  { %v1472_v57 = vpop.f32.mrf.mxu0 }
 0xe4a   :  { %v1478_v63 = vadd.f32 %v1472_v57, %v4540_v22  ;;  %v1530_v22 = vsel %vm1529_vm13, 1, %v3937_v35 }
 0xe4c   :  { %v3610_v0 = vmul.f32 -1.442695, %v1478_v63 }
 0xe4e   :  { %3745 = vpow2.f32 %v3610_v0 }
 0xe4f   :  { %3747 = vtanh.f32 %v1478_v63 }
 0xe5b   :  { %v3746_v24 = vpop.eup %3745 }
 0xe5c   :  { %v1486_v1 = vadd.f32 1.0, %v3746_v24  ;;  %v3748_v43 = vpop.eup %3747 }
 0xe5e   :  { %3749 = vrcp.f32 %v1486_v1 }
 0xe6b   :  { %v3750_v44 = vpop.eup %3749 }
 0xe6c   :  { %v1494_v45 = vsel %vm4559_vm4, %v3748_v43, %v3750_v44 }
 0xe6d   :  { %1501 = vrot.lane.b32.xlu0 %v1494_v45, %s3935_s2  ;;  %v1496_v56 = vmul.f32 %v1494_v45, %v4765_v55 }
 0xeb5   :  { %v1500_v16 = vpop.permute.xlu1 %1499 }
 0xeb6   :  { %v1505_v46 = vmul.f32 %v1500_v16, %v1493_v51 }
 0xeb8   :  { %1509 = vrot.lane.b32.xlu1 %v1505_v46, %s3936_s4 }
 0xebc   :  { %1532 = vperm.xlu1 %3674, %v1530_v22  }
 0xedf   :  { %v1502_v5 = vpop.permute.xlu0 %1501 }
 0xee0   :  { %v1506_v47 = vmul.f32 %v1502_v5, %v1494_v45 }
 0xee2   :  { %1511 = vrot.lane.b32.xlu0 %v1506_v47, %s3936_s4 }
 0xf2a   :  { %v1510_v9 = vpop.permute.xlu1 %1509 }
 0xf2b   :  { %v1515_v53 = vadd.f32 %v1510_v9, %v1495_v49 }
 0xf2d   :  { %3751 = vtanh.f32 %v1515_v53 }
 0xf37   :  { %v4770_v6 = vpop.permute.xlu1 %1532 }
 0xf38   :  { %vm1534_vm14 = vcmp.eq.s32.totalorder %v4770_v6, 1 }
 0xf3a   :  { %v3752_v17 = vpop.eup %3751 }
 0xf3b   :  { %1521 = vrot.lane.b32.xlu0 %v3752_v17, %s3935_s2  ;;  %v1724_v17 = vld [vmem:[%s5538_s7 + $0x30] sm:$0xff] }
 0xf54   :  { %v1512_v54 = vpop.permute.xlu0 %1511 }
 0xf55   :  { %v1516_v58 = vadd.f32 %v1512_v54, %v1496_v56  ;;  %v1722_v56 = vld [vmem:[%s5538_s7 + $0x20] sm:$0xff]  ;;  %v1721_v54 = vld [vmem:[%s5538_s7 + $0x18] sm:$0xff] }
 0xf57   :  { %3753 = vtanh.f32 %v1516_v58  ;;  %v4806_v5 = vsel %vm1534_vm14, %v1516_v58, %v4765_v55  ;;  %v1723_v55 = vld [vmem:[%s5538_s7 + $0x28] sm:$0xff]  ;;  %v3931_v58 = vld [vmem:[%s5538_s7 + $0x10] sm:$0xff] }
 0xf64   :  { %v3754_v30 = vpop.eup %3753 }
 0xf65   :  { %1523 = vrot.lane.b32.xlu1 %v3754_v30, %s3935_s2  ;;  %v3932_v30 = vld [vmem:[%s5538_s7 + $0x8] sm:$0xff] }
 0xfad   :  { %v1522_v59 = vpop.permute.xlu0 %1521 }
 0xfae   :  { %v1527_v62 = vmul.f32 %v1522_v59, %v1493_v51  ;;  %v3933_v59 = vld [vmem:[%s5538_s7] sm:$0xff] }
 0xfb0   :  { %1540 = vrot.lane.b32.xlu0 %v1527_v62, %s3936_s4 }
 0xfd7   :  { %v1524_v25 = vpop.permute.xlu1 %1523 }
 0xfd8   :  { %v1528_v23 = vmul.f32 %v1524_v25, %v1494_v45 }
 0xfda   :  { %v4776_v61 = vsel %vm1534_vm14, %v1528_v23, %v4740_v4 }
 0xfdb   :  { %1559 = vrot.lane.b32.xlu1 %v4776_v61, %s3936_s4 }
0x1022   :  { %v4780_v11 = vpop.permute.xlu0 %1540 }
0x1023   :  { %3611 = vmatmul.mubr.msk.f32.vlgmr.msra.gmra.mxu1 %vm502_vm0, %v4780_v11 }
0x1024   :  { %1635 = vmatprep.mubr.f32.mxu1 %v3934_v3 }
0x104d   :  { %v1560_v29 = vpop.permute.xlu1 %1559 }
0x104e   :  { %3612 = vmatmul.mubr.msk.f32.gmra.mxu1 %vm502_vm0, %v1560_v29 }
0x104f   :  { %1963 = vmatprep.mubr.f32.mxu1 %v3934_v3 }
0x10e3   :  { %v1631_v8 = vpop.f32.mrf.mxu1 }
0x10e4   :  { %v1644_v34 = vadd.f32 %v1631_v8, %v4546_v18 }
0x10e5   :  { %v1633_v33 = vpop.f32.mrf.mxu1 }
0x10e6   :  { %v3613_v2 = vmul.f32 -1.442695, %v1644_v34 }
0x10e8   :  { %3755 = vpow2.f32 %v3613_v2 }
0x10e9   :  { %3757 = vtanh.f32 %v1644_v34 }
0x10f5   :  { %v3756_v28 = vpop.eup %3755 }
0x10f6   :  { %v1652_v38 = vadd.f32 1.0, %v3756_v28  ;;  %v3758_v27 = vpop.eup %3757 }
0x10f8   :  { %3759 = vrcp.f32 %v1652_v38 }
0x1105   :  { %v3760_v10 = vpop.eup %3759 }
0x1106   :  { %v1660_v40 = vsel %vm4559_vm4, %v3758_v27, %v3760_v10 }
0x1107   :  { %1666 = vrot.lane.b32.xlu0 %v1660_v40, %s3935_s2  ;;  %v1662_v45 = vmul.f32 %v1660_v40, %v1515_v53  ;;  %v1725_v53 = vld [vmem:[%s5538_s7 + $0x38] sm:$0xff] }
0x1108   :  { %1756 = vmatprep.subr.mxu0 %v1725_v53  ;;  %1923 = vmatprep.subr.mxu1 %v1725_v53 }
0x1109   :  { %1757 = vmatpush1.msra.mxu0 %v1724_v17  ;;  %1924 = vmatpush1.msra.mxu1 %v1724_v17 }
0x110a   :  { %1758 = vmatprep.subr.mxu0 %v1723_v55  ;;  %1925 = vmatprep.subr.mxu1 %v1723_v55 }
0x110b   :  { %1759 = vmatpush1.msra.mxu0 %v1722_v56  ;;  %1926 = vmatpush1.msra.mxu1 %v1722_v56 }
0x110c   :  { %1760 = vmatprep.subr.mxu0 %v1721_v54  ;;  %1927 = vmatprep.subr.mxu1 %v1721_v54 }
0x110d   :  { %1761 = vmatpush1.msra.mxu0 %v3931_v58 }
0x110e   :  { %v1637_v48 = vpop.f32.mrf.mxu1  ;;  %1762 = vmatprep.subr.mxu0 %v3932_v30  ;;  %v1886_v30 = vld [vmem:[%s5538_s7 + $0x8] sm:$0xff] }
0x110f   :  { %1763 = vmatpush1.msra.mxu0 %v3933_v59 }
0x1110   :  { %v1639_v41 = vpop.f32.mrf.mxu1 }
0x1111   :  { %v1645_v50 = vadd.f32 %v1639_v41, %v4536_v13  ;;  %v1697_v13 = vsel %vm1696_vm15, 1, %v3937_v35 }
0x1113   :  { %v3614_v51 = vmul.f32 -1.442695, %v1645_v50 }
0x1115   :  { %3761 = vpow2.f32 %v3614_v51 }
0x1116   :  { %3763 = vtanh.f32 %v1645_v50 }
0x1122   :  { %v3762_v18 = vpop.eup %3761 }
0x1123   :  { %v1653_v42 = vadd.f32 1.0, %v3762_v18  ;;  %v3764_v57 = vpop.eup %3763 }
0x1125   :  { %3765 = vrcp.f32 %v1653_v42 }
0x1132   :  { %v3766_v63 = vpop.eup %3765 }
0x1133   :  { %v1661_v0 = vsel %vm4559_vm4, %v3764_v57, %v3766_v63 }
0x1134   :  { %1668 = vrot.lane.b32.xlu1 %v1661_v0, %s3935_s2  ;;  %v1663_v47 = vmul.f32 %v1661_v0, %v4806_v5 }
0x1179   :  { %v1667_v24 = vpop.permute.xlu0 %1666 }
0x117a   :  { %v1672_v1 = vmul.f32 %v1667_v24, %v1660_v40 }
0x117c   :  { %1676 = vrot.lane.b32.xlu0 %v1672_v1, %s3936_s4 }
0x1180   :  { %1699 = vperm.xlu0 %3673, %v1697_v13  }
0x11a6   :  { %v1669_v43 = vpop.permute.xlu1 %1668 }
0x11a7   :  { %v1673_v44 = vmul.f32 %v1669_v43, %v1661_v0 }
0x11a9   :  { %1678 = vrot.lane.b32.xlu1 %v1673_v44, %s3936_s4 }
0x11ee   :  { %v1677_v16 = vpop.permute.xlu0 %1676 }
0x11ef   :  { %v4799_v46 = vadd.f32 %v1677_v16, %v1662_v45 }
0x11f1   :  { %3767 = vtanh.f32 %v4799_v46 }
0x11fb   :  { %v4838_v29 = vpop.permute.xlu0 %1699 }
0x11fc   :  { %vm1701_vm2 = vcmp.eq.s32.totalorder %v4838_v29, 1  ;;  %v3365_v29 = vld [vmem:[%s5543_s10 + $0x28] sm:$0xff] }
0x11fe   :  { %v3768_v22 = vpop.eup %3767 }
0x11ff   :  { %1688 = vrot.lane.b32.xlu1 %v3768_v22, %s3935_s2 }
0x121b   :  { %v1679_v49 = vpop.permute.xlu1 %1678 }
0x121c   :  { %v4809_v9 = vadd.f32 %v1679_v49, %v1663_v47 }
0x121e   :  { %3769 = vtanh.f32 %v4809_v9  ;;  %v4876_v55 = vsel %vm1701_vm2, %v4809_v9, %v4806_v5  ;;  %v1885_v5 = vld [vmem:[%s5538_s7] sm:$0xff] }
0x122b   :  { %v3770_v62 = vpop.eup %3769 }
0x122c   :  { %1690 = vrot.lane.b32.xlu0 %v3770_v62, %s3935_s2 }
0x1271   :  { %v1689_v25 = vpop.permute.xlu1 %1688 }
0x1272   :  { %v1694_v23 = vmul.f32 %v1689_v25, %v1660_v40 }
0x1274   :  { %1707 = vrot.lane.b32.xlu1 %v1694_v23, %s3936_s4 }
0x129e   :  { %v1691_v8 = vpop.permute.xlu0 %1690 }
0x129f   :  { %v1695_v34 = vmul.f32 %v1691_v8, %v1661_v0 }
0x12a1   :  { %v4844_v33 = vsel %vm1701_vm2, %v1695_v34, %v4776_v61 }
0x12a2   :  { %1726 = vrot.lane.b32.xlu0 %v4844_v33, %s3936_s4 }
0x12e6   :  { %v4848_v2 = vpop.permute.xlu1 %1707 }
0x12e7   :  { %3615 = vmatmul.mubr.msk.f32.vlgmr.msra.gmra.mxu0 %vm502_vm0, %v4848_v2 }
0x12e8   :  { %1802 = vmatprep.mubr.f32.mxu0 %v3934_v3 }
0x1314   :  { %v1727_v28 = vpop.permute.xlu0 %1726 }
0x1315   :  { %3616 = vmatmul.mubr.msk.f32.gmra.mxu0 %vm502_vm0, %v1727_v28 }
0x1316   :  { %2172 = vmatprep.mubr.f32.mxu0 %v3934_v3 }
0x13a7   :  { %v1798_v38 = vpop.f32.mrf.mxu0 }
0x13a8   :  { %v1811_v27 = vadd.f32 %v1798_v38, %v4550_v31 }
0x13a9   :  { %v1800_v10 = vpop.f32.mrf.mxu0 }
0x13aa   :  { %v3617_v40 = vmul.f32 -1.442695, %v1811_v27 }
0x13ac   :  { %3771 = vpow2.f32 %v3617_v40 }
0x13ad   :  { %3773 = vtanh.f32 %v1811_v27 }
0x13b9   :  { %v3772_v48 = vpop.eup %3771 }
0x13ba   :  { %v1819_v41 = vadd.f32 1.0, %v3772_v48  ;;  %v3774_v50 = vpop.eup %3773 }
0x13bc   :  { %3775 = vrcp.f32 %v1819_v41 }
0x13c9   :  { %v3776_v51 = vpop.eup %3775 }
0x13ca   :  { %v1827_v18 = vsel %vm4559_vm4, %v3774_v50, %v3776_v51 }
0x13cb   :  { %1833 = vrot.lane.b32.xlu1 %v1827_v18, %s3935_s2  ;;  %v1829_v47 = vmul.f32 %v1827_v18, %v4799_v46  ;;  %v1887_v46 = vld [vmem:[%s5538_s7 + $0x10] sm:$0xff] }
0x13cc   :  { %1928 = vmatpush1.msra.mxu1 %v1887_v46  ;;  %v2066_v46 = vld [vmem:[%s5542_s8 + $0x50] sm:$0xff] }
0x13cd   :  { %1929 = vmatprep.subr.mxu1 %v1886_v30  ;;  %v2065_v30 = vld [vmem:[%s5542_s8 + $0x48] sm:$0xff] }
0x13ce   :  { %1930 = vmatpush1.msra.mxu1 %v1885_v5  ;;  %v2064_v5 = vld [vmem:[%s5542_s8 + $0x40] sm:$0xff] }
0x13d5   :  { %v1804_v42 = vpop.f32.mrf.mxu0 }
0x13d7   :  { %v1806_v57 = vpop.f32.mrf.mxu0 }
0x13d8   :  { %v1812_v63 = vadd.f32 %v1806_v57, %v4532_v7  ;;  %v1864_v7 = vsel %vm1863_vm3, 1, %v3937_v35 }
0x13da   :  { %v3618_v0 = vmul.f32 -1.442695, %v1812_v63 }
0x13dc   :  { %3777 = vpow2.f32 %v3618_v0 }
0x13dd   :  { %3779 = vtanh.f32 %v1812_v63 }
0x13e9   :  { %v3778_v31 = vpop.eup %3777 }
0x13ea   :  { %v1820_v24 = vadd.f32 1.0, %v3778_v31  ;;  %v3780_v1 = vpop.eup %3779 }
0x13ec   :  { %3781 = vrcp.f32 %v1820_v24 }
0x13f9   :  { %v3782_v13 = vpop.eup %3781 }
0x13fa   :  { %v1828_v43 = vsel %vm4559_vm4, %v3780_v1, %v3782_v13 }
0x13fb   :  { %1835 = vrot.lane.b32.xlu0 %v1828_v43, %s3935_s2  ;;  %v1830_v56 = vmul.f32 %v1828_v43, %v4876_v55 }
0x143d   :  { %v1834_v44 = vpop.permute.xlu1 %1833 }
0x143e   :  { %v1839_v45 = vmul.f32 %v1834_v44, %v1827_v18 }
0x1440   :  { %1843 = vrot.lane.b32.xlu1 %v1839_v45, %s3936_s4 }
0x1444   :  { %1866 = vperm.xlu1 %3674, %v1864_v7  }
0x146d   :  { %v1836_v16 = vpop.permute.xlu0 %1835 }
0x146e   :  { %v1840_v22 = vmul.f32 %v1836_v16, %v1828_v43  ;;  %v2031_v16 = vsel %vm2030_vm7, 1, %v3937_v35 }
0x1470   :  { %1845 = vrot.lane.b32.xlu0 %v1840_v22, %s3936_s4 }
0x14b2   :  { %v1844_v49 = vpop.permute.xlu1 %1843 }
0x14b3   :  { %v4868_v53 = vadd.f32 %v1844_v49, %v1829_v47 }
0x14b5   :  { %3783 = vtanh.f32 %v4868_v53 }
0x14bf   :  { %v4893_v25 = vpop.permute.xlu1 %1866 }
0x14c0   :  { %vm1868_vm5 = vcmp.eq.s32.totalorder %v4893_v25, 1  ;;  %v3526_v25 = vld [vmem:[#allocation5 + $0x8] sm:$0xff] }
0x14c2   :  { %v3784_v17 = vpop.eup %3783 }
0x14c3   :  { %1855 = vrot.lane.b32.xlu0 %v3784_v17, %s3935_s2 }
0x14e2   :  { %v1846_v54 = vpop.permute.xlu0 %1845 }
0x14e3   :  { %v4879_v58 = vadd.f32 %v1846_v54, %v1830_v56 }
0x14e5   :  { %3785 = vtanh.f32 %v4879_v58  ;;  %v1870_v35 = vsel %vm1868_vm5, %v4879_v58, %v4876_v55  ;;  %v2068_v55 = vld [vmem:[%s5542_s8 + $0x60] sm:$0xff]  ;;  %v2067_v58 = vld [vmem:[%s5542_s8 + $0x58] sm:$0xff] }
0x14f2   :  { %v3786_v9 = vpop.eup %3785 }
0x14f3   :  { %1857 = vrot.lane.b32.xlu1 %v3786_v9, %s3935_s2 }
0x1535   :  { %v1856_v59 = vpop.permute.xlu0 %1855 }
0x1536   :  { %v1861_v62 = vmul.f32 %v1856_v59, %v1827_v18 }
0x1538   :  { %1874 = vrot.lane.b32.xlu0 %v1861_v62, %s3936_s4 }
0x1565   :  { %v1858_v23 = vpop.permute.xlu1 %1857 }
0x1566   :  { %v1862_v8 = vmul.f32 %v1858_v23, %v1828_v43 }
0x1568   :  { %v4899_v34 = vsel %vm1868_vm5, %v1862_v8, %v4844_v33 }
0x1569   :  { %1893 = vrot.lane.b32.xlu1 %v4899_v34, %s3936_s4 }
0x15aa   :  { %v4903_v28 = vpop.permute.xlu0 %1874 }
0x15ab   :  { %3619 = vmatmul.mubr.msk.f32.vlgmr.msra.gmra.mxu1 %vm502_vm0, %v4903_v28 }
0x15ac   :  { %1969 = vmatprep.mubr.f32.mxu1 %v3934_v3 }
0x15db   :  { %v1894_v38 = vpop.permute.xlu1 %1893 }
0x15dc   :  { %3620 = vmatmul.mubr.msk.f32.gmra.mxu1 %vm502_vm0, %v1894_v38 }
0x15dd   :  { %2311 = vmatprep.mubr.f32.mxu1 %v3934_v3 }
0x166b   :  { %v1965_v27 = vpop.f32.mrf.mxu1 }
0x166c   :  { %v1978_v10 = vadd.f32 %v1965_v27, %v4557_v36  ;;  %v2063_v27 = vld [vmem:[%s5542_s8 + $0x38] sm:$0xff] }
0x166d   :  { %v1967_v40 = vpop.f32.mrf.mxu1 }
0x166e   :  { %v3621_v48 = vmul.f32 -1.442695, %v1978_v10  ;;  %v2061_v40 = vld [vmem:[%s5542_s8 + $0x28] sm:$0xff] }
0x1670   :  { %3787 = vpow2.f32 %v3621_v48  ;;  %v4996_v48 = vld [vmem:[%s5543_s10 + $0x38] sm:$0xff] }
0x1671   :  { %3789 = vtanh.f32 %v1978_v10  ;;  %v2062_v10 = vld [vmem:[%s5542_s8 + $0x30] sm:$0xff]  ;;  %2271 = vmatprep.subr.mxu1 %v4996_v48 }
0x167d   :  { %v3788_v41 = vpop.eup %3787 }
0x167e   :  { %v1986_v50 = vadd.f32 1.0, %v3788_v41  ;;  %v3790_v51 = vpop.eup %3789  ;;  %v5001_v41 = vld [vmem:[%s5543_s10 + $0x30] sm:$0xff] }
0x167f   :  { %2272 = vmatpush1.msra.mxu1 %v5001_v41 }
0x1680   :  { %3791 = vrcp.f32 %v1986_v50  ;;  %v2059_v50 = vld [vmem:[%s5542_s8 + $0x18] sm:$0xff] }
0x168d   :  { %v3792_v18 = vpop.eup %3791 }
0x168e   :  { %v4913_v42 = vsel %vm4559_vm4, %v3790_v51, %v3792_v18  ;;  %v5011_v51 = vld [vmem:[%s5543_s10 + $0x28] sm:$0xff]  ;;  %v2058_v18 = vld [vmem:[%s5542_s8 + $0x10] sm:$0xff] }
0x168f   :  { %2000 = vrot.lane.b32.xlu1 %v4913_v42, %s3935_s2  ;;  %v1996_v22 = vmul.f32 %v4913_v42, %v4868_v53  ;;  %2273 = vmatprep.subr.mxu1 %v5011_v51 }
0x169c   :  { %v1971_v57 = vpop.f32.mrf.mxu1 }
0x169d   :  { %v5020_v57 = vld [vmem:[%s5543_s10 + $0x20] sm:$0xff] }
0x169e   :  { %v1973_v63 = vpop.f32.mrf.mxu1  ;;  %2274 = vmatpush1.msra.mxu1 %v5020_v57 }
0x169f   :  { %v1979_v36 = vadd.f32 %v1973_v63, %v4528_v60  ;;  %v2057_v63 = vld [vmem:[%s5542_s8 + $0x8] sm:$0xff] }
0x16a1   :  { %v3622_v0 = vmul.f32 -1.442695, %v1979_v36 }
0x16a3   :  { %3793 = vpow2.f32 %v3622_v0  ;;  %v2056_v0 = vld [vmem:[%s5542_s8] sm:$0xff] }
0x16a4   :  { %3795 = vtanh.f32 %v1979_v36  ;;  %v5029_v36 = vld [vmem:[%s5543_s10 + $0x18] sm:$0xff] }
0x16a5   :  { %2275 = vmatprep.subr.mxu1 %v5029_v36 }
0x16b0   :  { %v3794_v31 = vpop.eup %3793 }
0x16b1   :  { %v1987_v24 = vadd.f32 1.0, %v3794_v31  ;;  %v3796_v1 = vpop.eup %3795  ;;  %v5037_v31 = vld [vmem:[%s5543_s10 + $0x10] sm:$0xff] }
0x16b2   :  { %2276 = vmatpush1.msra.mxu1 %v5037_v31 }
0x16b3   :  { %3797 = vrcp.f32 %v1987_v24  ;;  %v5044_v24 = vld [vmem:[%s5543_s10 + $0x8] sm:$0xff] }
0x16b4   :  { %2277 = vmatprep.subr.mxu1 %v5044_v24 }
0x16c0   :  { %v3798_v13 = vpop.eup %3797 }
0x16c1   :  { %v4920_v43 = vsel %vm4559_vm4, %v3796_v1, %v3798_v13  ;;  %v5050_v1 = vld [vmem:[%s5543_s10] sm:$0xff] }
0x16c2   :  { %2002 = vrot.lane.b32.xlu0 %v4920_v43, %s3935_s2  ;;  %v1997_v52 = vmul.f32 %v4920_v43, %v1870_v35  ;;  %2278 = vmatpush1.msra.mxu1 %v5050_v1 }
0x16c3   :  { %2312 = vmatmul.mubr.f32.vlgmr.msra.gmra.mxu1 %v3934_v3  ;;  %2432 = vmatprep.subr.mxu1 %v4996_v48 }
0x16c4   :  { %2317 = vmatprep.mubr.f32.mxu1 %v3934_v3  ;;  %2433 = vmatpush1.msra.mxu1 %v5001_v41 }
0x16c5   :  { %2434 = vmatprep.subr.mxu1 %v5011_v51 }
0x16c6   :  { %2435 = vmatpush1.msra.mxu1 %v5020_v57 }
0x16c7   :  { %2318 = vmatmul.mubr.f32.gmra.mxu1 %v3934_v3  ;;  %2436 = vmatprep.subr.mxu1 %v5029_v36 }
0x16c8   :  { %2437 = vmatpush1.msra.mxu1 %v5037_v31  ;;  %2472 = vmatprep.mubr.f32.mxu1 %v3934_v3 }
0x16c9   :  { %2438 = vmatprep.subr.mxu1 %v5044_v24 }
0x16ca   :  { %2439 = vmatpush1.msra.mxu1 %v5050_v1 }
0x16cb   :  { %2593 = vmatprep.subr.mxu1 %v4996_v48 }
0x1701   :  { %v2001_v44 = vpop.permute.xlu1 %2000 }
0x1702   :  { %v2006_v45 = vmul.f32 %v2001_v44, %v4913_v42 }
0x1704   :  { %2010 = vrot.lane.b32.xlu1 %v2006_v45, %s3936_s4 }
0x1734   :  { %v2003_v60 = vpop.permute.xlu0 %2002 }
0x1735   :  { %v2007_v7 = vmul.f32 %v2003_v60, %v4920_v43 }
0x1737   :  { %2012 = vrot.lane.b32.xlu0 %v2007_v7, %s3936_s4 }
0x173b   :  { %2033 = vperm.xlu0 %3673, %v2031_v16  }
0x1776   :  { %v2011_v47 = vpop.permute.xlu1 %2010 }
0x1777   :  { %v2016_v49 = vadd.f32 %v2011_v47, %v1996_v22 }
0x1779   :  { %3799 = vtanh.f32 %v2016_v49 }
0x1786   :  { %v3800_v17 = vpop.eup %3799 }
0x1787   :  { %2022 = vrot.lane.b32.xlu0 %v3800_v17, %s3935_s2  ;;  %v2313_v17 = vpop.f32.mrf.mxu1 }
0x1789   :  { %v2315_v35 = vpop.f32.mrf.mxu1 }
0x178b   :  { %1879 = vrot.lane.b32.xlu0 %v4899_v34, %s3935_s2 }
0x178f   :  { %1545 = vrot.lane.b32.xlu0 %v4776_v61, %s3935_s2  ;;  %v2069_v61 = vld [vmem:[%s5542_s8 + $0x68] sm:$0xff] }
0x1793   :  { %1211 = vrot.lane.b32.xlu0 %v4695_v20, %s3935_s2  ;;  %v2071_v20 = vld [vmem:[%s5542_s8 + $0x78] sm:$0xff] }
0x1794   :  { %2124 = vmatprep.subr.mxu0 %v2071_v20 }
0x1797   :  { %876 = vrot.lane.b32.xlu0 %v4592_v19, %s3935_s2  ;;  %v2070_v19 = vld [vmem:[%s5542_s8 + $0x70] sm:$0xff] }
0x1798   :  { %2125 = vmatpush1.msra.mxu0 %v2070_v19 }
0x1799   :  { %2126 = vmatprep.subr.mxu0 %v2069_v61 }
0x179a   :  { %2127 = vmatpush1.msra.mxu0 %v2068_v55 }
0x179b   :  { %2128 = vmatprep.subr.mxu0 %v2067_v58 }
0x179c   :  { %2129 = vmatpush1.msra.mxu0 %v2066_v46 }
0x179d   :  { %2130 = vmatprep.subr.mxu0 %v2065_v30 }
0x179e   :  { %2131 = vmatpush1.msra.mxu0 %v2064_v5 }
0x179f   :  { %2132 = vmatprep.subr.mxu0 %v2063_v27 }
0x17a0   :  { %2133 = vmatpush1.msra.mxu0 %v2062_v10 }
0x17a1   :  { %2134 = vmatprep.subr.mxu0 %v2061_v40 }
0x17a9   :  { %v2013_v53 = vpop.permute.xlu0 %2012 }
0x17aa   :  { %v2017_v56 = vadd.f32 %v2013_v53, %v1997_v52  ;;  %v2319_v52 = vpop.f32.mrf.mxu1  ;;  %v2072_v53 = vld [vmem:[%s5544_s9] sm:$0x3] }
0x17ac   :  { %3801 = vtanh.f32 %v2017_v56  ;;  %v2077_v56 = vrot.slane %v2072_v53, %v4233_v12 }
0x17b6   :  { %v4971_v9 = vpop.permute.xlu0 %2033 }
0x17b7   :  { %vm2035_vm11 = vcmp.eq.s32.totalorder %v4971_v9, 1 }
0x17b9   :  { %v3802_v54 = vpop.eup %3801 }
0x17ba   :  { %2024 = vrot.lane.b32.xlu1 %v3802_v54, %s3935_s2  ;;  %v2081_v54 = vrot.slane %v2072_v53, %v4238_v15 }
0x17f9   :  { %v4973_v59 = vpop.permute.xlu0 %2022 }
0x17fd   :  { %v1880_v62 = vpop.permute.xlu0 %1879 }
0x17fe   :  { %1882 = vst.msk [vmem:[#allocation3 + $0x8] sm:$0xff] %vm879_vm9, %v1880_v62 }
0x1801   :  { %v1546_v23 = vpop.permute.xlu0 %1545 }
0x1802   :  { %1548 = vst.msk [vmem:[#allocation3 + $0x18] sm:$0xff] %vm879_vm9, %v1546_v23 }
0x1805   :  { %v1212_v8 = vpop.permute.xlu0 %1211 }
0x1806   :  { %1214 = vst.msk [vmem:[#allocation3 + $0x28] sm:$0xff] %vm879_vm9, %v1212_v8 }
0x1807   :  { %1710 = vst.msk [vmem:[#allocation3 + $0x28] sm:$0xff] %vm502_vm0, %v4848_v2  ;;  %v2060_v2 = vld [vmem:[%s5542_s8 + $0x20] sm:$0xff] }
0x1808   :  { %2135 = vmatpush1.msra.mxu0 %v2060_v2 }
0x1809   :  { %v877_v38 = vpop.permute.xlu0 %876  ;;  %2136 = vmatprep.subr.mxu0 %v2059_v50  ;;  %v2051_v16 = vld [vmem:[#allocation3 + $0x18] sm:$0xff] }
0x180a   :  { %880 = vst.msk [vmem:[#allocation3 + $0x38] sm:$0xff] %vm879_vm9, %v877_v38  ;;  %2137 = vmatpush1.msra.mxu0 %v2058_v18 }
0x180b   :  { %2138 = vmatprep.subr.mxu0 %v2057_v63 }
0x180c   :  { %2139 = vmatpush1.msra.mxu0 %v2056_v0 }
0x180d   :  { %3076 = vmatprep.subr.mxu0 %v4996_v48 }
0x180e   :  { %v2053_v22 = vld [vmem:[#allocation3 + $0x28] sm:$0xff] }
0x182c   :  { %v2025_v13 = vpop.permute.xlu1 %2024 }
0x182d   :  { %v2029_v44 = vmul.f32 %v2025_v13, %v4920_v43 }
0x182f   :  { %v2037_v45 = vsel %vm2035_vm11, %v2029_v44, %v4899_v34  ;;  %v2028_v34 = vmul.f32 %v4973_v59, %v4913_v42 }
0x1830   :  { %2044 = vrot.lane.b32.xlu1 %v2037_v45, %s3935_s2 }
0x1834   :  { %1712 = vrot.lane.b32.xlu1 %v4844_v33, %s3935_s2 }
0x1838   :  { %1378 = vrot.lane.b32.xlu1 %v4740_v4, %s3935_s2  ;;  %v2049_v4 = vld [vmem:[#allocation3 + $0x8] sm:$0xff] }
0x183c   :  { %1044 = vrot.lane.b32.xlu1 %v4643_v14, %s3935_s2 }
0x1840   :  { %2039 = vrot.lane.b32.xlu1 %v2028_v34, %s3936_s4 }
0x18a2   :  { %v2045_v43 = vpop.permute.xlu1 %2044 }
0x18a3   :  { %2047 = vst.msk [vmem:[#allocation3] sm:$0xff] %vm879_vm9, %v2045_v43 }
0x18a6   :  { %v1713_v60 = vpop.permute.xlu1 %1712 }
0x18a7   :  { %1715 = vst.msk [vmem:[#allocation3 + $0x10] sm:$0xff] %vm879_vm9, %v1713_v60 }
0x18aa   :  { %v1379_v33 = vpop.permute.xlu1 %1378  ;;  %v2048_v7 = vld [vmem:[#allocation3] sm:$0xff] }
0x18ab   :  { %1381 = vst.msk [vmem:[#allocation3 + $0x20] sm:$0xff] %vm879_vm9, %v1379_v33  ;;  %3623 = vmatmul.mubr.msk.f32.vlgmr.msra.gmra.mxu0 %vm511_vm1, %v2048_v7 }
0x18ac   :  { %1543 = vst.msk [vmem:[#allocation3 + $0x20] sm:$0xff] %vm502_vm0, %v4780_v11  ;;  %2178 = vmatprep.mubr.f32.mxu0 %v3934_v3  ;;  %3077 = vmatpush1.msra.mxu0 %v5001_v41 }
0x18ad   :  { %3078 = vmatprep.subr.mxu0 %v5011_v51 }
0x18ae   :  { %v1045_v14 = vpop.permute.xlu1 %1044  ;;  %3079 = vmatpush1.msra.mxu0 %v5020_v57  ;;  %v2050_v42 = vld [vmem:[#allocation3 + $0x10] sm:$0xff] }
0x18af   :  { %1047 = vst.msk [vmem:[#allocation3 + $0x30] sm:$0xff] %vm879_vm9, %v1045_v14  ;;  %3624 = vmatmul.mubr.msk.f32.gmra.mxu0 %vm511_vm1, %v2049_v4  ;;  %3080 = vmatprep.subr.mxu0 %v5029_v36 }
0x18b0   :  { %1877 = vst.msk [vmem:[#allocation3 + $0x30] sm:$0xff] %vm502_vm0, %v4903_v28  ;;  %2184 = vmatprep.mubr.f32.mxu0 %v3934_v3  ;;  %3081 = vmatpush1.msra.mxu0 %v5037_v31 }
0x18b1   :  { %3082 = vmatprep.subr.mxu0 %v5044_v24 }
0x18b2   :  { %v2040_v11 = vpop.permute.xlu1 %2039  ;;  %3083 = vmatpush1.msra.mxu0 %v5050_v1 }
0x18b3   :  { %2042 = vst.msk [vmem:[#allocation3 + $0x38] sm:$0xff] %vm502_vm0, %v2040_v11  ;;  %3625 = vmatmul.mubr.msk.f32.gmra.mxu0 %vm511_vm1, %v2050_v42  ;;  %v2052_v28 = vld [vmem:[#allocation3 + $0x20] sm:$0xff] }
0x18b4   :  { %2190 = vmatprep.mubr.f32.mxu0 %v3934_v3 }
0x18b7   :  { %3626 = vmatmul.mubr.msk.f32.gmra.mxu0 %vm511_vm1, %v2051_v16  ;;  %v2054_v47 = vld [vmem:[#allocation3 + $0x30] sm:$0xff] }
0x18b8   :  { %2196 = vmatprep.mubr.f32.mxu0 %v3934_v3 }
0x18ba   :  { %v2055_v49 = vld [vmem:[#allocation3 + $0x38] sm:$0xff] }
0x18bb   :  { %3627 = vmatmul.mubr.msk.f32.gmra.mxu0 %vm511_vm1, %v2052_v28  ;;  %v2321_v28 = vpop.f32.mrf.mxu1 }
0x18bc   :  { %2202 = vmatprep.mubr.f32.mxu0 %v3934_v3 }
0x18bf   :  { %3628 = vmatmul.mubr.msk.f32.gmra.mxu0 %vm511_vm1, %v2053_v22 }
0x18c0   :  { %2208 = vmatprep.mubr.f32.mxu0 %v3934_v3 }
0x18c3   :  { %3629 = vmatmul.mubr.msk.f32.gmra.mxu0 %vm511_vm1, %v2054_v47 }
0x18c4   :  { %2214 = vmatprep.mubr.f32.mxu0 %v3934_v3 }
0x18c7   :  { %3630 = vmatmul.mubr.msk.f32.gmra.mxu0 %vm511_vm1, %v2055_v49 }
0x18c8   :  { %3116 = vmatprep.mubr.f32.mxu0 %v3934_v3 }
0x196b   :  { %v2174_v20 = vpop.f32.mrf.mxu0 }
0x196c   :  { %v2175_v19 = vadd.f32 %v2174_v20, %v2077_v56 }
0x196d   :  { %v2176_v61 = vpop.f32.mrf.mxu0 }
0x196e   :  { %v5119_v55 = vadd.f32 %v2176_v61, %v2081_v54  ;;  %v2326_v58 = vadd.f32 %v2313_v17, %v2175_v19 }
0x196f   :  { %v2180_v46 = vpop.f32.mrf.mxu0 }
0x1970   :  { %v3631_v30 = vmul.f32 -1.442695, %v2326_v58  ;;  %v5121_v5 = vadd.f32 %v2180_v46, %v2077_v56 }
0x1971   :  { %v2182_v59 = vpop.f32.mrf.mxu0 }
0x1972   :  { %3803 = vpow2.f32 %v3631_v30  ;;  %v5123_v62 = vadd.f32 %v2182_v59, %v2081_v54 }
0x1973   :  { %v2186_v23 = vpop.f32.mrf.mxu0  ;;  %3805 = vtanh.f32 %v2326_v58 }
0x1974   :  { %v5125_v8 = vadd.f32 %v2186_v23, %v2077_v56 }
0x1975   :  { %v2188_v12 = vpop.f32.mrf.mxu0 }
0x1976   :  { %v5127_v38 = vadd.f32 %v2188_v12, %v2081_v54 }
0x1977   :  { %v2192_v15 = vpop.f32.mrf.mxu0 }
0x1978   :  { %v5129_v27 = vadd.f32 %v2192_v15, %v2077_v56 }
0x1979   :  { %v2194_v10 = vpop.f32.mrf.mxu0 }
0x197a   :  { %v5131_v40 = vadd.f32 %v2194_v10, %v2081_v54 }
0x197b   :  { %v2198_v2 = vpop.f32.mrf.mxu0 }
0x197c   :  { %v5133_v50 = vadd.f32 %v2198_v2, %v2077_v56 }
0x197d   :  { %v2200_v18 = vpop.f32.mrf.mxu0 }
0x197e   :  { %v5135_v63 = vadd.f32 %v2200_v18, %v2081_v54 }
0x197f   :  { %v3804_v0 = vpop.eup %3803  ;;  %v2204_v13 = vpop.f32.mrf.mxu0 }
0x1980   :  { %v2334_v44 = vadd.f32 1.0, %v3804_v0  ;;  %v5137_v45 = vadd.f32 %v2204_v13, %v2077_v56  ;;  %v3806_v47 = vpop.eup %3805 }
0x1981   :  { %v2206_v34 = vpop.f32.mrf.mxu0 }
0x1982   :  { %3807 = vrcp.f32 %v2334_v44  ;;  %v5139_v43 = vadd.f32 %v2206_v34, %v2081_v54 }
0x1983   :  { %v2210_v60 = vpop.f32.mrf.mxu0 }
0x1984   :  { %v5141_v33 = vadd.f32 %v2210_v60, %v2077_v56 }
0x1985   :  { %v2212_v7 = vpop.f32.mrf.mxu0 }
0x1986   :  { %v5143_v14 = vadd.f32 %v2212_v7, %v2081_v54 }
0x1987   :  { %v2216_v4 = vpop.f32.mrf.mxu0 }
0x1988   :  { %v5145_v11 = vadd.f32 %v2216_v4, %v2077_v56 }
0x1989   :  { %v2218_v42 = vpop.f32.mrf.mxu0 }
0x198a   :  { %v2219_v16 = vadd.f32 %v2218_v42, %v2081_v54 }
0x198c   :  { %v2327_v22 = vadd.f32 %v2321_v28, %v2219_v16 }
0x198e   :  { %v3632_v49 = vmul.f32 -1.442695, %v2327_v22 }
0x198f   :  { %v3808_v17 = vpop.eup %3807 }
0x1990   :  { %3809 = vpow2.f32 %v3632_v49  ;;  %v2342_v35 = vsel %vm4559_vm4, %v3806_v47, %v3808_v17 }
0x1991   :  { %2348 = vrot.lane.b32.xlu0 %v2342_v35, %s3935_s2  ;;  %3811 = vtanh.f32 %v2327_v22  ;;  %v2344_v30 = vmul.f32 0.0, %v2342_v35 }
0x199d   :  { %v3810_v52 = vpop.eup %3809 }
0x199e   :  { %v2335_v53 = vadd.f32 1.0, %v3810_v52  ;;  %v3812_v20 = vpop.eup %3811 }
0x19a0   :  { %3813 = vrcp.f32 %v2335_v53 }
0x19ad   :  { %v3814_v56 = vpop.eup %3813 }
0x19ae   :  { %v2343_v54 = vsel %vm4559_vm4, %v3812_v20, %v3814_v56 }
0x19af   :  { %2350 = vrot.lane.b32.xlu1 %v2343_v54, %s3935_s2  ;;  %v2345_v15 = vmul.f32 0.0, %v2343_v54 }
0x1a03   :  { %v2349_v19 = vpop.permute.xlu0 %2348 }
0x1a04   :  { %v2354_v61 = vmul.f32 %v2349_v19, %v2342_v35 }
0x1a06   :  { %2358 = vrot.lane.b32.xlu0 %v2354_v61, %s3936_s4 }
0x1a21   :  { %v2351_v58 = vpop.permute.xlu1 %2350 }
0x1a22   :  { %v2355_v46 = vmul.f32 %v2351_v58, %v2343_v54 }
0x1a24   :  { %2360 = vrot.lane.b32.xlu1 %v2355_v46, %s3936_s4 }
0x1a78   :  { %v2359_v59 = vpop.permute.xlu0 %2358 }
0x1a79   :  { %v5155_v23 = vadd.f32 %v2359_v59, %v2344_v30 }
0x1a7b   :  { %3815 = vtanh.f32 %v5155_v23 }
0x1a88   :  { %v3816_v12 = vpop.eup %3815 }
0x1a89   :  { %2370 = vrot.lane.b32.xlu0 %v3816_v12, %s3935_s2 }
0x1a96   :  { %v2361_v10 = vpop.permute.xlu1 %2360 }
0x1a97   :  { %v5159_v2 = vadd.f32 %v2361_v10, %v2345_v15 }
0x1a99   :  { %3817 = vtanh.f32 %v5159_v2 }
0x1aa6   :  { %v3818_v18 = vpop.eup %3817 }
0x1aa7   :  { %2372 = vrot.lane.b32.xlu1 %v3818_v18, %s3935_s2 }
0x1afb   :  { %v2371_v0 = vpop.permute.xlu0 %2370 }
0x1afc   :  { %v2376_v13 = vmul.f32 %v2371_v0, %v2342_v35 }
0x1afe   :  { %2383 = vrot.lane.b32.xlu0 %v2376_v13, %s3936_s4  ;;  %v5201_v13 = vsel %vm865_vm6, %v5159_v2, 0.0 }
0x1b19   :  { %v2373_v44 = vpop.permute.xlu1 %2372 }
0x1b1a   :  { %v2377_v34 = vmul.f32 %v2373_v44, %v2343_v54 }
0x1b1c   :  { %v5166_v60 = vsel %vm865_vm6, %v2377_v34, 0.0 }
0x1b1d   :  { %2402 = vrot.lane.b32.xlu1 %v5166_v60, %s3936_s4 }
0x1b70   :  { %v2384_v7 = vpop.permute.xlu0 %2383 }
0x1b71   :  { %2386 = vst.msk [vmem:[#allocation4] sm:$0xff] %vm502_vm0, %v2384_v7  ;;  %3633 = vmatmul.mubr.msk.f32.vlgmr.msra.gmra.mxu1 %vm502_vm0, %v2384_v7 }
0x1b72   :  { %2478 = vmatprep.mubr.f32.mxu1 %v3934_v3  ;;  %2594 = vmatpush1.msra.mxu1 %v5001_v41 }
0x1b73   :  { %2595 = vmatprep.subr.mxu1 %v5011_v51 }
0x1b74   :  { %2596 = vmatpush1.msra.mxu1 %v5020_v57 }
0x1b75   :  { %2597 = vmatprep.subr.mxu1 %v5029_v36 }
0x1b76   :  { %2598 = vmatpush1.msra.mxu1 %v5037_v31 }
0x1b77   :  { %2599 = vmatprep.subr.mxu1 %v5044_v24 }
0x1b78   :  { %2600 = vmatpush1.msra.mxu1 %v5050_v1 }
0x1b79   :  { %2754 = vmatprep.subr.mxu1 %v4996_v48 }
0x1b8f   :  { %v2403_v4 = vpop.permute.xlu1 %2402 }
0x1b90   :  { %3634 = vmatmul.mubr.msk.f32.gmra.mxu1 %vm502_vm0, %v2403_v4 }
0x1b91   :  { %2633 = vmatprep.mubr.f32.mxu1 %v3934_v3 }
0x1c31   :  { %v2474_v42 = vpop.f32.mrf.mxu1 }
0x1c32   :  { %v2487_v16 = vadd.f32 %v2474_v42, %v5121_v5 }
0x1c33   :  { %v2476_v28 = vpop.f32.mrf.mxu1 }
0x1c34   :  { %v3635_v22 = vmul.f32 -1.442695, %v2487_v16 }
0x1c36   :  { %3819 = vpow2.f32 %v3635_v22 }
0x1c37   :  { %3821 = vtanh.f32 %v2487_v16 }
0x1c43   :  { %v3820_v47 = vpop.eup %3819 }
0x1c44   :  { %v2495_v49 = vadd.f32 1.0, %v3820_v47  ;;  %v3822_v35 = vpop.eup %3821 }
0x1c46   :  { %3823 = vrcp.f32 %v2495_v49 }
0x1c50   :  { %v2480_v17 = vpop.f32.mrf.mxu1 }
0x1c52   :  { %v2482_v52 = vpop.f32.mrf.mxu1 }
0x1c53   :  { %v3824_v53 = vpop.eup %3823  ;;  %v2488_v20 = vadd.f32 %v2482_v52, %v5143_v14 }
0x1c54   :  { %v2503_v56 = vsel %vm4559_vm4, %v3822_v35, %v3824_v53 }
0x1c55   :  { %v3636_v54 = vmul.f32 -1.442695, %v2488_v20  ;;  %2509 = vrot.lane.b32.xlu0 %v2503_v56, %s3935_s2  ;;  %v2505_v15 = vmul.f32 %v2503_v56, %v5155_v23 }
0x1c57   :  { %3825 = vpow2.f32 %v3636_v54 }
0x1c58   :  { %3827 = vtanh.f32 %v2488_v20 }
0x1c64   :  { %v3826_v5 = vpop.eup %3825 }
0x1c65   :  { %v2496_v19 = vadd.f32 1.0, %v3826_v5  ;;  %v3828_v61 = vpop.eup %3827 }
0x1c67   :  { %3829 = vrcp.f32 %v2496_v19 }
0x1c74   :  { %v3830_v58 = vpop.eup %3829 }
0x1c75   :  { %v2504_v46 = vsel %vm4559_vm4, %v3828_v61, %v3830_v58 }
0x1c76   :  { %2511 = vrot.lane.b32.xlu1 %v2504_v46, %s3935_s2  ;;  %v2506_v44 = vmul.f32 %v2504_v46, %v5201_v13 }
0x1cc7   :  { %v2510_v30 = vpop.permute.xlu0 %2509 }
0x1cc8   :  { %v2515_v14 = vmul.f32 %v2510_v30, %v2503_v56 }
0x1cca   :  { %2519 = vrot.lane.b32.xlu0 %v2515_v14, %s3936_s4 }
0x1ce8   :  { %v2512_v59 = vpop.permute.xlu1 %2511 }
0x1ce9   :  { %v2516_v12 = vmul.f32 %v2512_v59, %v2504_v46 }
0x1ceb   :  { %2521 = vrot.lane.b32.xlu1 %v2516_v12, %s3936_s4 }
0x1d3c   :  { %v2520_v10 = vpop.permute.xlu0 %2519 }
0x1d3d   :  { %v5194_v18 = vadd.f32 %v2520_v10, %v2505_v15 }
0x1d3f   :  { %3831 = vtanh.f32 %v5194_v18 }
0x1d4c   :  { %v3832_v0 = vpop.eup %3831 }
0x1d4d   :  { %2531 = vrot.lane.b32.xlu0 %v3832_v0, %s3935_s2 }
0x1d5d   :  { %v2522_v34 = vpop.permute.xlu1 %2521 }
0x1d5e   :  { %v5204_v7 = vadd.f32 %v2522_v34, %v2506_v44 }
0x1d60   :  { %3833 = vtanh.f32 %v5204_v7 }
0x1d6d   :  { %v3834_v23 = vpop.eup %3833 }
0x1d6e   :  { %2533 = vrot.lane.b32.xlu1 %v3834_v23, %s3935_s2 }
0x1dbf   :  { %v2532_v4 = vpop.permute.xlu0 %2531 }
0x1dc0   :  { %v2537_v42 = vmul.f32 %v2532_v4, %v2503_v56  ;;  %v5248_v4 = vsel %vm1033_vm8, %v5204_v7, %v5201_v13 }
0x1dc2   :  { %2544 = vrot.lane.b32.xlu0 %v2537_v42, %s3936_s4 }
0x1de0   :  { %v2534_v16 = vpop.permute.xlu1 %2533 }
0x1de1   :  { %v2538_v28 = vmul.f32 %v2534_v16, %v2504_v46 }
0x1de3   :  { %v5212_v26 = vsel %vm1033_vm8, %v2538_v28, %v5166_v60 }
0x1de4   :  { %2563 = vrot.lane.b32.xlu1 %v5212_v26, %s3936_s4 }
0x1e34   :  { %v2545_v2 = vpop.permute.xlu0 %2544 }
0x1e35   :  { %2547 = vst.msk [vmem:[#allocation4 + $0x8] sm:$0xff] %vm502_vm0, %v2545_v2  ;;  %3637 = vmatmul.mubr.msk.f32.vlgmr.msra.gmra.mxu1 %vm502_vm0, %v2545_v2 }
0x1e36   :  { %2639 = vmatprep.mubr.f32.mxu1 %v3934_v3  ;;  %2755 = vmatpush1.msra.mxu1 %v5001_v41 }
0x1e37   :  { %2756 = vmatprep.subr.mxu1 %v5011_v51 }
0x1e38   :  { %2757 = vmatpush1.msra.mxu1 %v5020_v57 }
0x1e39   :  { %2758 = vmatprep.subr.mxu1 %v5029_v36 }
0x1e3a   :  { %2759 = vmatpush1.msra.mxu1 %v5037_v31 }
0x1e3b   :  { %2760 = vmatprep.subr.mxu1 %v5044_v24 }
0x1e3c   :  { %2761 = vmatpush1.msra.mxu1 %v5050_v1 }
0x1e3d   :  { %2915 = vmatprep.subr.mxu1 %v4996_v48 }
0x1e56   :  { %v2564_v22 = vpop.permute.xlu1 %2563 }
0x1e57   :  { %3638 = vmatmul.mubr.msk.f32.gmra.mxu1 %vm502_vm0, %v2564_v22 }
0x1e58   :  { %2794 = vmatprep.mubr.f32.mxu1 %v3934_v3 }
0x1ef5   :  { %v2635_v47 = vpop.f32.mrf.mxu1 }
0x1ef6   :  { %v2648_v49 = vadd.f32 %v2635_v47, %v5125_v8 }
0x1ef7   :  { %v2637_v17 = vpop.f32.mrf.mxu1 }
0x1ef8   :  { %v3639_v35 = vmul.f32 -1.442695, %v2648_v49 }
0x1efa   :  { %3835 = vpow2.f32 %v3639_v35 }
0x1efb   :  { %3837 = vtanh.f32 %v2648_v49 }
0x1f07   :  { %v3836_v52 = vpop.eup %3835 }
0x1f08   :  { %v2656_v53 = vadd.f32 1.0, %v3836_v52  ;;  %v3838_v20 = vpop.eup %3837 }
0x1f0a   :  { %3839 = vrcp.f32 %v2656_v53 }
0x1f17   :  { %v3840_v56 = vpop.eup %3839  ;;  %v2641_v54 = vpop.f32.mrf.mxu1 }
0x1f18   :  { %v2664_v5 = vsel %vm4559_vm4, %v3838_v20, %v3840_v56 }
0x1f19   :  { %2670 = vrot.lane.b32.xlu0 %v2664_v5, %s3935_s2  ;;  %v2643_v19 = vpop.f32.mrf.mxu1 }
0x1f1a   :  { %v2649_v61 = vadd.f32 %v2643_v19, %v5139_v43  ;;  %v2666_v43 = vmul.f32 %v2664_v5, %v5194_v18 }
0x1f1c   :  { %v3640_v58 = vmul.f32 -1.442695, %v2649_v61 }
0x1f1e   :  { %3841 = vpow2.f32 %v3640_v58 }
0x1f1f   :  { %3843 = vtanh.f32 %v2649_v61 }
0x1f2b   :  { %v3842_v8 = vpop.eup %3841 }
0x1f2c   :  { %v2657_v46 = vadd.f32 1.0, %v3842_v8  ;;  %v3844_v30 = vpop.eup %3843 }
0x1f2e   :  { %3845 = vrcp.f32 %v2657_v46 }
0x1f3b   :  { %v3846_v14 = vpop.eup %3845 }
0x1f3c   :  { %v2665_v59 = vsel %vm4559_vm4, %v3844_v30, %v3846_v14 }
0x1f3d   :  { %2672 = vrot.lane.b32.xlu1 %v2665_v59, %s3935_s2  ;;  %v2667_v42 = vmul.f32 %v2665_v59, %v5248_v4 }
0x1f8b   :  { %v2671_v12 = vpop.permute.xlu0 %2670 }
0x1f8c   :  { %v2676_v15 = vmul.f32 %v2671_v12, %v2664_v5 }
0x1f8e   :  { %2680 = vrot.lane.b32.xlu0 %v2676_v15, %s3936_s4 }
0x1faf   :  { %v2673_v10 = vpop.permute.xlu1 %2672 }
0x1fb0   :  { %v2677_v0 = vmul.f32 %v2673_v10, %v2665_v59 }
0x1fb2   :  { %2682 = vrot.lane.b32.xlu1 %v2677_v0, %s3936_s4 }
0x2000   :  { %v2681_v44 = vpop.permute.xlu0 %2680 }
0x2001   :  { %v5240_v34 = vadd.f32 %v2681_v44, %v2666_v43 }
0x2003   :  { %3847 = vtanh.f32 %v5240_v34 }
0x2010   :  { %v3848_v23 = vpop.eup %3847 }
0x2011   :  { %2692 = vrot.lane.b32.xlu0 %v3848_v23, %s3935_s2 }
0x2024   :  { %v2683_v16 = vpop.permute.xlu1 %2682 }
0x2025   :  { %v5251_v28 = vadd.f32 %v2683_v16, %v2667_v42 }
0x2027   :  { %3849 = vtanh.f32 %v5251_v28  ;;  %v5295_v42 = vsel %vm1200_vm10, %v5251_v28, %v5248_v4 }
0x2034   :  { %v3850_v18 = vpop.eup %3849 }
0x2035   :  { %2694 = vrot.lane.b32.xlu1 %v3850_v18, %s3935_s2 }
0x2083   :  { %v2693_v2 = vpop.permute.xlu0 %2692 }
0x2084   :  { %v2698_v22 = vmul.f32 %v2693_v2, %v2664_v5 }
0x2086   :  { %2705 = vrot.lane.b32.xlu0 %v2698_v22, %s3936_s4 }
0x20a7   :  { %v2695_v47 = vpop.permute.xlu1 %2694 }
0x20a8   :  { %v2699_v49 = vmul.f32 %v2695_v47, %v2665_v59 }
0x20aa   :  { %v5259_v32 = vsel %vm1200_vm10, %v2699_v49, %v5212_v26 }
0x20ab   :  { %2724 = vrot.lane.b32.xlu1 %v5259_v32, %s3936_s4 }
0x20f8   :  { %v2706_v13 = vpop.permute.xlu0 %2705 }
0x20f9   :  { %2708 = vst.msk [vmem:[#allocation4 + $0x10] sm:$0xff] %vm502_vm0, %v2706_v13  ;;  %3641 = vmatmul.mubr.msk.f32.vlgmr.msra.gmra.mxu1 %vm502_vm0, %v2706_v13 }
0x20fa   :  { %2800 = vmatprep.mubr.f32.mxu1 %v3934_v3  ;;  %2916 = vmatpush1.msra.mxu1 %v5001_v41 }
0x20fb   :  { %2917 = vmatprep.subr.mxu1 %v5011_v51 }
0x20fc   :  { %2918 = vmatpush1.msra.mxu1 %v5020_v57 }
0x20fd   :  { %2919 = vmatprep.subr.mxu1 %v5029_v36 }
0x20fe   :  { %2920 = vmatpush1.msra.mxu1 %v5037_v31 }
0x20ff   :  { %2921 = vmatprep.subr.mxu1 %v5044_v24 }
0x2100   :  { %2922 = vmatpush1.msra.mxu1 %v5050_v1 }
0x2101   :  { %3237 = vmatprep.subr.mxu1 %v4996_v48 }
0x211d   :  { %v2725_v7 = vpop.permute.xlu1 %2724 }
0x211e   :  { %3642 = vmatmul.mubr.msk.f32.gmra.mxu1 %vm502_vm0, %v2725_v7 }
0x211f   :  { %2955 = vmatprep.mubr.f32.mxu1 %v3934_v3 }
0x21b9   :  { %v2796_v17 = vpop.f32.mrf.mxu1 }
0x21ba   :  { %v2809_v35 = vadd.f32 %v2796_v17, %v5129_v27 }
0x21bb   :  { %v2798_v52 = vpop.f32.mrf.mxu1 }
0x21bc   :  { %v3643_v53 = vmul.f32 -1.442695, %v2809_v35 }
0x21be   :  { %3851 = vpow2.f32 %v3643_v53 }
0x21bf   :  { %3853 = vtanh.f32 %v2809_v35 }
0x21cb   :  { %v3852_v20 = vpop.eup %3851 }
0x21cc   :  { %v2817_v56 = vadd.f32 1.0, %v3852_v20  ;;  %v3854_v54 = vpop.eup %3853 }
0x21ce   :  { %3855 = vrcp.f32 %v2817_v56 }
0x21db   :  { %v3856_v5 = vpop.eup %3855 }
0x21dc   :  { %v2825_v48 = vsel %vm4559_vm4, %v3854_v54, %v3856_v5 }
0x21dd   :  { %2831 = vrot.lane.b32.xlu0 %v2825_v48, %s3935_s2 }
0x21de   :  { %v2802_v19 = vpop.f32.mrf.mxu1 }
0x21e0   :  { %v2804_v61 = vpop.f32.mrf.mxu1 }
0x21e1   :  { %v2810_v58 = vadd.f32 %v2804_v61, %v5135_v63  ;;  %v2827_v63 = vmul.f32 %v2825_v48, %v5240_v34 }
0x21e3   :  { %v3644_v8 = vmul.f32 -1.442695, %v2810_v58 }
0x21e5   :  { %3857 = vpow2.f32 %v3644_v8 }
0x21e6   :  { %3859 = vtanh.f32 %v2810_v58 }
0x21f2   :  { %v3858_v27 = vpop.eup %3857 }
0x21f3   :  { %v2818_v46 = vadd.f32 1.0, %v3858_v27  ;;  %v3860_v30 = vpop.eup %3859 }
0x21f5   :  { %3861 = vrcp.f32 %v2818_v46 }
0x2202   :  { %v3862_v14 = vpop.eup %3861 }
0x2203   :  { %v2826_v59 = vsel %vm4559_vm4, %v3860_v30, %v3862_v14 }
0x2204   :  { %2833 = vrot.lane.b32.xlu1 %v2826_v59, %s3935_s2  ;;  %v2828_v16 = vmul.f32 %v2826_v59, %v5295_v42 }
0x224f   :  { %v2832_v12 = vpop.permute.xlu0 %2831 }
0x2250   :  { %v2837_v15 = vmul.f32 %v2832_v12, %v2825_v48 }
0x2252   :  { %2841 = vrot.lane.b32.xlu0 %v2837_v15, %s3936_s4 }
0x2276   :  { %v2834_v10 = vpop.permute.xlu1 %2833 }
0x2277   :  { %v2838_v0 = vmul.f32 %v2834_v10, %v2826_v59 }
0x2279   :  { %2843 = vrot.lane.b32.xlu1 %v2838_v0, %s3936_s4 }
0x22c4   :  { %v2842_v43 = vpop.permute.xlu0 %2841 }
0x22c5   :  { %v5287_v44 = vadd.f32 %v2842_v43, %v2827_v63 }
0x22c7   :  { %3863 = vtanh.f32 %v5287_v44 }
0x22d4   :  { %v3864_v23 = vpop.eup %3863 }
0x22d5   :  { %2853 = vrot.lane.b32.xlu0 %v3864_v23, %s3935_s2 }
0x22eb   :  { %v2844_v18 = vpop.permute.xlu1 %2843 }
0x22ec   :  { %v5298_v2 = vadd.f32 %v2844_v18, %v2828_v16 }
0x22ee   :  { %3865 = vtanh.f32 %v5298_v2  ;;  %v2862_v14 = vsel %vm1367_vm12, %v5298_v2, %v5295_v42 }
0x22fb   :  { %v3866_v34 = vpop.eup %3865 }
0x22fc   :  { %2855 = vrot.lane.b32.xlu1 %v3866_v34, %s3935_s2 }
0x2347   :  { %v2854_v22 = vpop.permute.xlu0 %2853 }
0x2348   :  { %v2859_v47 = vmul.f32 %v2854_v22, %v2825_v48 }
0x234a   :  { %2866 = vrot.lane.b32.xlu0 %v2859_v47, %s3936_s4 }
0x236e   :  { %v2856_v49 = vpop.permute.xlu1 %2855 }
0x236f   :  { %v2860_v13 = vmul.f32 %v2856_v49, %v2826_v59 }
0x2371   :  { %v5306_v37 = vsel %vm1367_vm12, %v2860_v13, %v5259_v32 }
0x2372   :  { %2885 = vrot.lane.b32.xlu1 %v5306_v37, %s3936_s4 }
0x23bc   :  { %v2867_v4 = vpop.permute.xlu0 %2866 }
0x23bd   :  { %2869 = vst.msk [vmem:[#allocation4 + $0x18] sm:$0xff] %vm502_vm0, %v2867_v4  ;;  %3645 = vmatmul.mubr.msk.f32.vlgmr.msra.gmra.mxu1 %vm502_vm0, %v2867_v4 }
0x23be   :  { %2961 = vmatprep.mubr.f32.mxu1 %v3934_v3  ;;  %3238 = vmatpush1.msra.mxu1 %v5001_v41 }
0x23bf   :  { %3239 = vmatprep.subr.mxu1 %v5011_v51 }
0x23c0   :  { %3240 = vmatpush1.msra.mxu1 %v5020_v57 }
0x23c1   :  { %3241 = vmatprep.subr.mxu1 %v5029_v36 }
0x23c2   :  { %3242 = vmatpush1.msra.mxu1 %v5037_v31 }
0x23c3   :  { %3243 = vmatprep.subr.mxu1 %v5044_v24 }
0x23c4   :  { %3244 = vmatpush1.msra.mxu1 %v5050_v1 }
0x23e4   :  { %v2886_v28 = vpop.permute.xlu1 %2885 }
0x23e5   :  { %3646 = vmatmul.mubr.msk.f32.gmra.mxu1 %vm502_vm0, %v2886_v28 }
0x23e6   :  { %3277 = vmatprep.mubr.f32.mxu1 %v3934_v3 }
0x247d   :  { %v2957_v7 = vpop.f32.mrf.mxu1 }
0x247e   :  { %v2970_v41 = vadd.f32 %v2957_v7, %v5133_v50 }
0x247f   :  { %v2959_v17 = vpop.f32.mrf.mxu1 }
0x2480   :  { %v3647_v51 = vmul.f32 -1.442695, %v2970_v41 }
0x2482   :  { %3867 = vpow2.f32 %v3647_v51 }
0x2483   :  { %3869 = vtanh.f32 %v2970_v41 }
0x248f   :  { %v3868_v57 = vpop.eup %3867 }
0x2490   :  { %v2978_v35 = vadd.f32 1.0, %v3868_v57  ;;  %v3870_v36 = vpop.eup %3869 }
0x2492   :  { %3871 = vrcp.f32 %v2978_v35 }
0x249f   :  { %v3872_v31 = vpop.eup %3871 }
0x24a0   :  { %v2986_v24 = vsel %vm4559_vm4, %v3870_v36, %v3872_v31 }
0x24a1   :  { %2992 = vrot.lane.b32.xlu0 %v2986_v24, %s3935_s2 }
0x24a5   :  { %v2963_v1 = vpop.f32.mrf.mxu1 }
0x24a7   :  { %v2965_v52 = vpop.f32.mrf.mxu1 }
0x24a8   :  { %v2971_v53 = vadd.f32 %v2965_v52, %v5131_v40  ;;  %v2988_v40 = vmul.f32 %v2986_v24, %v5287_v44 }
0x24aa   :  { %v3648_v20 = vmul.f32 -1.442695, %v2971_v53 }
0x24ac   :  { %3873 = vpow2.f32 %v3648_v20 }
0x24ad   :  { %3875 = vtanh.f32 %v2971_v53 }
0x24b9   :  { %v3874_v50 = vpop.eup %3873 }
0x24ba   :  { %v2979_v56 = vadd.f32 1.0, %v3874_v50  ;;  %v3876_v54 = vpop.eup %3875 }
0x24bc   :  { %3877 = vrcp.f32 %v2979_v56 }
0x24c9   :  { %v3878_v5 = vpop.eup %3877 }
0x24ca   :  { %v2987_v48 = vsel %vm4559_vm4, %v3876_v54, %v3878_v5 }
0x24cb   :  { %2994 = vrot.lane.b32.xlu1 %v2987_v48, %s3935_s2  ;;  %v2989_v59 = vmul.f32 %v2987_v48, %v2862_v14 }
0x2513   :  { %v2993_v19 = vpop.permute.xlu0 %2992 }
0x2514   :  { %v2998_v61 = vmul.f32 %v2993_v19, %v2986_v24 }
0x2516   :  { %3002 = vrot.lane.b32.xlu0 %v2998_v61, %s3936_s4 }
0x253d   :  { %v2995_v58 = vpop.permute.xlu1 %2994 }
0x253e   :  { %v2999_v8 = vmul.f32 %v2995_v58, %v2987_v48 }
0x2540   :  { %3004 = vrot.lane.b32.xlu1 %v2999_v8, %s3936_s4 }
0x2588   :  { %v3003_v27 = vpop.permute.xlu0 %3002 }
0x2589   :  { %v3008_v46 = vadd.f32 %v3003_v27, %v2988_v40 }
0x258b   :  { %3879 = vtanh.f32 %v3008_v46 }
0x2598   :  { %v3880_v30 = vpop.eup %3879 }
0x2599   :  { %3014 = vrot.lane.b32.xlu0 %v3880_v30, %s3935_s2 }
0x25b2   :  { %v3005_v12 = vpop.permute.xlu1 %3004 }
0x25b3   :  { %v3009_v15 = vadd.f32 %v3005_v12, %v2989_v59 }
0x25b5   :  { %3881 = vtanh.f32 %v3009_v15  ;;  %v3023_v56 = vsel %vm1534_vm14, %v3009_v15, %v2862_v14 }
0x25c2   :  { %v3882_v10 = vpop.eup %3881 }
0x25c3   :  { %3016 = vrot.lane.b32.xlu1 %v3882_v10, %s3935_s2 }
0x260b   :  { %v3015_v0 = vpop.permute.xlu0 %3014 }
0x260c   :  { %v3020_v63 = vmul.f32 %v3015_v0, %v2986_v24 }
0x260e   :  { %3027 = vrot.lane.b32.xlu0 %v3020_v63, %s3936_s4 }
0x2635   :  { %v3017_v43 = vpop.permute.xlu1 %3016 }
0x2636   :  { %v3021_v44 = vmul.f32 %v3017_v43, %v2987_v48 }
0x2638   :  { %v5343_v23 = vsel %vm1534_vm14, %v3021_v44, %v5306_v37 }
0x2639   :  { %3046 = vrot.lane.b32.xlu1 %v5343_v23, %s3936_s4 }
0x2680   :  { %v5347_v21 = vpop.permute.xlu0 %3027 }
0x2681   :  { %3649 = vmatmul.mubr.msk.f32.vlgmr.msra.gmra.mxu0 %vm502_vm0, %v5347_v21 }
0x2682   :  { %3122 = vmatprep.mubr.f32.mxu0 %v3934_v3 }
0x26ab   :  { %v3047_v42 = vpop.permute.xlu1 %3046 }
0x26ac   :  { %3650 = vmatmul.mubr.msk.f32.gmra.mxu0 %vm502_vm0, %v3047_v42 }
0x26ad   :  { %3438 = vmatprep.mubr.f32.mxu0 %v3934_v3 }
0x2741   :  { %v3118_v16 = vpop.f32.mrf.mxu0 }
0x2742   :  { %v3131_v18 = vadd.f32 %v3118_v16, %v5137_v45 }
0x2743   :  { %v3120_v2 = vpop.f32.mrf.mxu0 }
0x2744   :  { %v3651_v34 = vmul.f32 -1.442695, %v3131_v18 }
0x2746   :  { %3883 = vpow2.f32 %v3651_v34 }
0x2747   :  { %3885 = vtanh.f32 %v3131_v18 }
0x2753   :  { %v3884_v22 = vpop.eup %3883 }
0x2754   :  { %v3139_v47 = vadd.f32 1.0, %v3884_v22  ;;  %v3886_v49 = vpop.eup %3885 }
0x2756   :  { %3887 = vrcp.f32 %v3139_v47 }
0x2763   :  { %v3888_v13 = vpop.eup %3887 }
0x2764   :  { %v3147_v4 = vsel %vm4559_vm4, %v3886_v49, %v3888_v13 }
0x2765   :  { %3153 = vrot.lane.b32.xlu0 %v3147_v4, %s3935_s2 }
0x276c   :  { %v3124_v28 = vpop.f32.mrf.mxu0 }
0x276e   :  { %v3126_v7 = vpop.f32.mrf.mxu0 }
0x276f   :  { %v3132_v41 = vadd.f32 %v3126_v7, %v5127_v38  ;;  %v3149_v38 = vmul.f32 %v3147_v4, %v3008_v46 }
0x2771   :  { %v3652_v17 = vmul.f32 -1.442695, %v3132_v41 }
0x2773   :  { %3889 = vpow2.f32 %v3652_v17 }
0x2774   :  { %3891 = vtanh.f32 %v3132_v41 }
0x2780   :  { %v3890_v45 = vpop.eup %3889 }
0x2781   :  { %v3140_v51 = vadd.f32 1.0, %v3890_v45  ;;  %v3892_v57 = vpop.eup %3891 }
0x2783   :  { %3893 = vrcp.f32 %v3140_v51 }
0x2790   :  { %v3894_v35 = vpop.eup %3893 }
0x2791   :  { %v3148_v36 = vsel %vm4559_vm4, %v3892_v57, %v3894_v35  ;;  %v3367_v35 = vld [vmem:[%s5543_s10 + $0x38] sm:$0xff] }
0x2792   :  { %3155 = vrot.lane.b32.xlu1 %v3148_v36, %s3935_s2  ;;  %v3150_v54 = vmul.f32 %v3148_v36, %v3023_v56  ;;  %3398 = vmatprep.subr.mxu0 %v3367_v35 }
0x2793   :  { %3661 = vmatprep.subr.mxu1 %v3367_v35 }
0x27d7   :  { %v3154_v31 = vpop.permute.xlu0 %3153 }
0x27d8   :  { %v3159_v24 = vmul.f32 %v3154_v31, %v3147_v4  ;;  %v3364_v31 = vld [vmem:[%s5543_s10 + $0x20] sm:$0xff] }
0x27da   :  { %3163 = vrot.lane.b32.xlu0 %v3159_v24, %s3936_s4  ;;  %v3363_v24 = vld [vmem:[%s5543_s10 + $0x18] sm:$0xff] }
0x2804   :  { %v3156_v1 = vpop.permute.xlu1 %3155 }
0x2805   :  { %v3160_v52 = vmul.f32 %v3156_v1, %v3148_v36  ;;  %v3362_v1 = vld [vmem:[%s5543_s10 + $0x10] sm:$0xff] }
0x2807   :  { %3165 = vrot.lane.b32.xlu1 %v3160_v52, %s3936_s4  ;;  %v3361_v52 = vld [vmem:[%s5543_s10 + $0x8] sm:$0xff] }
0x284c   :  { %v3164_v53 = vpop.permute.xlu0 %3163 }
0x284d   :  { %v3169_v20 = vadd.f32 %v3164_v53, %v3149_v38  ;;  %v3360_v38 = vld [vmem:[%s5543_s10] sm:$0xff] }
0x284f   :  { %3895 = vtanh.f32 %v3169_v20 }
0x285c   :  { %v3896_v50 = vpop.eup %3895 }
0x285d   :  { %3175 = vrot.lane.b32.xlu0 %v3896_v50, %s3935_s2 }
0x2879   :  { %v3166_v5 = vpop.permute.xlu1 %3165 }
0x287a   :  { %v3170_v48 = vadd.f32 %v3166_v5, %v3150_v54 }
0x287c   :  { %3897 = vtanh.f32 %v3170_v48  ;;  %v5399_v17 = vsel %vm1701_vm2, %v3170_v48, %v3023_v56 }
0x2889   :  { %v3898_v19 = vpop.eup %3897 }
0x288a   :  { %3177 = vrot.lane.b32.xlu1 %v3898_v19, %s3935_s2 }
0x28cf   :  { %v3176_v61 = vpop.permute.xlu0 %3175 }
0x28d0   :  { %v3181_v58 = vmul.f32 %v3176_v61, %v3147_v4 }
0x28d2   :  { %3188 = vrot.lane.b32.xlu0 %v3181_v58, %s3936_s4 }
0x28fc   :  { %v3178_v8 = vpop.permute.xlu1 %3177 }
0x28fd   :  { %v3182_v40 = vmul.f32 %v3178_v8, %v3148_v36  ;;  %v3366_v36 = vld [vmem:[%s5543_s10 + $0x30] sm:$0xff] }
0x28fe   :  { %3399 = vmatpush1.msra.mxu0 %v3366_v36 }
0x28ff   :  { %v5372_v27 = vsel %vm1701_vm2, %v3182_v40, %v5343_v23  ;;  %3400 = vmatprep.subr.mxu0 %v3365_v29 }
0x2900   :  { %3207 = vrot.lane.b32.xlu1 %v5372_v27, %s3936_s4  ;;  %3401 = vmatpush1.msra.mxu0 %v3364_v31 }
0x2901   :  { %3402 = vmatprep.subr.mxu0 %v3363_v24 }
0x2902   :  { %3403 = vmatpush1.msra.mxu0 %v3362_v1 }
0x2903   :  { %3404 = vmatprep.subr.mxu0 %v3361_v52 }
0x2904   :  { %3405 = vmatpush1.msra.mxu0 %v3360_v38 }
0x2944   :  { %v5376_v6 = vpop.permute.xlu0 %3188 }
0x2945   :  { %3653 = vmatmul.mubr.msk.f32.vlgmr.msra.gmra.mxu1 %vm502_vm0, %v5376_v6 }
0x2946   :  { %3283 = vmatprep.mubr.f32.mxu1 %v3934_v3  ;;  %3665 = vmatpush1.msra.mxu1 %v3366_v36 }
0x2947   :  { %3662 = vmatprep.subr.mxu1 %v3365_v29 }
0x2948   :  { %3666 = vmatpush1.msra.mxu1 %v3364_v31 }
0x2949   :  { %3663 = vmatprep.subr.mxu1 %v3363_v24  ;;  %v3530_v24 = vld [vmem:[#allocation5 + $0x28] sm:$0xff] }
0x294a   :  { %3667 = vmatpush1.msra.mxu1 %v3362_v1 }
0x294b   :  { %3664 = vmatprep.subr.mxu1 %v3361_v52  ;;  %v3532_v52 = vld [vmem:[#allocation5 + $0x38] sm:$0xff] }
0x294c   :  { %3668 = vmatpush1.msra.mxu1 %v3360_v38 }
0x2972   :  { %v3208_v46 = vpop.permute.xlu1 %3207 }
0x2973   :  { %3654 = vmatmul.mubr.msk.f32.gmra.mxu1 %vm502_vm0, %v3208_v46 }
0x2974   :  { %3444 = vmatprep.mubr.f32.mxu1 %v3934_v3 }
0x2a05   :  { %v3279_v30 = vpop.f32.mrf.mxu1 }
0x2a06   :  { %v3292_v14 = vadd.f32 %v3279_v30, %v5141_v33 }
0x2a07   :  { %v3281_v59 = vpop.f32.mrf.mxu1 }
0x2a08   :  { %v3655_v12 = vmul.f32 -1.442695, %v3292_v14 }
0x2a0a   :  { %3899 = vpow2.f32 %v3655_v12 }
0x2a0b   :  { %3901 = vtanh.f32 %v3292_v14 }
0x2a17   :  { %v3900_v15 = vpop.eup %3899 }
0x2a18   :  { %v3300_v10 = vadd.f32 1.0, %v3900_v15  ;;  %v3902_v0 = vpop.eup %3901 }
0x2a1a   :  { %3903 = vrcp.f32 %v3300_v10 }
0x2a27   :  { %v3904_v63 = vpop.eup %3903 }
0x2a28   :  { %v3308_v43 = vsel %vm4559_vm4, %v3902_v0, %v3904_v63 }
0x2a29   :  { %3314 = vrot.lane.b32.xlu1 %v3308_v43, %s3935_s2 }
0x2a33   :  { %v3285_v44 = vpop.f32.mrf.mxu1 }
0x2a35   :  { %v3287_v42 = vpop.f32.mrf.mxu1 }
0x2a36   :  { %v3293_v3 = vadd.f32 %v3287_v42, %v5123_v62  ;;  %v3310_v62 = vmul.f32 %v3308_v43, %v3169_v20 }
0x2a38   :  { %v3656_v16 = vmul.f32 -1.442695, %v3293_v3 }
0x2a3a   :  { %3905 = vpow2.f32 %v3656_v16 }
0x2a3b   :  { %3907 = vtanh.f32 %v3293_v3 }
0x2a47   :  { %v3906_v33 = vpop.eup %3905 }
0x2a48   :  { %v3301_v18 = vadd.f32 1.0, %v3906_v33  ;;  %v3908_v2 = vpop.eup %3907 }
0x2a4a   :  { %3909 = vrcp.f32 %v3301_v18 }
0x2a57   :  { %v3910_v34 = vpop.eup %3909 }
0x2a58   :  { %v3309_v22 = vsel %vm4559_vm4, %v3908_v2, %v3910_v34 }
0x2a59   :  { %3316 = vrot.lane.b32.xlu0 %v3309_v22, %s3935_s2  ;;  %v3311_v45 = vmul.f32 %v3309_v22, %v5399_v17 }
0x2a9b   :  { %v3315_v47 = vpop.permute.xlu1 %3314 }
0x2a9c   :  { %v3320_v49 = vmul.f32 %v3315_v47, %v3308_v43 }
0x2a9e   :  { %3324 = vrot.lane.b32.xlu1 %v3320_v49, %s3936_s4  ;;  %v3527_v49 = vld [vmem:[#allocation5 + $0x10] sm:$0xff] }
0x2acb   :  { %v3317_v13 = vpop.permute.xlu0 %3316 }
0x2acc   :  { %v3321_v4 = vmul.f32 %v3317_v13, %v3309_v22 }
0x2ace   :  { %3326 = vrot.lane.b32.xlu0 %v3321_v4, %s3936_s4 }
0x2b10   :  { %v3325_v28 = vpop.permute.xlu1 %3324 }
0x2b11   :  { %v5393_v7 = vadd.f32 %v3325_v28, %v3310_v62 }
0x2b13   :  { %3911 = vtanh.f32 %v5393_v7 }
0x2b20   :  { %v3912_v41 = vpop.eup %3911 }
0x2b21   :  { %3336 = vrot.lane.b32.xlu1 %v3912_v41, %s3935_s2  ;;  %v3531_v41 = vld [vmem:[#allocation5 + $0x30] sm:$0xff] }
0x2b40   :  { %v3327_v51 = vpop.permute.xlu0 %3326 }
0x2b41   :  { %v5402_v57 = vadd.f32 %v3327_v51, %v3311_v45 }
0x2b43   :  { %3913 = vtanh.f32 %v5402_v57  ;;  %v3345_v13 = vsel %vm1868_vm5, %v5402_v57, %v5399_v17 }
0x2b50   :  { %v3914_v53 = vpop.eup %3913 }
0x2b51   :  { %3338 = vrot.lane.b32.xlu0 %v3914_v53, %s3935_s2 }
0x2b93   :  { %v3337_v20 = vpop.permute.xlu1 %3336 }
0x2b94   :  { %v3342_v50 = vmul.f32 %v3337_v20, %v3308_v43 }
0x2b96   :  { %3349 = vrot.lane.b32.xlu1 %v3342_v50, %s3936_s4 }
0x2bc3   :  { %v3339_v56 = vpop.permute.xlu0 %3338 }
0x2bc4   :  { %v3343_v54 = vmul.f32 %v3339_v56, %v3309_v22 }
0x2bc6   :  { %v5434_v5 = vsel %vm1868_vm5, %v3343_v54, %v5372_v27 }
0x2bc7   :  { %3368 = vrot.lane.b32.xlu0 %v5434_v5, %s3936_s4 }
0x2c08   :  { %v5438_v48 = vpop.permute.xlu1 %3349 }
0x2c09   :  { %3657 = vmatmul.mubr.msk.f32.vlgmr.msra.gmra.mxu0 %vm502_vm0, %v5438_v48 }
0x2c39   :  { %v3369_v19 = vpop.permute.xlu0 %3368 }
0x2c3a   :  { %3658 = vmatmul.mubr.msk.f32.vlgmr.msra.gmra.mxu1 %vm502_vm0, %v3369_v19 }
0x2cc9   :  { %v3440_v61 = vpop.f32.mrf.mxu0 }
0x2cca   :  { %v3453_v58 = vadd.f32 %v3440_v61, %v5145_v11 }
0x2ccb   :  { %v3442_v8 = vpop.f32.mrf.mxu0 }
0x2ccc   :  { %v3659_v40 = vmul.f32 -1.442695, %v3453_v58 }
0x2cce   :  { %3915 = vpow2.f32 %v3659_v40 }
0x2ccf   :  { %3917 = vtanh.f32 %v3453_v58 }
0x2cdb   :  { %v3916_v46 = vpop.eup %3915 }
0x2cdc   :  { %v3461_v30 = vadd.f32 1.0, %v3916_v46  ;;  %v3918_v14 = vpop.eup %3917 }
0x2cde   :  { %3919 = vrcp.f32 %v3461_v30 }
0x2ceb   :  { %v3920_v59 = vpop.eup %3919 }
0x2cec   :  { %v3469_v12 = vsel %vm4559_vm4, %v3918_v14, %v3920_v59 }
0x2ced   :  { %3475 = vrot.lane.b32.xlu1 %v3469_v12, %s3935_s2 }
0x2cfa   :  { %v3446_v15 = vpop.f32.mrf.mxu1 }
0x2cfc   :  { %v3448_v10 = vpop.f32.mrf.mxu1 }
0x2cfd   :  { %v3454_v0 = vadd.f32 %v3448_v10, %v5119_v55  ;;  %v3471_v55 = vmul.f32 %v3469_v12, %v5393_v7 }
0x2cff   :  { %v3660_v63 = vmul.f32 -1.442695, %v3454_v0 }
0x2d01   :  { %3921 = vpow2.f32 %v3660_v63 }
0x2d02   :  { %3923 = vtanh.f32 %v3454_v0 }
0x2d0e   :  { %v3922_v11 = vpop.eup %3921 }
0x2d0f   :  { %v3462_v43 = vadd.f32 1.0, %v3922_v11  ;;  %v3924_v44 = vpop.eup %3923 }
0x2d11   :  { %3925 = vrcp.f32 %v3462_v43 }
0x2d1e   :  { %v3926_v42 = vpop.eup %3925 }
0x2d1f   :  { %v3470_v3 = vsel %vm4559_vm4, %v3924_v44, %v3926_v42 }
0x2d20   :  { %3477 = vrot.lane.b32.xlu0 %v3470_v3, %s3935_s2  ;;  %v3472_v4 = vmul.f32 %v3470_v3, %v3345_v13 }
0x2d5f   :  { %v3476_v16 = vpop.permute.xlu1 %3475 }
0x2d60   :  { %v3481_v33 = vmul.f32 %v3476_v16, %v3469_v12 }
0x2d62   :  { %3485 = vrot.lane.b32.xlu1 %v3481_v33, %s3936_s4 }
0x2d92   :  { %v3478_v18 = vpop.permute.xlu0 %3477 }
0x2d93   :  { %v3482_v2 = vmul.f32 %v3478_v18, %v3470_v3 }
0x2d95   :  { %3487 = vrot.lane.b32.xlu0 %v3482_v2, %s3936_s4 }
0x2dd4   :  { %v3486_v34 = vpop.permute.xlu1 %3485 }
0x2dd5   :  { %v3491_v22 = vadd.f32 %v3486_v34, %v3471_v55 }
0x2dd7   :  { %3927 = vtanh.f32 %v3491_v22 }
0x2de4   :  { %v3928_v47 = vpop.eup %3927 }
0x2de5   :  { %3497 = vrot.lane.b32.xlu1 %v3928_v47, %s3935_s2 }
0x2de9   :  { %2549 = vrot.lane.b32.xlu1 %v5212_v26, %s3935_s2 }
0x2ded   :  { %2871 = vrot.lane.b32.xlu1 %v5306_v37, %s3935_s2  ;;  %v3528_v37 = vld [vmem:[#allocation5 + $0x18] sm:$0xff] }
0x2df1   :  { %3193 = vrot.lane.b32.xlu1 %v5372_v27, %s3935_s2 }
0x2df5   :  { %3541 = vrot.lane.b32.xlu1 %v3525_v39, %s3935_s2 }
0x2df9   :  { %3545 = vrot.lane.b32.xlu1 %v3527_v49, %s3935_s2 }
0x2e07   :  { %v3488_v62 = vpop.permute.xlu0 %3487 }
0x2e08   :  { %v3492_v26 = vadd.f32 %v3488_v62, %v3472_v4 }
0x2e0a   :  { %3929 = vtanh.f32 %v3492_v26 }
0x2e17   :  { %v3930_v28 = vpop.eup %3929 }
0x2e18   :  { %3499 = vrot.lane.b32.xlu0 %v3930_v28, %s3935_s2 }
0x2e1c   :  { %2388 = vrot.lane.b32.xlu0 %v5166_v60, %s3935_s2 }
0x2e20   :  { %2710 = vrot.lane.b32.xlu0 %v5259_v32, %s3935_s2  ;;  %v3529_v32 = vld [vmem:[#allocation5 + $0x20] sm:$0xff] }
0x2e24   :  { %3032 = vrot.lane.b32.xlu0 %v5343_v23, %s3935_s2 }
0x2e28   :  { %3354 = vrot.lane.b32.xlu0 %v5434_v5, %s3935_s2 }
0x2e2c   :  { %3543 = vrot.lane.b32.xlu0 %v3526_v25, %s3935_s2 }
0x2e30   :  { %3547 = vrot.lane.b32.xlu0 %v3528_v37, %s3935_s2 }
0x2e57   :  { %v3498_v27 = vpop.permute.xlu1 %3497 }
0x2e58   :  { %v3503_v7 = vmul.f32 %v3498_v27, %v3469_v12 }
0x2e5a   :  { %3508 = vrot.lane.b32.xlu1 %v3503_v7, %s3936_s4 }
0x2e5b   :  { %v2550_v60 = vpop.permute.xlu1 %2549 }
0x2e5c   :  { %2552 = vst.msk [vmem:[#allocation4 + $0x30] sm:$0xff] %vm879_vm9, %v2550_v60 }
0x2e5d   :  { %3352 = vst.msk [vmem:[#allocation4 + $0x30] sm:$0xff] %vm502_vm0, %v5438_v48 }
0x2e5e   :  { %3549 = vrot.lane.b32.xlu1 %v3529_v32, %s3935_s2 }
0x2e5f   :  { %v2872_v23 = vpop.permute.xlu1 %2871 }
0x2e60   :  { %2874 = vst.msk [vmem:[#allocation4 + $0x20] sm:$0xff] %vm879_vm9, %v2872_v23 }
0x2e61   :  { %3030 = vst.msk [vmem:[#allocation4 + $0x20] sm:$0xff] %vm502_vm0, %v5347_v21 }
0x2e62   :  { %3553 = vrot.lane.b32.xlu1 %v3531_v41, %s3935_s2 }
0x2e63   :  { %v3194_v17 = vpop.permute.xlu1 %3193 }
0x2e64   :  { %3196 = vst.msk [vmem:[#allocation4 + $0x10] sm:$0xff] %vm879_vm9, %v3194_v17  ;;  %v3523_v58 = vld [vmem:[#allocation4 + $0x30] sm:$0xff] }
0x2e67   :  { %v3542_v45 = vpop.permute.xlu1 %3541 }
0x2e68   :  { %v3521_v48 = vld [vmem:[#allocation4 + $0x20] sm:$0xff] }
0x2e6b   :  { %v3519_v51 = vld [vmem:[#allocation4 + $0x10] sm:$0xff]  ;;  %v3546_v57 = vpop.permute.xlu1 %3545 }
0x2e6c   :  { %v3567_v35 = vsel %vm511_vm1, %v3519_v51, %v3546_v57 }
0x2e6d   :  { %3575 = vst [vmem:[%s5545_s11 + $0x10] sm:$0xff] %v3567_v35 }
0x2e8a   :  { %v3500_v36 = vpop.permute.xlu0 %3499 }
0x2e8b   :  { %v3504_v29 = vmul.f32 %v3500_v36, %v3470_v3 }
0x2e8d   :  { %v3506_v21 = vsel %vm2035_vm11, %v3504_v29, %v5434_v5 }
0x2e8e   :  { %3513 = vrot.lane.b32.xlu0 %v3506_v21, %s3935_s2  ;;  %v2389_v31 = vpop.permute.xlu0 %2388 }
0x2e8f   :  { %2391 = vst.msk [vmem:[#allocation4 + $0x38] sm:$0xff] %vm879_vm9, %v2389_v31 }
0x2e92   :  { %3551 = vrot.lane.b32.xlu0 %v3530_v24, %s3935_s2  ;;  %v2711_v1 = vpop.permute.xlu0 %2710 }
0x2e93   :  { %2713 = vst.msk [vmem:[#allocation4 + $0x28] sm:$0xff] %vm879_vm9, %v2711_v1 }
0x2e94   :  { %3191 = vst.msk [vmem:[#allocation4 + $0x28] sm:$0xff] %vm502_vm0, %v5376_v6 }
0x2e96   :  { %3555 = vrot.lane.b32.xlu0 %v3532_v52, %s3935_s2  ;;  %v3033_v38 = vpop.permute.xlu0 %3032 }
0x2e97   :  { %3035 = vst.msk [vmem:[#allocation4 + $0x18] sm:$0xff] %vm879_vm9, %v3033_v38 }
0x2e9a   :  { %v3355_v9 = vpop.permute.xlu0 %3354 }
0x2e9b   :  { %3357 = vst.msk [vmem:[#allocation4 + $0x8] sm:$0xff] %vm879_vm9, %v3355_v9  ;;  %v3522_v30 = vld [vmem:[#allocation4 + $0x28] sm:$0xff] }
0x2e9e   :  { %v3544_v53 = vpop.permute.xlu0 %3543  ;;  %v3520_v50 = vld [vmem:[#allocation4 + $0x18] sm:$0xff] }
0x2ea2   :  { %v3518_v20 = vld [vmem:[#allocation4 + $0x8] sm:$0xff]  ;;  %v3548_v56 = vpop.permute.xlu0 %3547 }
0x2ea3   :  { %v3566_v54 = vsel %vm511_vm1, %v3518_v20, %v3544_v53  ;;  %v3568_v5 = vsel %vm511_vm1, %v3520_v50, %v3548_v56 }
0x2ea4   :  { %3574 = vst [vmem:[%s5545_s11 + $0x8] sm:$0xff] %v3566_v54  ;;  %3576 = vst [vmem:[%s5545_s11 + $0x18] sm:$0xff] %v3568_v5 }
0x2ecc   :  { %v3509_v6 = vpop.permute.xlu1 %3508 }
0x2ecd   :  { %3511 = vst.msk [vmem:[#allocation4 + $0x38] sm:$0xff] %vm502_vm0, %v3509_v6 }
0x2ed0   :  { %v3550_v19 = vpop.permute.xlu1 %3549 }
0x2ed1   :  { %v3569_v61 = vsel %vm511_vm1, %v3521_v48, %v3550_v19 }
0x2ed2   :  { %3577 = vst [vmem:[%s5545_s11 + $0x20] sm:$0xff] %v3569_v61 }
0x2ed4   :  { %v3554_v8 = vpop.permute.xlu1 %3553  ;;  %v3524_v10 = vld [vmem:[#allocation4 + $0x38] sm:$0xff] }
0x2ed5   :  { %v3571_v40 = vsel %vm511_vm1, %v3523_v58, %v3554_v8 }
0x2ed6   :  { %3579 = vst [vmem:[%s5545_s11 + $0x30] sm:$0xff] %v3571_v40 }
0x2f00   :  { %v3514_v46 = vpop.permute.xlu0 %3513 }
0x2f01   :  { %3516 = vst.msk [vmem:[#allocation4] sm:$0xff] %vm879_vm9, %v3514_v46 }
0x2f04   :  { %v3552_v14 = vpop.permute.xlu0 %3551 }
0x2f05   :  { %v3570_v59 = vsel %vm511_vm1, %v3522_v30, %v3552_v14 }
0x2f06   :  { %3578 = vst [vmem:[%s5545_s11 + $0x28] sm:$0xff] %v3570_v59 }
0x2f08   :  { %v3517_v12 = vld [vmem:[#allocation4] sm:$0xff]  ;;  %v3556_v15 = vpop.permute.xlu0 %3555 }
0x2f09   :  { %v3565_v0 = vsel %vm511_vm1, %v3517_v12, %v3542_v45  ;;  %v3572_v63 = vsel %vm511_vm1, %v3524_v10, %v3556_v15 }
0x2f0a   :  { %3573 = vst [vmem:[%s5545_s11] sm:$0xff] %v3565_v0  ;;  %3580 = vst [vmem:[%s5545_s11 + $0x38] sm:$0xff] %v3572_v63 }

</bundles_post_ra>
